<compile_context>
chip_gen: v7x
topology: tpu7x:2x2x1
jax: 0.10.0
libtpu: 0.0.40
codegen_flags: <defaults>
</compile_context>

<pallas_src>
import jax
import jax.numpy as jnp
from jax import lax
from jax.experimental import pallas as pl
from jax.experimental.pallas import tpu as pltpu

HIDDEN1 = 2048   # fixed by the module: Linear(in_ch, 2048)
HIDDEN2 = 512    # fixed by the module: Linear(2048, 512)
BN_EPS = 1e-5


# ---- shared math helpers (plain jnp: used by BOTH the kernel and the ref) ----

def _bn_relu(h, gamma, beta):
    """BatchNorm1d (training mode: batch mean / biased batch var) + ReLU, f32."""
    mu = jnp.mean(h, axis=0, keepdims=True)
    var = jnp.mean((h - mu) ** 2, axis=0, keepdims=True)
    h = (h - mu) * lax.rsqrt(var + BN_EPS) * gamma + beta
    return jnp.maximum(h, 0.0)


def _softplus(x):
    """Numerically-stable softplus, f32."""
    return jnp.maximum(x, 0.0) + jnp.log(1.0 + jnp.exp(-jnp.abs(x)))


def _mean0(v):  # (N, 1) -> (1, 1)
    return jnp.mean(v, axis=0, keepdims=True)


# ------------------------------- Pallas kernel -------------------------------

def mi_estimator_kernel(
    xa_ref, x2_ref,
    w1a_ref, w1b_ref, b1_ref, g1_ref, be1_ref,
    w2_hbm_ref, b2_ref, g2_ref, be2_ref,
    w3_ref, b3_ref,
    o_ref,
    w2_vmem, w2_sem,
):
    f32 = jnp.float32
    bf16 = jnp.bfloat16
    n = x2_ref.shape[0]                   # rows per branch; xa has 2n rows

    # Kick off the layer-2 weight DMA (dominant ~2 MB transfer) immediately so
    # it overlaps with all of layer-1 compute; wait right before the second dot.
    w2_copy = pltpu.make_async_copy(w2_hbm_ref, w2_vmem, w2_sem)
    w2_copy.start()

    xa = xa_ref[...]                      # (2N, size1) bf16, rows = [x1 ; x1_shuff]
    x2 = x2_ref[...]                      # (N,  size2) bf16

    # ---- layer 1: Linear(in_ch, 2048) on the stacked [pos; neg] batch ------
    # cat([x1?, x2], 1) @ W1  done as a split matmul; the x2 part is shared.
    h1_shared = jnp.dot(x2, w1b_ref[...], preferred_element_type=f32)      # (N, 2048)
    h = jnp.dot(xa, w1a_ref[...], preferred_element_type=f32)              # (2N, 2048)
    h = h + jnp.concatenate([h1_shared, h1_shared], axis=0) + b1_ref[...]

    # BatchNorm1d + ReLU, independent batch statistics per branch.
    g1, be1 = g1_ref[...], be1_ref[...]
    h = jnp.concatenate(
        [_bn_relu(h[:n], g1, be1), _bn_relu(h[n:], g1, be1)], axis=0
    ).astype(bf16)                                                          # (2N, 2048)

    # ---- layer 2: Linear(2048, 512) on the stacked batch -------------------
    w2_copy.wait()
    h = jnp.dot(h, w2_vmem[...], preferred_element_type=f32) + b2_ref[...]  # (2N, 512)
    g2, be2 = g2_ref[...], be2_ref[...]
    h = jnp.concatenate(
        [_bn_relu(h[:n], g2, be2), _bn_relu(h[n:], g2, be2)], axis=0
    )                                                                       # (2N, 512) f32

    # ---- layer 3: Linear(512, 1) as VPU multiply + lane reduce -------------
    z = jnp.sum(h * w3_ref[...], axis=-1, keepdims=True) + b3_ref[...]      # (2N, 1)
    pos, neg = z[:n], z[n:]

    # (-softplus(-pos).mean() - softplus(neg).mean(),
    #   pos.mean() - neg.exp().mean() + 1)
    r1 = -_mean0(_softplus(-pos)) - _mean0(_softplus(neg))                  # (1, 1)
    r2 = _mean0(pos) - _mean0(jnp.exp(neg)) + 1.0                           # (1, 1)

    lane = lax.broadcasted_iota(jnp.int32, (1, 128), 1)
    o_ref[...] = jnp.where(lane == 0, r1, 0.0) + jnp.where(lane == 1, r2, 0.0)


def mi_estimator_forward(x1, x2, x1_shuff, params):
    """x1:(N,size1) x2:(N,size2) x1_shuff:(N,size1), all f32. Returns 2 scalars."""
    bf16 = jnp.bfloat16
    # Stack pos/neg batches (2N rows -> bf16 sublane-packing friendly) and cast
    # MXU inputs to bf16 outside the kernel.
    xa = jnp.concatenate([x1, x1_shuff], axis=0).astype(bf16)   # (2N, size1)
    x2b = x2.astype(bf16)                                        # (N,  size2)

    vmem = pl.BlockSpec(memory_space=pltpu.MemorySpace.VMEM)
    hbm = pl.BlockSpec(memory_space=pl.ANY)   # w2 stays in HBM; DMA'd manually

    args = (
        xa, x2b,
        params["w1a"], params["w1b"], params["b1"], params["g1"], params["be1"],
        params["w2"], params["b2"], params["g2"], params["be2"],
        params["w3"], params["b3"],
    )
    in_specs = [vmem, vmem,
                vmem, vmem, vmem, vmem, vmem,
                hbm, vmem, vmem, vmem,
                vmem, vmem]

    out = pl.pallas_call(
        mi_estimator_kernel,
        out_shape=jax.ShapeDtypeStruct((1, 128), jnp.float32),
        in_specs=in_specs,
        out_specs=vmem,
        scratch_shapes=[
            pltpu.VMEM((HIDDEN1, HIDDEN2), jnp.bfloat16),   # w2 landing buffer
            pltpu.SemaphoreType.DMA(()),
        ],
    )(*args)
    return out[0, 0], out[0, 1]


# ------------------------------ init & reference -----------------------------

def init_params(key, size1, size2):
    """Matches weights_init_kaiming:
    Linear: kaiming_normal_(a=0, mode='fan_out') -> std = sqrt(2/out_features),
            bias = 0.   BatchNorm1d: weight ~ N(1.0, 0.02), bias = 0.
    Linear weights stored (in, out) [transposed vs. PyTorch]; matmul weights
    cast to bf16 for the MXU, all elementwise params kept f32.
    """
    ks = jax.random.split(key, 5)
    in_ch = size1 + size2

    def kaiming(k, fan_in, fan_out):
        std = (2.0 / fan_out) ** 0.5
        return jax.random.normal(k, (fan_in, fan_out), jnp.float32) * std

    w1 = kaiming(ks[0], in_ch, HIDDEN1)
    p = {
        "w1a": w1[:size1].astype(jnp.bfloat16),           # cat([x1, x2]) split
        "w1b": w1[size1:].astype(jnp.bfloat16),
        "b1": jnp.zeros((1, HIDDEN1), jnp.float32),
        "w2": kaiming(ks[1], HIDDEN1, HIDDEN2).astype(jnp.bfloat16),
        "b2": jnp.zeros((1, HIDDEN2), jnp.float32),
        "w3": kaiming(ks[2], HIDDEN2, 1).reshape(1, HIDDEN2),   # f32 row, used on VPU
        "b3": jnp.zeros((1, 1), jnp.float32),
        "g1": 1.0 + 0.02 * jax.random.normal(ks[3], (1, HIDDEN1), jnp.float32),
        "be1": jnp.zeros((1, HIDDEN1), jnp.float32),
        "g2": 1.0 + 0.02 * jax.random.normal(ks[4], (1, HIDDEN2), jnp.float32),
        "be2": jnp.zeros((1, HIDDEN2), jnp.float32),
    }
    return p


def mi_estimator_ref(x1, x2, x1s, p):
    """Pure-JAX reference replicating the kernel numerics (bf16 MXU operands,
    f32 accumulation / elementwise) but traced as two separate branches —
    fusing the batch in the kernel must not change any value."""
    f32 = jnp.float32
    bf16 = jnp.bfloat16
    h1_shared = jnp.dot(x2.astype(bf16), p["w1b"], preferred_element_type=f32)

    def block(xa):
        h = jnp.dot(xa.astype(bf16), p["w1a"], preferred_element_type=f32) \
            + h1_shared + p["b1"]
        h = _bn_relu(h, p["g1"], p["be1"])
        h = jnp.dot(h.astype(bf16), p["w2"], preferred_element_type=f32) + p["b2"]
        h = _bn_relu(h, p["g2"], p["be2"])
        return jnp.sum(h * p["w3"], axis=-1, keepdims=True) + p["b3"]

    pos, neg = block(x1), block(x1s)
    r1 = -jnp.mean(_softplus(-pos)) - jnp.mean(_softplus(neg))
    r2 = jnp.mean(pos) - jnp.mean(jnp.exp(neg)) + 1.0
    return r1, r2


if __name__ == "__main__":
    key = jax.random.PRNGKey(0)
    k_param, k_x1, k_x2, k_perm = jax.random.split(key, 4)

    SIZE1, SIZE2, BATCH = 64, 32, 8   # small constructor sizes; 2048/512 hidden fixed
    params = init_params(k_param, SIZE1, SIZE2)

    x1 = jax.random.normal(k_x1, (BATCH, SIZE1), jnp.float32)
    x2 = jax.random.normal(k_x2, (BATCH, SIZE2), jnp.float32)
    x1_shuff = x1[jax.random.permutation(k_perm, BATCH)]

    r1, r2 = mi_estimator_forward(x1, x2, x1_shuff, params)
    r1, r2 = jax.block_until_ready((r1, r2))

    ref1, ref2 = mi_estimator_ref(x1, x2, x1_shuff, params)

    assert bool(jnp.isfinite(r1)) and bool(jnp.isfinite(r2))
    # r2 contains exp(neg).mean(): magnitudes can be large, so rtol-dominated check.
    assert jnp.allclose(r1, ref1, atol=1e-3, rtol=2e-2), (r1, ref1)
    assert jnp.allclose(r2, ref2, atol=1e-3, rtol=2e-2), (r2, ref2)

    print("KERNEL_OK")
</pallas_src>

<mosaic_0001>
module attributes {stable_mosaic.version = 11 : i64} {
  func.func @mi_estimator_kernel(%arg0: memref<16x64xbf16, #tpu.memory_space<vmem>>, %arg1: memref<8x32xbf16, #tpu.memory_space<vmem>>, %arg2: memref<64x2048xbf16, #tpu.memory_space<vmem>>, %arg3: memref<32x2048xbf16, #tpu.memory_space<vmem>>, %arg4: memref<1x2048xf32, #tpu.memory_space<vmem>>, %arg5: memref<1x2048xf32, #tpu.memory_space<vmem>>, %arg6: memref<1x2048xf32, #tpu.memory_space<vmem>>, %arg7: memref<2048x512xbf16, #tpu.memory_space<any>>, %arg8: memref<1x512xf32, #tpu.memory_space<vmem>>, %arg9: memref<1x512xf32, #tpu.memory_space<vmem>>, %arg10: memref<1x512xf32, #tpu.memory_space<vmem>>, %arg11: memref<1x512xf32, #tpu.memory_space<vmem>>, %arg12: memref<1x1xf32, #tpu.memory_space<vmem>>, %arg13: memref<1x128xf32, #tpu.memory_space<vmem>>, %arg14: memref<2048x512xbf16, #tpu.memory_space<vmem>>, %arg15: memref<!tpu.dma_semaphore, #tpu.memory_space<semaphore_mem>>) attributes {dimension_semantics = [], scalar_prefetch = 0 : i64, scratch_operands = 2 : i64, tpu.core_type = #tpu.core_type<tc>} {
    tpu.enqueue_dma source(%arg7 : memref<2048x512xbf16, #tpu.memory_space<any>>) target(%arg14 : memref<2048x512xbf16, #tpu.memory_space<vmem>>) target_semaphore(%arg15 : memref<!tpu.dma_semaphore, #tpu.memory_space<semaphore_mem>>)
    %c0 = arith.constant 0 : index
    %c0_0 = arith.constant 0 : index
    %0 = vector.load %arg0[%c0, %c0_0] : memref<16x64xbf16, #tpu.memory_space<vmem>>, vector<16x64xbf16>
    %c0_1 = arith.constant 0 : index
    %c0_2 = arith.constant 0 : index
    %1 = vector.load %arg1[%c0_1, %c0_2] : memref<8x32xbf16, #tpu.memory_space<vmem>>, vector<8x32xbf16>
    %c0_3 = arith.constant 0 : index
    %c0_4 = arith.constant 0 : index
    %2 = vector.load %arg3[%c0_3, %c0_4] : memref<32x2048xbf16, #tpu.memory_space<vmem>>, vector<32x2048xbf16>
    %cst = arith.constant dense<0.000000e+00> : vector<8x2048xf32>
    %3 = tpu.matmul %1, %2, %cst {dimension_numbers = #tpu.dot_dimension_numbers<[1], [0], [0], [1], [0, 0, 1, 1], [], []>} : vector<8x32xbf16>, vector<32x2048xbf16>, vector<8x2048xf32> -> vector<8x2048xf32>
    %c0_5 = arith.constant 0 : index
    %c0_6 = arith.constant 0 : index
    %4 = vector.load %arg2[%c0_5, %c0_6] : memref<64x2048xbf16, #tpu.memory_space<vmem>>, vector<64x2048xbf16>
    %cst_7 = arith.constant dense<0.000000e+00> : vector<16x2048xf32>
    %5 = tpu.matmul %0, %4, %cst_7 {dimension_numbers = #tpu.dot_dimension_numbers<[1], [0], [0], [1], [0, 0, 1, 1], [], []>} : vector<16x64xbf16>, vector<64x2048xbf16>, vector<16x2048xf32> -> vector<16x2048xf32>
    %6 = tpu.concatenate %3, %3 in 0 : vector<8x2048xf32>, vector<8x2048xf32> -> vector<16x2048xf32>
    %7 = arith.addf %5, %6 : vector<16x2048xf32>
    %c0_8 = arith.constant 0 : index
    %c0_9 = arith.constant 0 : index
    %8 = vector.load %arg4[%c0_8, %c0_9] : memref<1x2048xf32, #tpu.memory_space<vmem>>, vector<1x2048xf32>
    %9 = vector.broadcast %8 : vector<1x2048xf32> to vector<16x2048xf32>
    %10 = arith.addf %7, %9 : vector<16x2048xf32>
    %c0_10 = arith.constant 0 : index
    %c0_11 = arith.constant 0 : index
    %11 = vector.load %arg5[%c0_10, %c0_11] : memref<1x2048xf32, #tpu.memory_space<vmem>>, vector<1x2048xf32>
    %c0_12 = arith.constant 0 : index
    %c0_13 = arith.constant 0 : index
    %12 = vector.load %arg6[%c0_12, %c0_13] : memref<1x2048xf32, #tpu.memory_space<vmem>>, vector<1x2048xf32>
    %13 = vector.extract_strided_slice %10 {offsets = [0, 0], sizes = [8, 2048], strides = [1, 1]} : vector<16x2048xf32> to vector<8x2048xf32>
    %cst_14 = arith.constant dense<0.000000e+00> : vector<2048xf32>
    %14 = vector.multi_reduction <add>, %13, %cst_14 [0] : vector<8x2048xf32> to vector<2048xf32>
    %15 = vector.shape_cast %14 : vector<2048xf32> to vector<1x2048xf32>
    %cst_15 = arith.constant 8.000000e+00 : f32
    %16 = vector.broadcast %cst_15 : f32 to vector<1x2048xf32>
    %17 = arith.divf %15, %16 : vector<1x2048xf32>
    %18 = vector.broadcast %17 : vector<1x2048xf32> to vector<8x2048xf32>
    %19 = arith.subf %13, %18 : vector<8x2048xf32>
    %20 = arith.mulf %19, %19 : vector<8x2048xf32>
    %cst_16 = arith.constant dense<0.000000e+00> : vector<2048xf32>
    %21 = vector.multi_reduction <add>, %20, %cst_16 [0] : vector<8x2048xf32> to vector<2048xf32>
    %22 = vector.shape_cast %21 : vector<2048xf32> to vector<1x2048xf32>
    %cst_17 = arith.constant 8.000000e+00 : f32
    %23 = vector.broadcast %cst_17 : f32 to vector<1x2048xf32>
    %24 = arith.divf %22, %23 : vector<1x2048xf32>
    %25 = vector.broadcast %17 : vector<1x2048xf32> to vector<8x2048xf32>
    %26 = arith.subf %13, %25 : vector<8x2048xf32>
    %cst_18 = arith.constant 9.99999974E-6 : f32
    %27 = vector.broadcast %cst_18 : f32 to vector<1x2048xf32>
    %28 = arith.addf %24, %27 : vector<1x2048xf32>
    %29 = math.rsqrt %28 : vector<1x2048xf32>
    %30 = vector.broadcast %29 : vector<1x2048xf32> to vector<8x2048xf32>
    %31 = arith.mulf %26, %30 : vector<8x2048xf32>
    %32 = vector.broadcast %11 : vector<1x2048xf32> to vector<8x2048xf32>
    %33 = arith.mulf %31, %32 : vector<8x2048xf32>
    %34 = vector.broadcast %12 : vector<1x2048xf32> to vector<8x2048xf32>
    %35 = arith.addf %33, %34 : vector<8x2048xf32>
    %cst_19 = arith.constant 0.000000e+00 : f32
    %36 = vector.broadcast %cst_19 : f32 to vector<8x2048xf32>
    %37 = arith.maximumf %35, %36 : vector<8x2048xf32>
    %38 = vector.extract_strided_slice %10 {offsets = [8, 0], sizes = [8, 2048], strides = [1, 1]} : vector<16x2048xf32> to vector<8x2048xf32>
    %cst_20 = arith.constant dense<0.000000e+00> : vector<2048xf32>
    %39 = vector.multi_reduction <add>, %38, %cst_20 [0] : vector<8x2048xf32> to vector<2048xf32>
    %40 = vector.shape_cast %39 : vector<2048xf32> to vector<1x2048xf32>
    %cst_21 = arith.constant 8.000000e+00 : f32
    %41 = vector.broadcast %cst_21 : f32 to vector<1x2048xf32>
    %42 = arith.divf %40, %41 : vector<1x2048xf32>
    %43 = vector.broadcast %42 : vector<1x2048xf32> to vector<8x2048xf32>
    %44 = arith.subf %38, %43 : vector<8x2048xf32>
    %45 = arith.mulf %44, %44 : vector<8x2048xf32>
    %cst_22 = arith.constant dense<0.000000e+00> : vector<2048xf32>
    %46 = vector.multi_reduction <add>, %45, %cst_22 [0] : vector<8x2048xf32> to vector<2048xf32>
    %47 = vector.shape_cast %46 : vector<2048xf32> to vector<1x2048xf32>
    %cst_23 = arith.constant 8.000000e+00 : f32
    %48 = vector.broadcast %cst_23 : f32 to vector<1x2048xf32>
    %49 = arith.divf %47, %48 : vector<1x2048xf32>
    %50 = vector.broadcast %42 : vector<1x2048xf32> to vector<8x2048xf32>
    %51 = arith.subf %38, %50 : vector<8x2048xf32>
    %cst_24 = arith.constant 9.99999974E-6 : f32
    %52 = vector.broadcast %cst_24 : f32 to vector<1x2048xf32>
    %53 = arith.addf %49, %52 : vector<1x2048xf32>
    %54 = math.rsqrt %53 : vector<1x2048xf32>
    %55 = vector.broadcast %54 : vector<1x2048xf32> to vector<8x2048xf32>
    %56 = arith.mulf %51, %55 : vector<8x2048xf32>
    %57 = vector.broadcast %11 : vector<1x2048xf32> to vector<8x2048xf32>
    %58 = arith.mulf %56, %57 : vector<8x2048xf32>
    %59 = vector.broadcast %12 : vector<1x2048xf32> to vector<8x2048xf32>
    %60 = arith.addf %58, %59 : vector<8x2048xf32>
    %cst_25 = arith.constant 0.000000e+00 : f32
    %61 = vector.broadcast %cst_25 : f32 to vector<8x2048xf32>
    %62 = arith.maximumf %60, %61 : vector<8x2048xf32>
    %63 = tpu.concatenate %37, %62 in 0 : vector<8x2048xf32>, vector<8x2048xf32> -> vector<16x2048xf32>
    %64 = arith.truncf %63 : vector<16x2048xf32> to vector<16x2048xbf16>
    tpu.wait_dma2 semaphore(%arg15 : memref<!tpu.dma_semaphore, #tpu.memory_space<semaphore_mem>>) src(%arg7 : memref<2048x512xbf16, #tpu.memory_space<any>>) dst(%arg14 : memref<2048x512xbf16, #tpu.memory_space<vmem>>)
    %c0_26 = arith.constant 0 : index
    %c0_27 = arith.constant 0 : index
    %65 = vector.load %arg14[%c0_26, %c0_27] : memref<2048x512xbf16, #tpu.memory_space<vmem>>, vector<2048x512xbf16>
    %cst_28 = arith.constant dense<0.000000e+00> : vector<16x512xf32>
    %66 = tpu.matmul %64, %65, %cst_28 {dimension_numbers = #tpu.dot_dimension_numbers<[1], [0], [0], [1], [0, 0, 1, 1], [], []>} : vector<16x2048xbf16>, vector<2048x512xbf16>, vector<16x512xf32> -> vector<16x512xf32>
    %c0_29 = arith.constant 0 : index
    %c0_30 = arith.constant 0 : index
    %67 = vector.load %arg8[%c0_29, %c0_30] : memref<1x512xf32, #tpu.memory_space<vmem>>, vector<1x512xf32>
    %68 = vector.broadcast %67 : vector<1x512xf32> to vector<16x512xf32>
    %69 = arith.addf %66, %68 : vector<16x512xf32>
    %c0_31 = arith.constant 0 : index
    %c0_32 = arith.constant 0 : index
    %70 = vector.load %arg9[%c0_31, %c0_32] : memref<1x512xf32, #tpu.memory_space<vmem>>, vector<1x512xf32>
    %c0_33 = arith.constant 0 : index
    %c0_34 = arith.constant 0 : index
    %71 = vector.load %arg10[%c0_33, %c0_34] : memref<1x512xf32, #tpu.memory_space<vmem>>, vector<1x512xf32>
    %72 = vector.extract_strided_slice %69 {offsets = [0, 0], sizes = [8, 512], strides = [1, 1]} : vector<16x512xf32> to vector<8x512xf32>
    %cst_35 = arith.constant dense<0.000000e+00> : vector<512xf32>
    %73 = vector.multi_reduction <add>, %72, %cst_35 [0] : vector<8x512xf32> to vector<512xf32>
    %74 = vector.shape_cast %73 : vector<512xf32> to vector<1x512xf32>
    %cst_36 = arith.constant 8.000000e+00 : f32
    %75 = vector.broadcast %cst_36 : f32 to vector<1x512xf32>
    %76 = arith.divf %74, %75 : vector<1x512xf32>
    %77 = vector.broadcast %76 : vector<1x512xf32> to vector<8x512xf32>
    %78 = arith.subf %72, %77 : vector<8x512xf32>
    %79 = arith.mulf %78, %78 : vector<8x512xf32>
    %cst_37 = arith.constant dense<0.000000e+00> : vector<512xf32>
    %80 = vector.multi_reduction <add>, %79, %cst_37 [0] : vector<8x512xf32> to vector<512xf32>
    %81 = vector.shape_cast %80 : vector<512xf32> to vector<1x512xf32>
    %cst_38 = arith.constant 8.000000e+00 : f32
    %82 = vector.broadcast %cst_38 : f32 to vector<1x512xf32>
    %83 = arith.divf %81, %82 : vector<1x512xf32>
    %84 = vector.broadcast %76 : vector<1x512xf32> to vector<8x512xf32>
    %85 = arith.subf %72, %84 : vector<8x512xf32>
    %cst_39 = arith.constant 9.99999974E-6 : f32
    %86 = vector.broadcast %cst_39 : f32 to vector<1x512xf32>
    %87 = arith.addf %83, %86 : vector<1x512xf32>
    %88 = math.rsqrt %87 : vector<1x512xf32>
    %89 = vector.broadcast %88 : vector<1x512xf32> to vector<8x512xf32>
    %90 = arith.mulf %85, %89 : vector<8x512xf32>
    %91 = vector.broadcast %70 : vector<1x512xf32> to vector<8x512xf32>
    %92 = arith.mulf %90, %91 : vector<8x512xf32>
    %93 = vector.broadcast %71 : vector<1x512xf32> to vector<8x512xf32>
    %94 = arith.addf %92, %93 : vector<8x512xf32>
    %cst_40 = arith.constant 0.000000e+00 : f32
    %95 = vector.broadcast %cst_40 : f32 to vector<8x512xf32>
    %96 = arith.maximumf %94, %95 : vector<8x512xf32>
    %97 = vector.extract_strided_slice %69 {offsets = [8, 0], sizes = [8, 512], strides = [1, 1]} : vector<16x512xf32> to vector<8x512xf32>
    %cst_41 = arith.constant dense<0.000000e+00> : vector<512xf32>
    %98 = vector.multi_reduction <add>, %97, %cst_41 [0] : vector<8x512xf32> to vector<512xf32>
    %99 = vector.shape_cast %98 : vector<512xf32> to vector<1x512xf32>
    %cst_42 = arith.constant 8.000000e+00 : f32
    %100 = vector.broadcast %cst_42 : f32 to vector<1x512xf32>
    %101 = arith.divf %99, %100 : vector<1x512xf32>
    %102 = vector.broadcast %101 : vector<1x512xf32> to vector<8x512xf32>
    %103 = arith.subf %97, %102 : vector<8x512xf32>
    %104 = arith.mulf %103, %103 : vector<8x512xf32>
    %cst_43 = arith.constant dense<0.000000e+00> : vector<512xf32>
    %105 = vector.multi_reduction <add>, %104, %cst_43 [0] : vector<8x512xf32> to vector<512xf32>
    %106 = vector.shape_cast %105 : vector<512xf32> to vector<1x512xf32>
    %cst_44 = arith.constant 8.000000e+00 : f32
    %107 = vector.broadcast %cst_44 : f32 to vector<1x512xf32>
    %108 = arith.divf %106, %107 : vector<1x512xf32>
    %109 = vector.broadcast %101 : vector<1x512xf32> to vector<8x512xf32>
    %110 = arith.subf %97, %109 : vector<8x512xf32>
    %cst_45 = arith.constant 9.99999974E-6 : f32
    %111 = vector.broadcast %cst_45 : f32 to vector<1x512xf32>
    %112 = arith.addf %108, %111 : vector<1x512xf32>
    %113 = math.rsqrt %112 : vector<1x512xf32>
    %114 = vector.broadcast %113 : vector<1x512xf32> to vector<8x512xf32>
    %115 = arith.mulf %110, %114 : vector<8x512xf32>
    %116 = vector.broadcast %70 : vector<1x512xf32> to vector<8x512xf32>
    %117 = arith.mulf %115, %116 : vector<8x512xf32>
    %118 = vector.broadcast %71 : vector<1x512xf32> to vector<8x512xf32>
    %119 = arith.addf %117, %118 : vector<8x512xf32>
    %cst_46 = arith.constant 0.000000e+00 : f32
    %120 = vector.broadcast %cst_46 : f32 to vector<8x512xf32>
    %121 = arith.maximumf %119, %120 : vector<8x512xf32>
    %122 = tpu.concatenate %96, %121 in 0 : vector<8x512xf32>, vector<8x512xf32> -> vector<16x512xf32>
    %c0_47 = arith.constant 0 : index
    %c0_48 = arith.constant 0 : index
    %123 = vector.load %arg11[%c0_47, %c0_48] : memref<1x512xf32, #tpu.memory_space<vmem>>, vector<1x512xf32>
    %124 = vector.broadcast %123 : vector<1x512xf32> to vector<16x512xf32>
    %125 = arith.mulf %122, %124 : vector<16x512xf32>
    %cst_49 = arith.constant dense<0.000000e+00> : vector<16xf32>
    %126 = vector.multi_reduction <add>, %125, %cst_49 [1] : vector<16x512xf32> to vector<16xf32>
    %127 = vector.shape_cast %126 : vector<16xf32> to vector<16x1xf32>
    %c0_50 = arith.constant 0 : index
    %c0_51 = arith.constant 0 : index
    %128 = vector.load %arg12[%c0_50, %c0_51] : memref<1x1xf32, #tpu.memory_space<vmem>>, vector<1x1xf32>
    %129 = vector.broadcast %128 : vector<1x1xf32> to vector<16x1xf32>
    %130 = arith.addf %127, %129 : vector<16x1xf32>
    %131 = vector.extract_strided_slice %130 {offsets = [0, 0], sizes = [8, 1], strides = [1, 1]} : vector<16x1xf32> to vector<8x1xf32>
    %132 = vector.extract_strided_slice %130 {offsets = [8, 0], sizes = [8, 1], strides = [1, 1]} : vector<16x1xf32> to vector<8x1xf32>
    %cst_52 = arith.constant 0.000000e+00 : f32
    %133 = vector.broadcast %cst_52 : f32 to vector<8x1xf32>
    %134 = arith.subf %133, %131 : vector<8x1xf32>
    %cst_53 = arith.constant 0.000000e+00 : f32
    %135 = vector.broadcast %cst_53 : f32 to vector<8x1xf32>
    %136 = arith.maximumf %134, %135 : vector<8x1xf32>
    %137 = math.absf %134 : vector<8x1xf32>
    %cst_54 = arith.constant 0.000000e+00 : f32
    %138 = vector.broadcast %cst_54 : f32 to vector<8x1xf32>
    %139 = arith.subf %138, %137 : vector<8x1xf32>
    %140 = math.exp %139 : vector<8x1xf32>
    %cst_55 = arith.constant 1.000000e+00 : f32
    %141 = vector.broadcast %cst_55 : f32 to vector<8x1xf32>
    %142 = arith.addf %141, %140 : vector<8x1xf32>
    %143 = math.log %142 : vector<8x1xf32>
    %144 = arith.addf %136, %143 : vector<8x1xf32>
    %cst_56 = arith.constant dense<0.000000e+00> : vector<1xf32>
    %145 = vector.multi_reduction <add>, %144, %cst_56 [0] : vector<8x1xf32> to vector<1xf32>
    %146 = vector.shape_cast %145 : vector<1xf32> to vector<1x1xf32>
    %cst_57 = arith.constant 8.000000e+00 : f32
    %147 = vector.broadcast %cst_57 : f32 to vector<1x1xf32>
    %148 = arith.divf %146, %147 : vector<1x1xf32>
    %cst_58 = arith.constant 0.000000e+00 : f32
    %149 = vector.broadcast %cst_58 : f32 to vector<1x1xf32>
    %150 = arith.subf %149, %148 : vector<1x1xf32>
    %cst_59 = arith.constant 0.000000e+00 : f32
    %151 = vector.broadcast %cst_59 : f32 to vector<8x1xf32>
    %152 = arith.maximumf %132, %151 : vector<8x1xf32>
    %153 = math.absf %132 : vector<8x1xf32>
    %cst_60 = arith.constant 0.000000e+00 : f32
    %154 = vector.broadcast %cst_60 : f32 to vector<8x1xf32>
    %155 = arith.subf %154, %153 : vector<8x1xf32>
    %156 = math.exp %155 : vector<8x1xf32>
    %cst_61 = arith.constant 1.000000e+00 : f32
    %157 = vector.broadcast %cst_61 : f32 to vector<8x1xf32>
    %158 = arith.addf %157, %156 : vector<8x1xf32>
    %159 = math.log %158 : vector<8x1xf32>
    %160 = arith.addf %152, %159 : vector<8x1xf32>
    %cst_62 = arith.constant dense<0.000000e+00> : vector<1xf32>
    %161 = vector.multi_reduction <add>, %160, %cst_62 [0] : vector<8x1xf32> to vector<1xf32>
    %162 = vector.shape_cast %161 : vector<1xf32> to vector<1x1xf32>
    %cst_63 = arith.constant 8.000000e+00 : f32
    %163 = vector.broadcast %cst_63 : f32 to vector<1x1xf32>
    %164 = arith.divf %162, %163 : vector<1x1xf32>
    %165 = arith.subf %150, %164 : vector<1x1xf32>
    %cst_64 = arith.constant dense<0.000000e+00> : vector<1xf32>
    %166 = vector.multi_reduction <add>, %131, %cst_64 [0] : vector<8x1xf32> to vector<1xf32>
    %167 = vector.shape_cast %166 : vector<1xf32> to vector<1x1xf32>
    %cst_65 = arith.constant 8.000000e+00 : f32
    %168 = vector.broadcast %cst_65 : f32 to vector<1x1xf32>
    %169 = arith.divf %167, %168 : vector<1x1xf32>
    %170 = math.exp %132 : vector<8x1xf32>
    %cst_66 = arith.constant dense<0.000000e+00> : vector<1xf32>
    %171 = vector.multi_reduction <add>, %170, %cst_66 [0] : vector<8x1xf32> to vector<1xf32>
    %172 = vector.shape_cast %171 : vector<1xf32> to vector<1x1xf32>
    %cst_67 = arith.constant 8.000000e+00 : f32
    %173 = vector.broadcast %cst_67 : f32 to vector<1x1xf32>
    %174 = arith.divf %172, %173 : vector<1x1xf32>
    %175 = arith.subf %169, %174 : vector<1x1xf32>
    %cst_68 = arith.constant 1.000000e+00 : f32
    %176 = vector.broadcast %cst_68 : f32 to vector<1x1xf32>
    %177 = arith.addf %175, %176 : vector<1x1xf32>
    %178 = tpu.iota {dimensions = array<i32: 1>} : vector<1x128xi32>
    %c0_i32 = arith.constant 0 : i32
    %179 = vector.broadcast %c0_i32 : i32 to vector<1x128xi32>
    %180 = arith.cmpi eq, %178, %179 : vector<1x128xi32>
    %cst_69 = arith.constant 0.000000e+00 : f32
    %181 = vector.shape_cast %165 : vector<1x1xf32> to vector<1x1xf32>
    %182 = vector.broadcast %181 : vector<1x1xf32> to vector<1x128xf32>
    %183 = vector.broadcast %cst_69 : f32 to vector<1x128xf32>
    %184 = arith.select %180, %182, %183 : vector<1x128xi1>, vector<1x128xf32>
    %c1_i32 = arith.constant 1 : i32
    %185 = vector.broadcast %c1_i32 : i32 to vector<1x128xi32>
    %186 = arith.cmpi eq, %178, %185 : vector<1x128xi32>
    %cst_70 = arith.constant 0.000000e+00 : f32
    %187 = vector.shape_cast %177 : vector<1x1xf32> to vector<1x1xf32>
    %188 = vector.broadcast %187 : vector<1x1xf32> to vector<1x128xf32>
    %189 = vector.broadcast %cst_70 : f32 to vector<1x128xf32>
    %190 = arith.select %186, %188, %189 : vector<1x128xi1>, vector<1x128xf32>
    %191 = arith.addf %184, %190 : vector<1x128xf32>
    %c0_71 = arith.constant 0 : index
    %c0_72 = arith.constant 0 : index
    %192 = vector.load %arg13[%c0_71, %c0_72] : memref<1x128xf32, #tpu.memory_space<vmem>>, vector<1x128xf32>
    tpu.vector_store %arg13[%c0_71, %c0_72], %191 {strides = array<i32>} : memref<1x128xf32, #tpu.memory_space<vmem>>, vector<1x128xf32>,
    return
  }
}

</mosaic_0001>

<bundles_post_ra>
// kernel: tpu_custom_call.1
= control target key start
LH: loop header
LB: loop body
LE: loop exit
PB: predicated region body
PF: predicated region fallthrough
CT: control target
= control target key end

     0   :  { %s5846_s0 = inlined_call_operand.hbm [shape: bf16[16,64], index: 0, kind: input, shape index: {}]   ;;  %s5847_s1 = inlined_call_operand.hbm [shape: bf16[8,32], index: 1, kind: input, shape index: {}]   ;;  %s5848_s2 = inlined_call_operand.hbm [shape: bf16[64,2048], index: 2, kind: input, shape index: {}]   ;;  %s5849_s3 = inlined_call_operand.hbm [shape: bf16[32,2048], index: 3, kind: input, shape index: {}]   ;;  %s5850_s4 = inlined_call_operand.hbm [shape: f32[1,2048], index: 4, kind: input, shape index: {}]   ;;  %s5851_s5 = inlined_call_operand.hbm [shape: f32[1,2048], index: 5, kind: input, shape index: {}]   ;;  %s5852_s6 = inlined_call_operand.hbm [shape: f32[1,2048], index: 6, kind: input, shape index: {}]   ;;  %s5853_s7 = inlined_call_operand.hbm [shape: bf16[2048,512], index: 7, kind: input, shape index: {}]   ;;  %s5854_s8 = inlined_call_operand.hbm [shape: f32[1,512], index: 8, kind: input, shape index: {}]   ;;  %s5855_s9 = inlined_call_operand.hbm [shape: f32[1,512], index: 9, kind: input, shape index: {}]   ;;  %s5856_s10 = inlined_call_operand.hbm [shape: f32[1,512], index: 10, kind: input, shape index: {}]   ;;  %s5857_s11 = inlined_call_operand.hbm [shape: f32[1,512], index: 11, kind: input, shape index: {}]   ;;  %s5858_s12 = inlined_call_operand.<no memory space> [shape: f32[1,1], index: 12, kind: input, shape index: {}]   ;;  %s5859_s13 = inlined_call_operand.hbm [shape: f32[1,128], index: 13, kind: output, shape index: {}]  }
   0x1   :  { %v18_v0 = vstv %s5858_s12 }
   0x2   :  { %19 = vst [vmem:[#allocation4] sm:$0x1] %v18_v0 }
   0x3   :  { %20 = vsyncpa [#allocation6], 0 }
   0x4   :  { %21 = vsyncpa [#allocation9], 0 }
   0x5   :  { %22 = vsyncpa [#allocation12], 0 }
   0x6   :  { %23 = vsyncpa [#allocation15], 0 }
   0x7   :  { %24 = vsyncpa [#allocation18], 0 }
   0x8   :  { %25 = vsyncpa [#allocation21], 0 }
   0x9   :  { %26 = vsyncpa [#allocation7], 0  ;;  %s4658_s27 = smov [#allocation8]   ;;  %s4378_s14 = scalar_lea.hbm %s5847_s1, 64 }
   0xa   :  { %s45_s28 = sshll.u32 %s4658_s27, 4  ;;  %p4379_p0 = scmp.ne.s32.totalorder %s5847_s1, %s4378_s14  ;;  %s46_s28 = int_to_ptr.vmem [resolvable:$true] %s45_s28 }
   0xb   :  { %p4382_p1 = scmp.lt.u32.totalorder %s4378_s14, %s5847_s1 }
   0xd   :  { %p4384_p2 = pnand %p4382_p1, %p4379_p0 }
   0xf   :  { %4387 = shalt.err (!%p4384_p2)
}
  0x10   :  { %s4388_s18 = scalar_lea.vmem %s46_s28, 64  ;;  %p4393_p4 = scmp.lt.s32.totalorder %s46_s28, %s46_s28 }
  0x11   :  { %p4389_p3 = scmp.ne.s32.totalorder %s46_s28, %s4388_s18  ;;  %p4394_p5 = scmp.lt.s32.totalorder %s4388_s18, %s4388_s18 }
  0x13   :  { %p4395_p6 = por %p4394_p5, %p4393_p4 }
  0x15   :  { %p4396_p7 = pnand %p4395_p6, %p4389_p3 }
  0x17   :  { %4399 = shalt.err (!%p4396_p7)
}
  0x18   :  { %48 = dma.hbm_to_vmem [thread:$0]  %s5847_s1, 64, %s46_s28, [#allocation9]  }
  0x19   :  { %s4659_s21 = smov [#allocation11]   ;;  %s4660_s23 = smov [#allocation14]  }
  0x1a   :  { %s66_s22 = sshll.u32 %s4659_s21, 4  ;;  %s89_s24 = sshll.u32 %s4660_s23, 4  ;;  %s67_s22 = int_to_ptr.vmem [resolvable:$true] %s66_s22  ;;  %s90_s24 = int_to_ptr.vmem [resolvable:$true] %s89_s24 }
  0x1b   :  { %s4400_s27 = scalar_lea.hbm %s5849_s3, 4096 }
  0x1c   :  { %p4401_p8 = scmp.ne.s32.totalorder %s5849_s3, %s4400_s27  ;;  %p4404_p9 = scmp.lt.u32.totalorder %s4400_s27, %s5849_s3 }
  0x1e   :  { %p4406_p10 = pnand %p4404_p9, %p4401_p8 }
  0x20   :  { %4409 = shalt.err (!%p4406_p10)
}
  0x21   :  { %s4410_s1 = scalar_lea.vmem %s67_s22, 4096  ;;  %p4415_p12 = scmp.lt.s32.totalorder %s67_s22, %s67_s22 }
  0x22   :  { %p4411_p11 = scmp.ne.s32.totalorder %s67_s22, %s4410_s1  ;;  %p4416_p13 = scmp.lt.s32.totalorder %s4410_s1, %s4410_s1 }
  0x24   :  { %p4417_p0 = por %p4416_p13, %p4415_p12 }
  0x26   :  { %p4418_p1 = pnand %p4417_p0, %p4411_p11 }
  0x28   :  { %4421 = shalt.err (!%p4418_p1)
}
  0x29   :  { %s4661_s28 = smov 1024   ;;  %s4662_s16 = smov 64  }
  0x2a   :  { %72 = dma.hbm_to_vmem [thread:$0]  %s5849_s3, 4096, %s67_s22, [#allocation12], %s4661_s28, %s4661_s28, %s4662_s16  }
  0x2b   :  { %s4422_s20 = scalar_lea.hbm %s5851_s5, 256 }
  0x2c   :  { %p4423_p2 = scmp.ne.s32.totalorder %s5851_s5, %s4422_s20  ;;  %p4426_p3 = scmp.lt.u32.totalorder %s4422_s20, %s5851_s5 }
  0x2e   :  { %p4428_p4 = pnand %p4426_p3, %p4423_p2 }
  0x30   :  { %4431 = shalt.err (!%p4428_p4)
}
  0x31   :  { %s4432_s27 = scalar_lea.vmem %s90_s24, 256  ;;  %p4437_p6 = scmp.lt.s32.totalorder %s90_s24, %s90_s24 }
  0x32   :  { %p4433_p5 = scmp.ne.s32.totalorder %s90_s24, %s4432_s27  ;;  %p4438_p7 = scmp.lt.s32.totalorder %s4432_s27, %s4432_s27 }
  0x34   :  { %p4439_p8 = por %p4438_p7, %p4437_p6 }
  0x36   :  { %p4440_p9 = pnand %p4439_p8, %p4433_p5 }
  0x38   :  { %4443 = shalt.err (!%p4440_p9)
}
  0x39   :  { %92 = dma.hbm_to_vmem [thread:$0]  %s5851_s5, 256, %s90_s24, [#allocation15]  }
  0x3a   :  { %s4663_s29 = smov [#allocation17]   ;;  %s4664_s14 = smov [#allocation20]  }
  0x3b   :  { %s109_s30 = sshll.u32 %s4663_s29, 4  ;;  %s129_s15 = sshll.u32 %s4664_s14, 4  ;;  %s110_s30 = int_to_ptr.vmem [resolvable:$true] %s109_s30  ;;  %s130_s15 = int_to_ptr.vmem [resolvable:$true] %s129_s15 }
  0x3c   :  { %s4444_s17 = scalar_lea.hbm %s5854_s8, 64 }
  0x3d   :  { %p4445_p10 = scmp.ne.s32.totalorder %s5854_s8, %s4444_s17  ;;  %p4448_p11 = scmp.lt.u32.totalorder %s4444_s17, %s5854_s8 }
  0x3f   :  { %p4450_p12 = pnand %p4448_p11, %p4445_p10 }
  0x41   :  { %4453 = shalt.err (!%p4450_p12)
}
  0x42   :  { %s4454_s5 = scalar_lea.vmem %s110_s30, 64  ;;  %p4459_p0 = scmp.lt.s32.totalorder %s110_s30, %s110_s30 }
  0x43   :  { %p4455_p13 = scmp.ne.s32.totalorder %s110_s30, %s4454_s5  ;;  %p4460_p1 = scmp.lt.s32.totalorder %s4454_s5, %s4454_s5 }
  0x45   :  { %p4461_p2 = por %p4460_p1, %p4459_p0 }
  0x47   :  { %p4462_p3 = pnand %p4461_p2, %p4455_p13 }
  0x49   :  { %4465 = shalt.err (!%p4462_p3)
}
  0x4a   :  { %112 = dma.hbm_to_vmem [thread:$0]  %s5854_s8, 64, %s110_s30, [#allocation18]  }
  0x4b   :  { %s4466_s27 = scalar_lea.hbm %s5856_s10, 64 }
  0x4c   :  { %p4467_p4 = scmp.ne.s32.totalorder %s5856_s10, %s4466_s27  ;;  %p4470_p5 = scmp.lt.u32.totalorder %s4466_s27, %s5856_s10 }
  0x4e   :  { %p4472_p6 = pnand %p4470_p5, %p4467_p4 }
  0x50   :  { %4475 = shalt.err (!%p4472_p6)
}
  0x51   :  { %s4476_s1 = scalar_lea.vmem %s130_s15, 64  ;;  %p4481_p8 = scmp.lt.s32.totalorder %s130_s15, %s130_s15 }
  0x52   :  { %p4477_p7 = scmp.ne.s32.totalorder %s130_s15, %s4476_s1  ;;  %p4482_p9 = scmp.lt.s32.totalorder %s4476_s1, %s4476_s1 }
  0x54   :  { %p4483_p10 = por %p4482_p9, %p4481_p8 }
  0x56   :  { %p4484_p11 = pnand %p4483_p10, %p4477_p7 }
  0x58   :  { %4487 = shalt.err (!%p4484_p11)
}
  0x59   :  { %132 = dma.hbm_to_vmem [thread:$0]  %s5856_s10, 64, %s130_s15, [#allocation21]  }
  0x5a   :  { %s4665_s12 = smov [#allocation5]   ;;  %s4488_s20 = scalar_lea.hbm %s5846_s0, 128 }
  0x5b   :  { %s32_s17 = sshll.u32 %s4665_s12, 4  ;;  %p4489_p12 = scmp.ne.s32.totalorder %s5846_s0, %s4488_s20  ;;  %s33_s17 = int_to_ptr.vmem [resolvable:$true] %s32_s17 }
  0x5c   :  { %p4492_p13 = scmp.lt.u32.totalorder %s4488_s20, %s5846_s0 }
  0x5e   :  { %p4494_p0 = pnand %p4492_p13, %p4489_p12 }
  0x60   :  { %4497 = shalt.err (!%p4494_p0)
}
  0x61   :  { %s4498_s25 = scalar_lea.vmem %s33_s17, 128  ;;  %p4503_p2 = scmp.lt.s32.totalorder %s33_s17, %s33_s17 }
  0x62   :  { %p4499_p1 = scmp.ne.s32.totalorder %s33_s17, %s4498_s25  ;;  %p4504_p3 = scmp.lt.s32.totalorder %s4498_s25, %s4498_s25 }
  0x64   :  { %p4505_p4 = por %p4504_p3, %p4503_p2 }
  0x66   :  { %p4506_p5 = pnand %p4505_p4, %p4499_p1 }
  0x68   :  { %4509 = shalt.err (!%p4506_p5)
}
  0x69   :  { %s4666_s10 = smov 4   ;;  %s4667_s27 = smov [#allocation10]  }
  0x6a   :  { %38 = dma.hbm_to_vmem [thread:$0]  %s5846_s0, 128, %s33_s17, [#allocation6], %s4662_s16, %s4662_s16, %s4666_s10  }
  0x6b   :  { %s54_s3 = sshll.u32 %s4667_s27, 4  ;;  %s4668_s22 = smov [#allocation13]   ;;  %s55_s3 = int_to_ptr.vmem [resolvable:$true] %s54_s3 }
  0x6c   :  { %s79_s29 = sshll.u32 %s4668_s22, 4  ;;  %s4510_s8 = scalar_lea.hbm %s5848_s2, 8192  ;;  %s80_s29 = int_to_ptr.vmem [resolvable:$true] %s79_s29 }
  0x6d   :  { %p4511_p6 = scmp.ne.s32.totalorder %s5848_s2, %s4510_s8  ;;  %p4514_p7 = scmp.lt.u32.totalorder %s4510_s8, %s5848_s2 }
  0x6f   :  { %p4516_p8 = pnand %p4514_p7, %p4511_p6 }
  0x71   :  { %4519 = shalt.err (!%p4516_p8)
}
  0x72   :  { %s4520_s0 = scalar_lea.vmem %s55_s3, 8192  ;;  %p4525_p10 = scmp.lt.s32.totalorder %s55_s3, %s55_s3 }
  0x73   :  { %p4521_p9 = scmp.ne.s32.totalorder %s55_s3, %s4520_s0  ;;  %p4526_p11 = scmp.lt.s32.totalorder %s4520_s0, %s4520_s0 }
  0x75   :  { %p4527_p12 = por %p4526_p11, %p4525_p10 }
  0x77   :  { %p4528_p13 = pnand %p4527_p12, %p4521_p9 }
  0x79   :  { %4531 = shalt.err (!%p4528_p13)
}
  0x7a   :  { %60 = dma.hbm_to_vmem [thread:$0]  %s5848_s2, 8192, %s55_s3, [#allocation9], %s4661_s28, %s4661_s28, %s4662_s16  }
  0x7b   :  { %s4532_s24 = scalar_lea.hbm %s5850_s4, 256 }
  0x7c   :  { %p4533_p0 = scmp.ne.s32.totalorder %s5850_s4, %s4532_s24  ;;  %p4536_p1 = scmp.lt.u32.totalorder %s4532_s24, %s5850_s4 }
  0x7e   :  { %p4538_p2 = pnand %p4536_p1, %p4533_p0 }
  0x80   :  { %4541 = shalt.err (!%p4538_p2)
}
  0x81   :  { %s4542_s27 = scalar_lea.vmem %s80_s29, 256  ;;  %p4547_p4 = scmp.lt.s32.totalorder %s80_s29, %s80_s29 }
  0x82   :  { %p4543_p3 = scmp.ne.s32.totalorder %s80_s29, %s4542_s27  ;;  %p4548_p5 = scmp.lt.s32.totalorder %s4542_s27, %s4542_s27 }
  0x84   :  { %p4549_p6 = por %p4548_p5, %p4547_p4 }
  0x86   :  { %p4550_p7 = pnand %p4549_p6, %p4543_p3 }
  0x88   :  { %4553 = shalt.err (!%p4550_p7)
}
  0x89   :  { %82 = dma.hbm_to_vmem [thread:$0]  %s5850_s4, 256, %s80_s29, [#allocation12]  }
  0x8a   :  { %s4669_s3 = smov [#allocation16]   ;;  %s4670_s14 = smov [#allocation19]  }
  0x8b   :  { %s99_s22 = sshll.u32 %s4669_s3, 4  ;;  %s119_s1 = sshll.u32 %s4670_s14, 4  ;;  %s100_s22 = int_to_ptr.vmem [resolvable:$true] %s99_s22  ;;  %s120_s1 = int_to_ptr.vmem [resolvable:$true] %s119_s1 }
  0x8c   :  { %s4554_s12 = scalar_lea.hbm %s5852_s6, 256 }
  0x8d   :  { %p4555_p8 = scmp.ne.s32.totalorder %s5852_s6, %s4554_s12  ;;  %p4558_p9 = scmp.lt.u32.totalorder %s4554_s12, %s5852_s6 }
  0x8f   :  { %p4560_p10 = pnand %p4558_p9, %p4555_p8 }
  0x91   :  { %4563 = shalt.err (!%p4560_p10)
}
  0x92   :  { %s4564_s4 = scalar_lea.vmem %s100_s22, 256  ;;  %p4569_p12 = scmp.lt.s32.totalorder %s100_s22, %s100_s22 }
  0x93   :  { %p4565_p11 = scmp.ne.s32.totalorder %s100_s22, %s4564_s4  ;;  %p4570_p13 = scmp.lt.s32.totalorder %s4564_s4, %s4564_s4 }
  0x95   :  { %p4571_p0 = por %p4570_p13, %p4569_p12 }
  0x97   :  { %p4572_p1 = pnand %p4571_p0, %p4565_p11 }
  0x99   :  { %4575 = shalt.err (!%p4572_p1)
}
  0x9a   :  { %102 = dma.hbm_to_vmem [thread:$0]  %s5852_s6, 256, %s100_s22, [#allocation15]  }
  0x9b   :  { %s4576_s24 = scalar_lea.hbm %s5855_s9, 64 }
  0x9c   :  { %p4577_p2 = scmp.ne.s32.totalorder %s5855_s9, %s4576_s24  ;;  %p4580_p3 = scmp.lt.u32.totalorder %s4576_s24, %s5855_s9 }
  0x9e   :  { %p4582_p4 = pnand %p4580_p3, %p4577_p2 }
  0xa0   :  { %4585 = shalt.err (!%p4582_p4)
}
  0xa1   :  { %s4586_s27 = scalar_lea.vmem %s120_s1, 64  ;;  %p4591_p6 = scmp.lt.s32.totalorder %s120_s1, %s120_s1 }
  0xa2   :  { %p4587_p5 = scmp.ne.s32.totalorder %s120_s1, %s4586_s27  ;;  %p4592_p7 = scmp.lt.s32.totalorder %s4586_s27, %s4586_s27 }
  0xa4   :  { %p4593_p8 = por %p4592_p7, %p4591_p6 }
  0xa6   :  { %p4594_p9 = pnand %p4593_p8, %p4587_p5 }
  0xa8   :  { %4597 = shalt.err (!%p4594_p9)
}
  0xa9   :  { %122 = dma.hbm_to_vmem [thread:$0]  %s5855_s9, 64, %s120_s1, [#allocation18]  }
  0xaa   :  { %s4671_s28 = smov [#allocation22]   ;;  %s4598_s8 = scalar_lea.hbm %s5857_s11, 64 }
  0xab   :  { %s139_s3 = sshll.u32 %s4671_s28, 4  ;;  %p4599_p10 = scmp.ne.s32.totalorder %s5857_s11, %s4598_s8  ;;  %s140_s3 = int_to_ptr.vmem [resolvable:$true] %s139_s3 }
  0xac   :  { %p4602_p11 = scmp.lt.u32.totalorder %s4598_s8, %s5857_s11 }
  0xae   :  { %p4604_p12 = pnand %p4602_p11, %p4599_p10 }
  0xb0   :  { %4607 = shalt.err (!%p4604_p12)
}
  0xb1   :  { %s4608_s0 = scalar_lea.vmem %s140_s3, 64  ;;  %p4613_p0 = scmp.lt.s32.totalorder %s140_s3, %s140_s3 }
  0xb2   :  { %p4609_p13 = scmp.ne.s32.totalorder %s140_s3, %s4608_s0  ;;  %p4614_p1 = scmp.lt.s32.totalorder %s4608_s0, %s4608_s0 }
  0xb4   :  { %p4615_p2 = por %p4614_p1, %p4613_p0 }
  0xb6   :  { %p4616_p3 = pnand %p4615_p2, %p4609_p13 }
  0xb8   :  { %4619 = shalt.err (!%p4616_p3)
}
  0xb9   :  { %142 = dma.hbm_to_vmem [thread:$0]  %s5857_s11, 64, %s140_s3, [#allocation21]  }
  0xba   :  { %4642 = dma.done.wait [#allocation6], 128  }
  0xbb   :  { %4643 = vsyncadd [#allocation6], 4294967168 }
  0xbc   :  { %4644 = dma.done.wait [#allocation9], 8256  }
  0xbd   :  { %4645 = vsyncadd [#allocation9], 4294959040 }
  0xbe   :  { %4646 = dma.done.wait [#allocation12], 4352  }
  0xbf   :  { %4647 = vsyncadd [#allocation12], 4294962944 }
  0xc0   :  { %4648 = dma.done.wait [#allocation15], 512  }
  0xc1   :  { %4649 = vsyncadd [#allocation15], 4294966784 }
  0xc2   :  { %4650 = dma.done.wait [#allocation18], 128  }
  0xc3   :  { %4651 = vsyncadd [#allocation18], 4294967168 }
  0xc4   :  { %4652 = dma.done.wait [#allocation21], 128  }
  0xc5   :  { %4653 = vsyncadd [#allocation21], 4294967168  ;;  %s183_s17 = sld [smem:[#allocation0]]   ;;  %s4672_s4 = smov 512   ;;  %v5861_v1 = vmov 0   ;;  %vm409_vm0 = vcmask 261120  }
  0xc6   :  { %195 = sst [smem:[#allocation25]] %s4672_s4  ;;  %445 = vmatprep.mubr.bf16.mxu0 %v5861_v1  ;;  %486 = vmatprep.mubr.bf16.mxu1 %v5861_v1  ;;  %s4674_s11 = smov 128   ;;  %vm1130_vm1 = vcmask 523264  }
  0xc7   :  { %197 = sst [smem:[#allocation25 + $0x1]] %s4672_s4  ;;  %s4675_s29 = smov [#allocation2]  }
  0xc8   :  { %199 = sst [smem:[#allocation25 + $0x2]] %s4666_s10  ;;  %s191_s20 = sshll.u32 %s4675_s29, 4  ;;  %s192_s20 = int_to_ptr.vmem [resolvable:$true] %s191_s20 }
  0xc9   :  { %201 = sst [smem:[#allocation25 + $0x3]] %s4662_s16  ;;  %s4676_s21 = smov 2  }
  0xca   :  { %203 = sst [smem:[#allocation25 + $0x4]] %s4674_s11  ;;  %s4677_s24 = smov 256  }
  0xcb   :  { %205 = sst [smem:[#allocation25 + $0x5]] %s4676_s21  ;;  %s4080_s5 = sshll.u32 %s183_s17, 26 }
  0xcc   :  { %207 = sst [smem:[#allocation25 + $0x6]] %s4677_s24  ;;  %s4081_s23 = sadd.s32 134217728, %s4080_s5 }
  0xcd   :  { %209 = sst [smem:[#allocation25 + $0x7]] %s4662_s16  ;;  %s4678_s25 = smov [#allocation3]  }
  0xce   :  { %211 = sst [smem:[#allocation25 + $0x8]] %s4666_s10  ;;  %s4679_s15 = smov [#allocation24]  }
  0xcf   :  { %213 = dma.general %s5853_s7, 65536, %s192_s20, %s4678_s25, %s4679_s15, [#allocation25], %s4081_s23, 0  }
  0xd0   :  { %v217_v2 = vld [vmem:[#allocation11] sm:$0xff]  ;;  %v218_v4 = vld [vmem:[#allocation11 + $0x8] sm:$0xff]  ;;  %v219_v16 = vld [vmem:[#allocation11 + $0x10] sm:$0xff] }
  0xd1   :  { %v225_v3 = vld [vmem:[#allocation11 + $0x40] sm:$0xff]  ;;  %v226_v6 = vld [vmem:[#allocation11 + $0x48] sm:$0xff]  ;;  %v227_v17 = vld [vmem:[#allocation11 + $0x50] sm:$0xff] }
  0xd2   :  { %v4083_v5 = vcombine.high %v217_v2, %v225_v3  ;;  %v4082_v7 = vcombine.low %v217_v2, %v225_v3  ;;  %v233_v8 = vld [vmem:[#allocation11 + $0x80] sm:$0xff]  ;;  %v4085_v10 = vcombine.high %v218_v4, %v226_v6  ;;  %v4084_v11 = vcombine.low %v218_v4, %v226_v6  ;;  %v234_v13 = vld [vmem:[#allocation11 + $0x88] sm:$0xff]  ;;  %v220_v18 = vld [vmem:[#allocation11 + $0x18] sm:$0xff] }
  0xd3   :  { %v241_v9 = vld [vmem:[#allocation11 + $0xc0] sm:$0xff]  ;;  %v242_v14 = vld [vmem:[#allocation11 + $0xc8] sm:$0xff]  ;;  %v228_v20 = vld [vmem:[#allocation11 + $0x58] sm:$0xff]  ;;  %v4087_v22 = vcombine.high %v219_v16, %v227_v17  ;;  %v4086_v29 = vcombine.low %v219_v16, %v227_v17 }
  0xd4   :  { %v4099_v12 = vcombine.high %v233_v8, %v241_v9  ;;  %413 = vmatprep.subr.bf16.mxu0 %v4083_v5  ;;  %v4101_v15 = vcombine.high %v234_v13, %v242_v14  ;;  %454 = vmatprep.subr.bf16.mxu1 %v4085_v10  ;;  %v4098_v19 = vcombine.low %v233_v8, %v241_v9  ;;  %v235_v24 = vld [vmem:[#allocation11 + $0x90] sm:$0xff]  ;;  %v236_v26 = vld [vmem:[#allocation11 + $0x98] sm:$0xff]  ;;  %v221_v33 = vld [vmem:[#allocation11 + $0x20] sm:$0xff] }
  0xd5   :  { %414 = vmatpush1.bf16.msra.mxu0 %v4082_v7  ;;  %455 = vmatpush1.bf16.msra.mxu1 %v4084_v11  ;;  %v4100_v21 = vcombine.low %v234_v13, %v242_v14  ;;  %v4089_v23 = vcombine.high %v220_v18, %v228_v20  ;;  %v243_v25 = vld [vmem:[#allocation11 + $0xd0] sm:$0xff]  ;;  %v244_v27 = vld [vmem:[#allocation11 + $0xd8] sm:$0xff]  ;;  %v4088_v30 = vcombine.low %v220_v18, %v228_v20  ;;  %v229_v34 = vld [vmem:[#allocation11 + $0x60] sm:$0xff] }
  0xd6   :  { %415 = vmatprep.subr.bf16.mxu0 %v4099_v12  ;;  %456 = vmatprep.subr.bf16.mxu1 %v4101_v15  ;;  %v4904_v28 = vld [vmem:[#allocation8] sm:$0xf]  ;;  %v4103_v31 = vcombine.high %v235_v24, %v243_v25  ;;  %v4105_v32 = vcombine.high %v236_v26, %v244_v27  ;;  %v222_v35 = vld [vmem:[#allocation11 + $0x28] sm:$0xff]  ;;  %v4102_v37 = vcombine.low %v235_v24, %v243_v25  ;;  %v237_v41 = vld [vmem:[#allocation11 + $0xa0] sm:$0xff] }
  0xd7   :  { %v230_v36 = vld [vmem:[#allocation11 + $0x68] sm:$0xff]  ;;  %v4104_v38 = vcombine.low %v236_v26, %v244_v27  ;;  %v4091_v39 = vcombine.high %v221_v33, %v229_v34  ;;  %v245_v42 = vld [vmem:[#allocation11 + $0xe0] sm:$0xff]  ;;  %v4090_v45 = vcombine.low %v221_v33, %v229_v34  ;;  %v223_v49 = vld [vmem:[#allocation11 + $0x30] sm:$0xff] }
  0xd8   :  { %v4093_v40 = vcombine.high %v222_v35, %v230_v36  ;;  %v238_v43 = vld [vmem:[#allocation11 + $0xa8] sm:$0xff]  ;;  %v4092_v46 = vcombine.low %v222_v35, %v230_v36  ;;  %v4107_v47 = vcombine.high %v237_v41, %v245_v42  ;;  %v231_v50 = vld [vmem:[#allocation11 + $0x70] sm:$0xff]  ;;  %v224_v51 = vld [vmem:[#allocation11 + $0x38] sm:$0xff]  ;;  %v4106_v53 = vcombine.low %v237_v41, %v245_v42 }
  0xd9   :  { %416 = vmatpush1.bf16.msra.mxu0 %v4098_v19  ;;  %457 = vmatpush1.bf16.msra.mxu1 %v4100_v21  ;;  %v246_v44 = vld [vmem:[#allocation11 + $0xe8] sm:$0xff]  ;;  %v232_v52 = vld [vmem:[#allocation11 + $0x78] sm:$0xff]  ;;  %v4095_v55 = vcombine.high %v223_v49, %v231_v50  ;;  %v239_v57 = vld [vmem:[#allocation11 + $0xb0] sm:$0xff]  ;;  %v4094_v61 = vcombine.low %v223_v49, %v231_v50 }
  0xda   :  { %495 = vmatprep.subr.bf16.mxu0 %v4087_v22  ;;  %536 = vmatprep.subr.bf16.mxu1 %v4089_v23  ;;  %v4109_v48 = vcombine.high %v238_v43, %v246_v44  ;;  %v4108_v54 = vcombine.low %v238_v43, %v246_v44  ;;  %v4097_v56 = vcombine.high %v224_v51, %v232_v52  ;;  %v247_v58 = vld [vmem:[#allocation11 + $0xf0] sm:$0xff]  ;;  %v240_v59 = vld [vmem:[#allocation11 + $0xb8] sm:$0xff]  ;;  %v741_v2 = vld [vmem:[#allocation10] sm:$0xff] }
  0xdb   :  { %v248_v60 = vld [vmem:[#allocation11 + $0xf8] sm:$0xff]  ;;  %v4096_v62 = vcombine.low %v224_v51, %v232_v52  ;;  %v4111_v63 = vcombine.high %v239_v57, %v247_v58  ;;  %v749_v3 = vld [vmem:[#allocation10 + $0x40] sm:$0xff]  ;;  %v742_v4 = vld [vmem:[#allocation10 + $0x8] sm:$0xff]  ;;  %v4110_v6 = vcombine.low %v239_v57, %v247_v58 }
  0xdc   :  { %4114 = vmatmul.mubr.msk.bf16.vlgmr.msra.gmra.mrb[0].mxu0 %vm409_vm0, %v4904_v28  ;;  %4115 = vmatmul.mubr.msk.bf16.vlgmr.msra.gmra.mrb[0].mxu1 %vm409_vm0, %v4904_v28  ;;  %v4113_v0 = vcombine.high %v240_v59, %v248_v60  ;;  %v750_v5 = vld [vmem:[#allocation10 + $0x48] sm:$0xff]  ;;  %v4112_v7 = vcombine.low %v240_v59, %v248_v60  ;;  %v4124_v8 = vcombine.high %v741_v2, %v749_v3  ;;  %v757_v10 = vld [vmem:[#allocation10 + $0x80] sm:$0xff]  ;;  %v743_v34 = vld [vmem:[#allocation10 + $0x10] sm:$0xff] }
  0xdd   :  { %496 = vmatpush1.bf16.msra.mxu0 %v4086_v29  ;;  %537 = vmatpush1.bf16.msra.mxu1 %v4088_v30  ;;  %v4126_v9 = vcombine.high %v742_v4, %v750_v5  ;;  %v765_v11 = vld [vmem:[#allocation10 + $0xc0] sm:$0xff]  ;;  %v758_v12 = vld [vmem:[#allocation10 + $0x88] sm:$0xff]  ;;  %v4123_v14 = vcombine.low %v741_v2, %v749_v3  ;;  %v4125_v15 = vcombine.low %v742_v4, %v750_v5  ;;  %v751_v35 = vld [vmem:[#allocation10 + $0x50] sm:$0xff] }
  0xde   :  { %497 = vmatprep.subr.bf16.mxu0 %v4103_v31  ;;  %538 = vmatprep.subr.bf16.mxu1 %v4105_v32  ;;  %v766_v13 = vld [vmem:[#allocation10 + $0xc8] sm:$0xff]  ;;  %v4140_v16 = vcombine.high %v757_v10, %v765_v11  ;;  %v773_v18 = vld [vmem:[#allocation10 + $0x100] sm:$0xff]  ;;  %v4139_v22 = vcombine.low %v757_v10, %v765_v11  ;;  %v744_v36 = vld [vmem:[#allocation10 + $0x18] sm:$0xff] }
  0xdf   :  { %527 = vmatprep.mubr.bf16.mxu0 %v5861_v1  ;;  %568 = vmatprep.mubr.bf16.mxu1 %v5861_v1  ;;  %v4142_v17 = vcombine.high %v758_v12, %v766_v13  ;;  %v781_v19 = vld [vmem:[#allocation10 + $0x140] sm:$0xff]  ;;  %v774_v20 = vld [vmem:[#allocation10 + $0x108] sm:$0xff]  ;;  %v4141_v23 = vcombine.low %v758_v12, %v766_v13  ;;  %v759_v42 = vld [vmem:[#allocation10 + $0x90] sm:$0xff] }
  0xe0   :  { %v782_v21 = vld [vmem:[#allocation10 + $0x148] sm:$0xff]  ;;  %v4156_v24 = vcombine.high %v773_v18, %v781_v19  ;;  %v789_v26 = vld [vmem:[#allocation10 + $0x180] sm:$0xff]  ;;  %v4155_v31 = vcombine.low %v773_v18, %v781_v19  ;;  %v767_v43 = vld [vmem:[#allocation10 + $0xd0] sm:$0xff] }
  0xe1   :  { %498 = vmatpush1.bf16.msra.mxu0 %v4102_v37  ;;  %539 = vmatpush1.bf16.msra.mxu1 %v4104_v38  ;;  %v4158_v25 = vcombine.high %v774_v20, %v782_v21  ;;  %v797_v27 = vld [vmem:[#allocation10 + $0x1c0] sm:$0xff]  ;;  %v790_v29 = vld [vmem:[#allocation10 + $0x188] sm:$0xff]  ;;  %v752_v37 = vld [vmem:[#allocation10 + $0x58] sm:$0xff]  ;;  %v4144_v49 = vcombine.high %v759_v42, %v767_v43 }
  0xe2   :  { %577 = vmatprep.subr.bf16.mxu0 %v4091_v39  ;;  %618 = vmatprep.subr.bf16.mxu1 %v4093_v40  ;;  %v798_v30 = vld [vmem:[#allocation10 + $0x1c8] sm:$0xff]  ;;  %v4172_v32 = vcombine.high %v789_v26, %v797_v27  ;;  %v4171_v38 = vcombine.low %v789_v26, %v797_v27  ;;  %v4128_v40 = vcombine.high %v743_v34, %v751_v35  ;;  %v4930_v44 = vld [vmem:[#allocation5] sm:$0xff]   ;;  %v745_v4 = vld [vmem:[#allocation10 + $0x20] sm:$0xff] }
  0xe3   :  { %v4174_v33 = vcombine.high %v790_v29, %v798_v30  ;;  %v4173_v39 = vcombine.low %v790_v29, %v798_v30  ;;  %v4130_v41 = vcombine.high %v744_v36, %v752_v37  ;;  %v775_v51 = vld [vmem:[#allocation10 + $0x110] sm:$0xff]  ;;  %v753_v5 = vld [vmem:[#allocation10 + $0x60] sm:$0xff] }
  0xe4   :  { %4116 = vmatmul.mubr.msk.bf16.vlgmr.msra.gmra.mrb[4].mxu0 %vm409_vm0, %v4904_v28  ;;  %4117 = vmatmul.mubr.msk.bf16.vlgmr.msra.gmra.mrb[4].mxu1 %vm409_vm0, %v4904_v28  ;;  %v783_v52 = vld [vmem:[#allocation10 + $0x150] sm:$0xff]  ;;  %v4132_v10 = vcombine.high %v745_v4, %v753_v5  ;;  %v761_v12 = vld [vmem:[#allocation10 + $0xa0] sm:$0xff] }
  0xe5   :  { %578 = vmatpush1.bf16.msra.mxu0 %v4090_v45  ;;  %619 = vmatpush1.bf16.msra.mxu1 %v4092_v46  ;;  %v760_v45 = vld [vmem:[#allocation10 + $0x98] sm:$0xff]  ;;  %v4160_v57 = vcombine.high %v775_v51, %v783_v52  ;;  %v791_v59 = vld [vmem:[#allocation10 + $0x190] sm:$0xff]  ;;  %v769_v13 = vld [vmem:[#allocation10 + $0xe0] sm:$0xff] }
  0xe6   :  { %579 = vmatprep.subr.bf16.mxu0 %v4107_v47  ;;  %620 = vmatprep.subr.bf16.mxu1 %v4109_v48  ;;  %v768_v46 = vld [vmem:[#allocation10 + $0xd8] sm:$0xff]  ;;  %v4127_v47 = vcombine.low %v743_v34, %v751_v35  ;;  %v4129_v48 = vcombine.low %v744_v36, %v752_v37  ;;  %v799_v60 = vld [vmem:[#allocation10 + $0x1d0] sm:$0xff]  ;;  %v4148_v18 = vcombine.high %v761_v12, %v769_v13  ;;  %v793_v29 = vld [vmem:[#allocation10 + $0x1a0] sm:$0xff] }
  0xe7   :  { %609 = vmatprep.mubr.bf16.mxu0 %v5861_v1  ;;  %650 = vmatprep.mubr.bf16.mxu1 %v5861_v1  ;;  %v4146_v50 = vcombine.high %v760_v45, %v768_v46  ;;  %v4176_v2 = vcombine.high %v791_v59, %v799_v60  ;;  %v801_v30 = vld [vmem:[#allocation10 + $0x1e0] sm:$0xff]  ;;  %v747_v36 = vld [vmem:[#allocation10 + $0x30] sm:$0xff] }
  0xe8   :  { %v4180_v34 = vcombine.high %v793_v29, %v801_v30  ;;  %v755_v37 = vld [vmem:[#allocation10 + $0x70] sm:$0xff] }
  0xe9   :  { %580 = vmatpush1.bf16.msra.mxu0 %v4106_v53  ;;  %621 = vmatpush1.bf16.msra.mxu1 %v4108_v54  ;;  %v776_v53 = vld [vmem:[#allocation10 + $0x118] sm:$0xff] }
  0xea   :  { %659 = vmatprep.subr.bf16.mxu0 %v4095_v55  ;;  %700 = vmatprep.subr.bf16.mxu1 %v4097_v56  ;;  %v784_v54 = vld [vmem:[#allocation10 + $0x158] sm:$0xff]  ;;  %v4143_v55 = vcombine.low %v759_v42, %v767_v43  ;;  %v4145_v56 = vcombine.low %v760_v45, %v768_v46  ;;  %v4136_v42 = vcombine.high %v747_v36, %v755_v37  ;;  %v763_v45 = vld [vmem:[#allocation10 + $0xb0] sm:$0xff] }
  0xeb   :  { %v4162_v58 = vcombine.high %v776_v53, %v784_v54  ;;  %v771_v46 = vld [vmem:[#allocation10 + $0xf0] sm:$0xff] }
  0xec   :  { %4118 = vmatmul.mubr.msk.bf16.vlgmr.msra.gmra.mrb[8].mxu0 %vm409_vm0, %v4904_v28  ;;  %4119 = vmatmul.mubr.msk.bf16.vlgmr.msra.gmra.mrb[8].mxu1 %vm409_vm0, %v4904_v28 }
  0xed   :  { %660 = vmatpush1.bf16.msra.mxu0 %v4094_v61  ;;  %701 = vmatpush1.bf16.msra.mxu1 %v4096_v62  ;;  %v792_v61 = vld [vmem:[#allocation10 + $0x198] sm:$0xff] }
  0xee   :  { %661 = vmatprep.subr.bf16.mxu0 %v4111_v63  ;;  %702 = vmatprep.subr.bf16.mxu1 %v4113_v0  ;;  %v800_v62 = vld [vmem:[#allocation10 + $0x1d8] sm:$0xff]  ;;  %v4159_v63 = vcombine.low %v775_v51, %v783_v52  ;;  %v4161_v0 = vcombine.low %v776_v53, %v784_v54  ;;  %v4152_v51 = vcombine.high %v763_v45, %v771_v46  ;;  %v779_v53 = vld [vmem:[#allocation10 + $0x130] sm:$0xff] }
  0xef   :  { %691 = vmatprep.mubr.bf16.mxu0 %v5861_v1  ;;  %732 = vmatprep.mubr.bf16.mxu1 %v5861_v1  ;;  %v4178_v3 = vcombine.high %v792_v61, %v800_v62  ;;  %v787_v54 = vld [vmem:[#allocation10 + $0x170] sm:$0xff] }
  0xf1   :  { %662 = vmatpush1.bf16.msra.mxu0 %v4110_v6  ;;  %703 = vmatpush1.bf16.msra.mxu1 %v4112_v7  ;;  %v746_v6 = vld [vmem:[#allocation10 + $0x28] sm:$0xff] }
  0xf2   :  { %1134 = vmatprep.subr.bf16.mxu0 %v4124_v8  ;;  %1177 = vmatprep.subr.bf16.mxu1 %v4126_v9  ;;  %v754_v7 = vld [vmem:[#allocation10 + $0x68] sm:$0xff]  ;;  %v4175_v8 = vcombine.low %v791_v59, %v799_v60  ;;  %v4177_v9 = vcombine.low %v792_v61, %v800_v62  ;;  %v4168_v59 = vcombine.high %v779_v53, %v787_v54  ;;  %v795_v61 = vld [vmem:[#allocation10 + $0x1b0] sm:$0xff] }
  0xf3   :  { %v4134_v11 = vcombine.high %v746_v6, %v754_v7  ;;  %v803_v62 = vld [vmem:[#allocation10 + $0x1f0] sm:$0xff] }
  0xf4   :  { %4120 = vmatmul.mubr.msk.bf16.vlgmr.msra.gmra.mrb[12].mxu0 %vm409_vm0, %v4904_v28  ;;  %4121 = vmatmul.mubr.msk.bf16.vlgmr.msra.gmra.mrb[12].mxu1 %vm409_vm0, %v4904_v28  ;;  %v4157_v28 = vcombine.low %v774_v20, %v782_v21  ;;  %v777_v20 = vld [vmem:[#allocation10 + $0x120] sm:$0xff] }
  0xf5   :  { %1135 = vmatpush1.bf16.msra.mxu0 %v4123_v14  ;;  %1178 = vmatpush1.bf16.msra.mxu1 %v4125_v15  ;;  %v762_v14 = vld [vmem:[#allocation10 + $0xa8] sm:$0xff]  ;;  %v785_v21 = vld [vmem:[#allocation10 + $0x160] sm:$0xff] }
  0xf6   :  { %1136 = vmatprep.subr.bf16.mxu0 %v4140_v16  ;;  %1179 = vmatprep.subr.bf16.mxu1 %v4142_v17  ;;  %v770_v15 = vld [vmem:[#allocation10 + $0xe8] sm:$0xff]  ;;  %v4131_v16 = vcombine.low %v745_v4, %v753_v5  ;;  %v4133_v17 = vcombine.low %v746_v6, %v754_v7  ;;  %v4164_v26 = vcombine.high %v777_v20, %v785_v21 }
  0xf7   :  { %1166 = vmatprep.mubr.bf16.mxu0 %v5861_v1  ;;  %1209 = vmatprep.mubr.bf16.mxu1 %v5861_v1  ;;  %v4150_v19 = vcombine.high %v762_v14, %v770_v15  ;;  %v4184_v4 = vcombine.high %v795_v61, %v803_v62  ;;  %v4183_v6 = vcombine.low %v795_v61, %v803_v62  ;;  %v5027_v62 = vld [vmem:[#allocation13 + $0x8] sm:$0xff] }
  0xf8   :  { %5922 = vst [vmem:[#allocation52_spill] sm:$0xff] %v5027_v62 }
  0xf9   :  { %1137 = vmatpush1.bf16.msra.mxu0 %v4139_v22  ;;  %1180 = vmatpush1.bf16.msra.mxu1 %v4141_v23  ;;  %v778_v22 = vld [vmem:[#allocation10 + $0x128] sm:$0xff] }
  0xfa   :  { %1138 = vmatprep.subr.bf16.mxu0 %v4156_v24  ;;  %1181 = vmatprep.subr.bf16.mxu1 %v4158_v25  ;;  %v786_v23 = vld [vmem:[#allocation10 + $0x168] sm:$0xff]  ;;  %v4147_v24 = vcombine.low %v761_v12, %v769_v13  ;;  %v4149_v25 = vcombine.low %v762_v14, %v770_v15 }
  0xfb   :  { %v4166_v27 = vcombine.high %v778_v22, %v786_v23 }
  0xfd   :  { %1139 = vmatpush1.bf16.msra.mxu0 %v4155_v31  ;;  %1182 = vmatpush1.bf16.msra.mxu1 %v4157_v28  ;;  %v794_v31 = vld [vmem:[#allocation10 + $0x1a8] sm:$0xff] }
  0xfe   :  { %1140 = vmatprep.subr.bf16.mxu0 %v4172_v32  ;;  %1183 = vmatprep.subr.bf16.mxu1 %v4174_v33  ;;  %v802_v28 = vld [vmem:[#allocation10 + $0x1e8] sm:$0xff]  ;;  %v4163_v32 = vcombine.low %v777_v20, %v785_v21  ;;  %v4165_v33 = vcombine.low %v778_v22, %v786_v23 }
  0xff   :  { %v4182_v35 = vcombine.high %v794_v31, %v802_v28 }
 0x101   :  { %1141 = vmatpush1.bf16.msra.mxu0 %v4171_v38  ;;  %1184 = vmatpush1.bf16.msra.mxu1 %v4173_v39  ;;  %v748_v38 = vld [vmem:[#allocation10 + $0x38] sm:$0xff] }
 0x102   :  { %1220 = vmatprep.subr.bf16.mxu0 %v4128_v40  ;;  %1263 = vmatprep.subr.bf16.mxu1 %v4130_v41  ;;  %v756_v39 = vld [vmem:[#allocation10 + $0x78] sm:$0xff]  ;;  %v4179_v40 = vcombine.low %v793_v29, %v801_v30  ;;  %v4181_v41 = vcombine.low %v794_v31, %v802_v28 }
 0x103   :  { %v4138_v43 = vcombine.high %v748_v38, %v756_v39 }
 0x104   :  { %4187 = vmatmul.mubr.msk.bf16.vlgmr.msra.gmra.mrb[16].mxu0 %vm1130_vm1, %v4930_v44  ;;  %4188 = vmatmul.mubr.msk.bf16.vlgmr.msra.gmra.mrb[16].mxu1 %vm1130_vm1, %v4930_v44 }
 0x105   :  { %1221 = vmatpush1.bf16.msra.mxu0 %v4127_v47  ;;  %1264 = vmatpush1.bf16.msra.mxu1 %v4129_v48  ;;  %v764_v47 = vld [vmem:[#allocation10 + $0xb8] sm:$0xff] }
 0x106   :  { %1222 = vmatprep.subr.bf16.mxu0 %v4144_v49  ;;  %1265 = vmatprep.subr.bf16.mxu1 %v4146_v50  ;;  %v772_v48 = vld [vmem:[#allocation10 + $0xf8] sm:$0xff]  ;;  %v4135_v49 = vcombine.low %v747_v36, %v755_v37  ;;  %v4137_v50 = vcombine.low %v748_v38, %v756_v39 }
 0x107   :  { %1252 = vmatprep.mubr.bf16.mxu0 %v5861_v1  ;;  %1295 = vmatprep.mubr.bf16.mxu1 %v5861_v1  ;;  %v4154_v52 = vcombine.high %v764_v47, %v772_v48 }
 0x109   :  { %1223 = vmatpush1.bf16.msra.mxu0 %v4143_v55  ;;  %1266 = vmatpush1.bf16.msra.mxu1 %v4145_v56  ;;  %v780_v55 = vld [vmem:[#allocation10 + $0x138] sm:$0xff] }
 0x10a   :  { %1224 = vmatprep.subr.bf16.mxu0 %v4160_v57  ;;  %1267 = vmatprep.subr.bf16.mxu1 %v4162_v58  ;;  %v788_v56 = vld [vmem:[#allocation10 + $0x178] sm:$0xff]  ;;  %v4151_v57 = vcombine.low %v763_v45, %v771_v46  ;;  %v4153_v58 = vcombine.low %v764_v47, %v772_v48 }
 0x10b   :  { %v4170_v60 = vcombine.high %v780_v55, %v788_v56 }
 0x10d   :  { %1225 = vmatpush1.bf16.msra.mxu0 %v4159_v63  ;;  %1268 = vmatpush1.bf16.msra.mxu1 %v4161_v0  ;;  %v796_v63 = vld [vmem:[#allocation10 + $0x1b8] sm:$0xff] }
 0x10e   :  { %1226 = vmatprep.subr.bf16.mxu0 %v4176_v2  ;;  %1269 = vmatprep.subr.bf16.mxu1 %v4178_v3  ;;  %v804_v0 = vld [vmem:[#allocation10 + $0x1f8] sm:$0xff]  ;;  %v4167_v2 = vcombine.low %v779_v53, %v787_v54  ;;  %v4169_v3 = vcombine.low %v780_v55, %v788_v56  ;;  %v5006_v53 = vld [vmem:[#allocation16] sm:$0xff] }
 0x10f   :  { %v4186_v5 = vcombine.high %v796_v63, %v804_v0  ;;  %v4185_v7 = vcombine.low %v796_v63, %v804_v0  ;;  %5921 = vst [vmem:[#allocation51_spill] sm:$0xff] %v5006_v53 }
 0x111   :  { %1227 = vmatpush1.bf16.msra.mxu0 %v4175_v8  ;;  %1270 = vmatpush1.bf16.msra.mxu1 %v4177_v9 }
 0x112   :  { %1306 = vmatprep.subr.bf16.mxu0 %v4132_v10  ;;  %1349 = vmatprep.subr.bf16.mxu1 %v4134_v11 }
 0x114   :  { %4189 = vmatmul.mubr.msk.bf16.vlgmr.msra.gmra.mrb[20].mxu0 %vm1130_vm1, %v4930_v44  ;;  %4190 = vmatmul.mubr.msk.bf16.vlgmr.msra.gmra.mrb[20].mxu1 %vm1130_vm1, %v4930_v44 }
 0x115   :  { %1307 = vmatpush1.bf16.msra.mxu0 %v4131_v16  ;;  %1350 = vmatpush1.bf16.msra.mxu1 %v4133_v17 }
 0x116   :  { %1308 = vmatprep.subr.bf16.mxu0 %v4148_v18  ;;  %1351 = vmatprep.subr.bf16.mxu1 %v4150_v19 }
 0x117   :  { %1338 = vmatprep.mubr.bf16.mxu0 %v5861_v1  ;;  %1381 = vmatprep.mubr.bf16.mxu1 %v5861_v1 }
 0x119   :  { %1309 = vmatpush1.bf16.msra.mxu0 %v4147_v24  ;;  %1352 = vmatpush1.bf16.msra.mxu1 %v4149_v25 }
 0x11a   :  { %1310 = vmatprep.subr.bf16.mxu0 %v4164_v26  ;;  %1353 = vmatprep.subr.bf16.mxu1 %v4166_v27 }
 0x11d   :  { %1311 = vmatpush1.bf16.msra.mxu0 %v4163_v32  ;;  %1354 = vmatpush1.bf16.msra.mxu1 %v4165_v33 }
 0x11e   :  { %1312 = vmatprep.subr.bf16.mxu0 %v4180_v34  ;;  %1355 = vmatprep.subr.bf16.mxu1 %v4182_v35  ;;  %v5860_v34 = vlaneseq }
 0x121   :  { %1313 = vmatpush1.bf16.msra.mxu0 %v4179_v40  ;;  %1356 = vmatpush1.bf16.msra.mxu1 %v4181_v41  ;;  %v1483_v40 = vshrl.u32 %v5860_v34, 7 }
 0x122   :  { %1392 = vmatprep.subr.bf16.mxu0 %v4136_v42  ;;  %1435 = vmatprep.subr.bf16.mxu1 %v4138_v43  ;;  %v1478_v42 = vld [vmem:[#allocation13] sm:$0xff] }
 0x123   :  { %v4987_v41 = vsub.s32 0, %v1483_v40  ;;  %v4989_v43 = vsub.s32 2, %v1483_v40  ;;  %v4991_v45 = vsub.s32 1, %v1483_v40  ;;  %v4993_v46 = vsub.s32 3, %v1483_v40 }
 0x124   :  { %4191 = vmatmul.mubr.msk.bf16.vlgmr.msra.gmra.mrb[24].mxu0 %vm1130_vm1, %v4930_v44  ;;  %4192 = vmatmul.mubr.msk.bf16.vlgmr.msra.gmra.mrb[24].mxu1 %vm1130_vm1, %v4930_v44  ;;  %v4995_v47 = vsub.s32 4, %v1483_v40  ;;  %v4997_v48 = vsub.s32 6, %v1483_v40 }
 0x125   :  { %1393 = vmatpush1.bf16.msra.mxu0 %v4135_v49  ;;  %1436 = vmatpush1.bf16.msra.mxu1 %v4137_v50  ;;  %5912 = vst [vmem:[#allocation42_spill] sm:$0xff] %v4987_v41  ;;  %5913 = vst [vmem:[#allocation43_spill] sm:$0xff] %v4989_v43  ;;  %v4999_v49 = vsub.s32 5, %v1483_v40  ;;  %v5001_v50 = vsub.s32 7, %v1483_v40  ;;  %v1493_v54 = vrot.slane %v1478_v42, %v4989_v43 }
 0x126   :  { %1394 = vmatprep.subr.bf16.mxu0 %v4152_v51  ;;  %1437 = vmatprep.subr.bf16.mxu1 %v4154_v52  ;;  %5914 = vst [vmem:[#allocation44_spill] sm:$0xff] %v4991_v45  ;;  %5915 = vst [vmem:[#allocation45_spill] sm:$0xff] %v4993_v46  ;;  %v5003_v51 = vld [vmem:[#allocation14] sm:$0xff]  ;;  %v1485_v52 = vrot.slane %v1478_v42, %v4987_v41  ;;  %v1489_v55 = vrot.slane %v1478_v42, %v4991_v45 }
 0x127   :  { %1424 = vmatprep.mubr.bf16.mxu0 %v5861_v1  ;;  %1467 = vmatprep.mubr.bf16.mxu1 %v5861_v1  ;;  %5916 = vst [vmem:[#allocation46_spill] sm:$0xff] %v4995_v47  ;;  %5917 = vst [vmem:[#allocation47_spill] sm:$0xff] %v4997_v48  ;;  %v1497_v56 = vrot.slane %v1478_v42, %v4993_v46  ;;  %v5025_v61 = vrot.slane %v1478_v42, %v5001_v50 }
 0x128   :  { %5918 = vst [vmem:[#allocation48_spill] sm:$0xff] %v4999_v49  ;;  %5919 = vst [vmem:[#allocation49_spill] sm:$0xff] %v5001_v50  ;;  %v5031_v0 = vrot.slane %v5006_v53, %v4987_v41 }
 0x129   :  { %1395 = vmatpush1.bf16.msra.mxu0 %v4151_v57  ;;  %1438 = vmatpush1.bf16.msra.mxu1 %v4153_v58  ;;  %5920 = vst [vmem:[#allocation50_spill] sm:$0xff] %v5003_v51  ;;  %v5012_v57 = vrot.slane %v1478_v42, %v4995_v47  ;;  %v5016_v58 = vrot.slane %v5003_v51, %v4987_v41 }
 0x12a   :  { %1396 = vmatprep.subr.bf16.mxu0 %v4168_v59  ;;  %1439 = vmatprep.subr.bf16.mxu1 %v4170_v60  ;;  %v5019_v59 = vrot.slane %v1478_v42, %v4997_v48  ;;  %v5022_v60 = vrot.slane %v1478_v42, %v4999_v49 }
 0x12d   :  { %1397 = vmatpush1.bf16.msra.mxu0 %v4167_v2  ;;  %1440 = vmatpush1.bf16.msra.mxu1 %v4169_v3  ;;  %v5035_v2 = vrot.slane %v5003_v51, %v4989_v43  ;;  %v5039_v3 = vrot.slane %v5006_v53, %v4989_v43 }
 0x12e   :  { %1398 = vmatprep.subr.bf16.mxu0 %v4184_v4  ;;  %1441 = vmatprep.subr.bf16.mxu1 %v4186_v5  ;;  %v5043_v4 = vrot.slane %v5003_v51, %v4991_v45 }
 0x131   :  { %1399 = vmatpush1.bf16.msra.mxu0 %v4183_v6  ;;  %1442 = vmatpush1.bf16.msra.mxu1 %v4185_v7 }
 0x134   :  { %4193 = vmatmul.mubr.msk.bf16.vlgmr.msra.gmra.mrb[28].mxu0 %vm1130_vm1, %v4930_v44  ;;  %4194 = vmatmul.mubr.msk.bf16.vlgmr.msra.gmra.mrb[28].mxu1 %vm1130_vm1, %v4930_v44 }
 0x1af   :  { %v4954_v8 = vpop.f32.mrb[0].mxu0  ;;  %v4956_v9 = vpop.f32.mrb[0].mxu1 }
 0x1b0   :  { %v4958_v10 = vpop.f32.mrb[1].mxu0  ;;  %v4960_v11 = vpop.f32.mrb[1].mxu1 }
 0x1b1   :  { %v451_v12 = vpop.f32.mrb[2].mxu0  ;;  %v492_v13 = vpop.f32.mrb[2].mxu1 }
 0x1b2   :  { %v452_v14 = vpop.f32.mrb[3].mxu0  ;;  %v493_v15 = vpop.f32.mrb[3].mxu1  ;;  %v5048_v12 = vrot.slane %v5006_v53, %v4991_v45  ;;  %v5052_v13 = vrot.slane %v5003_v51, %v4993_v46 }
 0x1b3   :  { %v5056_v14 = vrot.slane %v5006_v53, %v4993_v46 }
 0x1b7   :  { %v4962_v16 = vpop.f32.mrb[4].mxu0  ;;  %v4964_v17 = vpop.f32.mrb[4].mxu1 }
 0x1b8   :  { %v4966_v18 = vpop.f32.mrb[5].mxu0  ;;  %v4968_v19 = vpop.f32.mrb[5].mxu1 }
 0x1b9   :  { %v533_v44 = vpop.f32.mrb[6].mxu0  ;;  %v574_v20 = vpop.f32.mrb[6].mxu1 }
 0x1ba   :  { %v534_v21 = vpop.f32.mrb[7].mxu0  ;;  %v575_v22 = vpop.f32.mrb[7].mxu1 }
 0x1bb   :  { %v5062_v22 = vrot.slane %v5027_v62, %v4987_v41 }
 0x1bd   :  { %5923 = vst [vmem:[#allocation53_spill] sm:$0xff] %v5062_v22 }
 0x1bf   :  { %v4970_v23 = vpop.f32.mrb[8].mxu0  ;;  %v4972_v24 = vpop.f32.mrb[8].mxu1 }
 0x1c0   :  { %5904 = vst [vmem:[#allocation34_spill] sm:$0xff] %v4970_v23  ;;  %5905 = vst [vmem:[#allocation35_spill] sm:$0xff] %v4972_v24  ;;  %v4974_v25 = vpop.f32.mrb[9].mxu0  ;;  %v4976_v26 = vpop.f32.mrb[9].mxu1 }
 0x1c1   :  { %5906 = vst [vmem:[#allocation36_spill] sm:$0xff] %v4974_v25  ;;  %5907 = vst [vmem:[#allocation37_spill] sm:$0xff] %v4976_v26  ;;  %v615_v27 = vpop.f32.mrb[10].mxu0  ;;  %v656_v29 = vpop.f32.mrb[10].mxu1 }
 0x1c2   :  { %v616_v30 = vpop.f32.mrb[11].mxu0  ;;  %v657_v31 = vpop.f32.mrb[11].mxu1  ;;  %v5066_v27 = vrot.slane %v5027_v62, %v4989_v43 }
 0x1c4   :  { %5924 = vst [vmem:[#allocation54_spill] sm:$0xff] %v5066_v27 }
 0x1c7   :  { %v4978_v28 = vpop.f32.mrb[12].mxu0  ;;  %v4980_v32 = vpop.f32.mrb[12].mxu1 }
 0x1c8   :  { %5908 = vst [vmem:[#allocation38_spill] sm:$0xff] %v4978_v28  ;;  %5909 = vst [vmem:[#allocation39_spill] sm:$0xff] %v4980_v32  ;;  %v4982_v33 = vpop.f32.mrb[13].mxu0  ;;  %v4984_v35 = vpop.f32.mrb[13].mxu1 }
 0x1c9   :  { %5910 = vst [vmem:[#allocation40_spill] sm:$0xff] %v4982_v33  ;;  %5911 = vst [vmem:[#allocation41_spill] sm:$0xff] %v4984_v35  ;;  %v697_v36 = vpop.f32.mrb[14].mxu0  ;;  %v738_v37 = vpop.f32.mrb[14].mxu1 }
 0x1ca   :  { %v698_v38 = vpop.f32.mrb[15].mxu0  ;;  %v739_v39 = vpop.f32.mrb[15].mxu1 }
 0x1cb   :  { %v5074_v38 = vrot.slane %v5027_v62, %v4991_v45 }
 0x1cd   :  { %5925 = vst [vmem:[#allocation55_spill] sm:$0xff] %v5074_v38 }
 0x1d7   :  { %v1168_v63 = vpop.f32.mrb[16].mxu0  ;;  %v1211_v6 = vpop.f32.mrb[16].mxu1 }
 0x1d8   :  { %v1169_v5 = vadd.f32 %v1168_v63, %v4954_v8  ;;  %v1170_v7 = vpop.f32.mrb[17].mxu0  ;;  %v1212_v15 = vadd.f32 %v1211_v6, %v4956_v9  ;;  %v1213_v20 = vpop.f32.mrb[17].mxu1 }
 0x1d9   :  { %v1171_v44 = vadd.f32 %v1170_v7, %v4958_v10  ;;  %v1172_v21 = vpop.f32.mrb[18].mxu0  ;;  %v1214_v30 = vadd.f32 %v1213_v20, %v4960_v11  ;;  %v1215_v36 = vpop.f32.mrb[18].mxu1 }
 0x1da   :  { %v5068_v29 = vadd.f32 %v1485_v52, %v1169_v5  ;;  %v1173_v31 = vadd.f32 %v1172_v21, %v4954_v8  ;;  %v1174_v37 = vpop.f32.mrb[19].mxu0  ;;  %v5076_v39 = vadd.f32 %v1493_v54, %v1212_v15  ;;  %v1216_v42 = vadd.f32 %v1215_v36, %v4956_v9  ;;  %v1217_v5 = vpop.f32.mrb[19].mxu1 }
 0x1db   :  { %v5078_v40 = vadd.f32 %v1489_v55, %v1171_v44  ;;  %v1175_v63 = vadd.f32 %v1174_v37, %v4958_v10  ;;  %v5083_v7 = vadd.f32 %v1497_v56, %v1214_v30  ;;  %v1218_v20 = vadd.f32 %v1217_v5, %v4960_v11 }
 0x1dc   :  { %v1598_v6 = vrot.slane %v5068_v29, 4  ;;  %v5085_v8 = vadd.f32 %v1485_v52, %v1173_v31  ;;  %v1610_v21 = vrot.slane %v5076_v39, 4  ;;  %v5090_v34 = vadd.f32 %v1493_v54, %v1216_v42 }
 0x1dd   :  { %v1604_v15 = vrot.slane %v5078_v40, 4  ;;  %v5092_v44 = vadd.f32 %v1489_v55, %v1175_v63  ;;  %v1616_v10 = vrot.slane %v5083_v7, 4  ;;  %v5097_v30 = vadd.f32 %v1497_v56, %v1218_v20 }
 0x1de   :  { %v1599_v9 = vadd.f32 %v1598_v6, %v5068_v29  ;;  %v2115_v36 = vrot.slane %v5085_v8, 4  ;;  %v1611_v52 = vadd.f32 %v1610_v21, %v5076_v39  ;;  %v2127_v31 = vrot.slane %v5090_v34, 4 }
 0x1df   :  { %v1605_v11 = vadd.f32 %v1604_v15, %v5078_v40  ;;  %v2121_v37 = vrot.slane %v5092_v44, 4  ;;  %v1617_v55 = vadd.f32 %v1616_v10, %v5083_v7  ;;  %v2133_v63 = vrot.slane %v5097_v30, 4 }
 0x1e0   :  { %v1600_v54 = vrot.slane %v1599_v9, 2  ;;  %v2116_v42 = vadd.f32 %v2115_v36, %v5085_v8  ;;  %v1612_v5 = vrot.slane %v1611_v52, 2  ;;  %v2128_v56 = vadd.f32 %v2127_v31, %v5090_v34 }
 0x1e1   :  { %v1606_v6 = vrot.slane %v1605_v11, 2  ;;  %v2122_v20 = vadd.f32 %v2121_v37, %v5092_v44  ;;  %v1618_v1 = vrot.slane %v1617_v55, 2  ;;  %v2134_v35 = vadd.f32 %v2133_v63, %v5097_v30 }
 0x1e2   :  { %v1601_v21 = vadd.f32 %v1600_v54, %v1599_v9  ;;  %v2117_v15 = vrot.slane %v2116_v42, 2  ;;  %v1613_v45 = vadd.f32 %v1612_v5, %v1611_v52  ;;  %v2129_v43 = vrot.slane %v2128_v56, 2 }
 0x1e3   :  { %v1607_v33 = vadd.f32 %v1606_v6, %v1605_v11  ;;  %v2123_v41 = vrot.slane %v2122_v20, 2  ;;  %v1619_v32 = vadd.f32 %v1618_v1, %v1617_v55  ;;  %v2135_v28 = vrot.slane %v2134_v35, 2 }
 0x1e4   :  { %v1602_v10 = vrot.slane %v1601_v21, 1  ;;  %v2118_v36 = vadd.f32 %v2117_v15, %v2116_v42  ;;  %v1614_v26 = vrot.slane %v1613_v45, 1  ;;  %v2130_v46 = vadd.f32 %v2129_v43, %v2128_v56 }
 0x1e5   :  { %v1608_v62 = vrot.slane %v1607_v33, 1  ;;  %v2124_v50 = vadd.f32 %v2123_v41, %v2122_v20  ;;  %v1620_v49 = vrot.slane %v1619_v32, 1  ;;  %v2136_v9 = vadd.f32 %v2135_v28, %v2134_v35 }
 0x1e6   :  { %v1603_v31 = vadd.f32 %v1602_v10, %v1601_v21  ;;  %v2119_v37 = vrot.slane %v2118_v36, 1  ;;  %v1615_v54 = vadd.f32 %v1614_v26, %v1613_v45  ;;  %v2131_v25 = vrot.slane %v2130_v46, 1 }
 0x1e7   :  { %v1609_v38 = vadd.f32 %v1608_v62, %v1607_v33  ;;  %v2125_v63 = vrot.slane %v2124_v50, 1  ;;  %v5109_v52 = vpop.f32.mrb[20].mxu0  ;;  %v1621_v5 = vadd.f32 %v1620_v49, %v1619_v32  ;;  %v2137_v1 = vrot.slane %v2136_v9, 1  ;;  %v5111_v55 = vpop.f32.mrb[20].mxu1 }
 0x1e8   :  { %v1695_v11 = vmul.f32 0.125, %v1603_v31  ;;  %v2120_v6 = vadd.f32 %v2119_v37, %v2118_v36  ;;  %v5113_v42 = vpop.f32.mrb[21].mxu0  ;;  %v1697_v43 = vmul.f32 0.125, %v1615_v54  ;;  %v2132_v56 = vadd.f32 %v2131_v25, %v2130_v46  ;;  %v5115_v21 = vpop.f32.mrb[21].mxu1 }
 0x1e9   :  { %v1696_v41 = vmul.f32 0.125, %v1609_v38  ;;  %v2126_v20 = vadd.f32 %v2125_v63, %v2124_v50  ;;  %v5117_v26 = vpop.f32.mrb[22].mxu0  ;;  %v1698_v33 = vmul.f32 0.125, %v1621_v5  ;;  %v2138_v32 = vadd.f32 %v2137_v1, %v2136_v9  ;;  %v5122_v45 = vpop.f32.mrb[22].mxu1 }
 0x1ea   :  { %v5120_v28 = vsub.f32 %v5068_v29, %v1695_v11  ;;  %v2211_v35 = vmul.f32 0.125, %v2120_v6  ;;  %v5124_v49 = vpop.f32.mrb[23].mxu0  ;;  %v5127_v62 = vsub.f32 %v5076_v39, %v1697_v43  ;;  %v2213_v46 = vmul.f32 0.125, %v2132_v56  ;;  %v5132_v38 = vpop.f32.mrb[23].mxu1 }
 0x1eb   :  { %v5130_v25 = vsub.f32 %v5078_v40, %v1696_v41  ;;  %v2212_v50 = vmul.f32 0.125, %v2126_v20  ;;  %v5137_v15 = vsub.f32 %v5083_v7, %v1698_v33  ;;  %v2214_v36 = vmul.f32 0.125, %v2138_v32 }
 0x1ec   :  { %v1727_v29 = vmul.f32 %v5120_v28, %v5120_v28  ;;  %v5140_v10 = vsub.f32 %v5085_v8, %v2211_v35  ;;  %v1729_v39 = vmul.f32 %v5127_v62, %v5127_v62  ;;  %v5147_v31 = vsub.f32 %v5090_v34, %v2213_v46 }
 0x1ed   :  { %v1728_v40 = vmul.f32 %v5130_v25, %v5130_v25  ;;  %v5150_v37 = vsub.f32 %v5092_v44, %v2212_v50  ;;  %v1730_v7 = vmul.f32 %v5137_v15, %v5137_v15  ;;  %v5157_v54 = vsub.f32 %v5097_v30, %v2214_v36 }
 0x1ee   :  { %v1743_v9 = vrot.slane %v1727_v29, 4  ;;  %v2243_v8 = vmul.f32 %v5140_v10, %v5140_v10  ;;  %v1755_v63 = vrot.slane %v1729_v39, 4  ;;  %v2245_v5 = vmul.f32 %v5147_v31, %v5147_v31 }
 0x1ef   :  { %5926 = vst [vmem:[#allocation56_spill] sm:$0xff] %v5157_v54  ;;  %v1749_v11 = vrot.slane %v1728_v40, 4  ;;  %v2244_v34 = vmul.f32 %v5150_v37, %v5150_v37  ;;  %v1761_v6 = vrot.slane %v1730_v7, 4  ;;  %v2246_v43 = vmul.f32 %v5157_v54, %v5157_v54 }
 0x1f0   :  { %v1744_v44 = vadd.f32 %v1743_v9, %v1727_v29  ;;  %v2259_v1 = vrot.slane %v2243_v8, 4  ;;  %v1756_v41 = vadd.f32 %v1755_v63, %v1729_v39  ;;  %v2271_v20 = vrot.slane %v2245_v5, 4 }
 0x1f1   :  { %v1750_v56 = vadd.f32 %v1749_v11, %v1728_v40  ;;  %v2265_v33 = vrot.slane %v2244_v34, 4  ;;  %v1762_v35 = vadd.f32 %v1761_v6, %v1730_v7  ;;  %v2277_v46 = vrot.slane %v2246_v43, 4 }
 0x1f2   :  { %v1745_v30 = vrot.slane %v1744_v44, 2  ;;  %v2260_v32 = vadd.f32 %v2259_v1, %v2243_v8  ;;  %v1757_v50 = vrot.slane %v1756_v41, 2  ;;  %v2272_v27 = vadd.f32 %v2271_v20, %v2245_v5 }
 0x1f3   :  { %v1751_v36 = vrot.slane %v1750_v56, 2  ;;  %v2266_v53 = vadd.f32 %v2265_v33, %v2244_v34  ;;  %v1763_v48 = vrot.slane %v1762_v35, 2  ;;  %v2278_v9 = vadd.f32 %v2277_v46, %v2246_v43 }
 0x1f4   :  { %v1746_v24 = vadd.f32 %v1745_v30, %v1744_v44  ;;  %v2261_v29 = vrot.slane %v2260_v32, 2  ;;  %v1758_v22 = vadd.f32 %v1757_v50, %v1756_v41  ;;  %v2273_v47 = vrot.slane %v2272_v27, 2 }
 0x1f5   :  { %v1752_v51 = vadd.f32 %v1751_v36, %v1750_v56  ;;  %v2267_v23 = vrot.slane %v2266_v53, 2  ;;  %v1764_v40 = vadd.f32 %v1763_v48, %v1762_v35  ;;  %v2279_v11 = vrot.slane %v2278_v9, 2 }
 0x1f6   :  { %v1747_v39 = vrot.slane %v1746_v24, 1  ;;  %v2262_v63 = vadd.f32 %v2261_v29, %v2260_v32  ;;  %v1759_v54 = vrot.slane %v1758_v22, 1  ;;  %v2274_v8 = vadd.f32 %v2273_v47, %v2272_v27 }
 0x1f7   :  { %v1753_v7 = vrot.slane %v1752_v51, 1  ;;  %v2268_v6 = vadd.f32 %v2267_v23, %v2266_v53  ;;  %v5165_v1 = vpop.f32.mrb[24].mxu0  ;;  %v1765_v34 = vrot.slane %v1764_v40, 1  ;;  %v2280_v20 = vadd.f32 %v2279_v11, %v2278_v9  ;;  %v5167_v33 = vpop.f32.mrb[24].mxu1 }
 0x1f8   :  { %v1748_v5 = vadd.f32 %v1747_v39, %v1746_v24  ;;  %v2263_v44 = vrot.slane %v2262_v63, 1  ;;  %v5169_v43 = vpop.f32.mrb[25].mxu0  ;;  %v1760_v41 = vadd.f32 %v1759_v54, %v1758_v22  ;;  %v2275_v30 = vrot.slane %v2274_v8, 1  ;;  %v5171_v35 = vpop.f32.mrb[25].mxu1 }
 0x1f9   :  { %v1754_v56 = vadd.f32 %v1753_v7, %v1752_v51  ;;  %v2269_v48 = vrot.slane %v2268_v6, 1  ;;  %v5173_v32 = vpop.f32.mrb[26].mxu0  ;;  %v1766_v23 = vadd.f32 %v1765_v34, %v1764_v40  ;;  %v2281_v27 = vrot.slane %v2280_v20, 1  ;;  %v5175_v24 = vpop.f32.mrb[26].mxu1 }
 0x1fa   :  { %5927 = vst [vmem:[#allocation57_spill] sm:$0xff] %v5173_v32  ;;  %v1839_v47 = vmul.f32 0.125, %v1748_v5  ;;  %v2264_v53 = vadd.f32 %v2263_v44, %v2262_v63  ;;  %v5177_v46 = vpop.f32.mrb[27].mxu0  ;;  %v1841_v50 = vmul.f32 0.125, %v1760_v41  ;;  %v2276_v29 = vadd.f32 %v2275_v30, %v2274_v8  ;;  %v5179_v22 = vpop.f32.mrb[27].mxu1 }
 0x1fb   :  { %5928 = vst [vmem:[#allocation58_spill] sm:$0xff] %v5177_v46  ;;  %v1840_v36 = vmul.f32 0.125, %v1754_v56  ;;  %v2270_v9 = vadd.f32 %v2269_v48, %v2268_v6  ;;  %v1842_v54 = vmul.f32 0.125, %v1766_v23  ;;  %v2282_v11 = vadd.f32 %v2281_v27, %v2280_v20 }
 0x1fc   :  { %v1855_v51 = vadd.f32 1e-05, %v1839_v47  ;;  %v2355_v39 = vmul.f32 0.125, %v2264_v53  ;;  %v1857_v7 = vadd.f32 1e-05, %v1841_v50  ;;  %v2357_v5 = vmul.f32 0.125, %v2276_v29 }
 0x1fd   :  { %v1856_v32 = vadd.f32 1e-05, %v1840_v36  ;;  %v2356_v40 = vmul.f32 0.125, %v2270_v9  ;;  %v1858_v63 = vadd.f32 1e-05, %v1842_v54  ;;  %v2358_v44 = vmul.f32 0.125, %v2282_v11 }
 0x1fe   :  { %4285 = vrsqrt.f32 %v1855_v51  ;;  %v2371_v34 = vadd.f32 1e-05, %v2355_v39  ;;  %v2373_v46 = vadd.f32 1e-05, %v2357_v5  ;;  %v1255_v8 = vadd.f32 %v5109_v52, %v4962_v16 }
 0x1ff   :  { %4287 = vrsqrt.f32 %v1857_v7  ;;  %v2372_v41 = vadd.f32 1e-05, %v2356_v40  ;;  %v2374_v6 = vadd.f32 1e-05, %v2358_v44  ;;  %v1298_v56 = vadd.f32 %v5111_v55, %v4964_v17 }
 0x200   :  { %4289 = vrsqrt.f32 %v1856_v32  ;;  %v1257_v20 = vadd.f32 %v5113_v42, %v4966_v18  ;;  %v5188_v30 = vadd.f32 %v5012_v57, %v1255_v8  ;;  %v1300_v48 = vadd.f32 %v5115_v21, %v4968_v19 }
 0x201   :  { %4291 = vrsqrt.f32 %v1858_v63  ;;  %v1259_v47 = vadd.f32 %v5117_v26, %v4962_v16  ;;  %v5195_v52 = vadd.f32 %v5019_v59, %v1298_v56  ;;  %v1302_v55 = vadd.f32 %v5122_v45, %v4964_v17 }
 0x202   :  { %4293 = vrsqrt.f32 %v2371_v34  ;;  %v5198_v32 = vadd.f32 %v5022_v60, %v1257_v20  ;;  %v1622_v42 = vrot.slane %v5188_v30, 4  ;;  %v5204_v23 = vadd.f32 %v5025_v61, %v1300_v48 }
 0x203   :  { %4295 = vrsqrt.f32 %v2373_v46  ;;  %v5207_v21 = vadd.f32 %v5012_v57, %v1259_v47  ;;  %v1634_v16 = vrot.slane %v5195_v52, 4  ;;  %v5212_v53 = vadd.f32 %v5019_v59, %v1302_v55 }
 0x204   :  { %4297 = vrsqrt.f32 %v2372_v41  ;;  %v1628_v26 = vrot.slane %v5198_v32, 4  ;;  %v1623_v17 = vadd.f32 %v1622_v42, %v5188_v30  ;;  %v1640_v45 = vrot.slane %v5204_v23, 4 }
 0x205   :  { %4299 = vrsqrt.f32 %v2374_v6  ;;  %v2139_v27 = vrot.slane %v5207_v21, 4  ;;  %v1635_v46 = vadd.f32 %v1634_v16, %v5195_v52  ;;  %v2151_v50 = vrot.slane %v5212_v53, 4 }
 0x206   :  { %v1629_v57 = vadd.f32 %v1628_v26, %v5198_v32  ;;  %v1261_v36 = vadd.f32 %v5124_v49, %v4966_v18  ;;  %v1624_v29 = vrot.slane %v1623_v17, 2  ;;  %v1641_v59 = vadd.f32 %v1640_v45, %v5204_v23 }
 0x207   :  { %v5224_v9 = vadd.f32 %v2139_v27, %v5207_v21  ;;  %v5228_v51 = vadd.f32 %v5132_v38, %v4968_v19  ;;  %v5230_v54 = vpop.f32.mrb[28].mxu0  ;;  %v1636_v11 = vrot.slane %v1635_v46, 2  ;;  %v5233_v5 = vadd.f32 %v2151_v50, %v5212_v53  ;;  %v5238_v49 = vpop.f32.mrb[28].mxu1 }
 0x208   :  { %v4286_v39 = vpop.eup %4285  ;;  %v1630_v7 = vrot.slane %v1629_v57, 2  ;;  %v5236_v18 = vadd.f32 %v5022_v60, %v1261_v36  ;;  %v5240_v40 = vpop.f32.mrb[29].mxu0  ;;  %v1625_v19 = vadd.f32 %v1624_v29, %v1623_v17  ;;  %v1642_v38 = vrot.slane %v1641_v59, 2 }
 0x209   :  { %v4288_v63 = vpop.eup %4287  ;;  %v1887_v34 = vmul.f32 %v4286_v39, %v5120_v28  ;;  %v2141_v44 = vrot.slane %v5224_v9, 2  ;;  %v5244_v41 = vpop.f32.mrb[29].mxu1  ;;  %v1637_v60 = vadd.f32 %v1636_v11, %v1635_v46  ;;  %v2153_v48 = vrot.slane %v5233_v5, 2 }
 0x20a   :  { %v5246_v8 = vpop.f32.mrb[30].mxu0  ;;  %v4290_v6 = vpop.eup %4289  ;;  %v1889_v56 = vmul.f32 %v4288_v63, %v5127_v62  ;;  %v1631_v20 = vadd.f32 %v1630_v7, %v1629_v57  ;;  %v1626_v26 = vrot.slane %v1625_v19, 1  ;;  %v1643_v17 = vadd.f32 %v1642_v38, %v1641_v59 }
 0x20b   :  { %v5250_v47 = vpop.f32.mrb[30].mxu1  ;;  %v5252_v55 = vpop.f32.mrb[31].mxu0  ;;  %v1985_v42 = vmul.f32 %v5016_v58, %v1887_v34  ;;  %v1888_v16 = vmul.f32 %v4290_v6, %v5130_v25  ;;  %v1638_v57 = vrot.slane %v1637_v60, 1 }
 0x20c   :  { %v4292_v28 = vpop.eup %4291  ;;  %v5256_v45 = vpop.f32.mrb[31].mxu1  ;;  %v1987_v62 = vmul.f32 %v5035_v2, %v1889_v56  ;;  %v1632_v50 = vrot.slane %v1631_v20, 1  ;;  %v1627_v7 = vadd.f32 %v1626_v26, %v1625_v19  ;;  %v5929_v26 = vld [vmem:[#allocation56_spill] sm:$0xff] }
 0x20d   :  { %v4294_v27 = vpop.eup %4293  ;;  %v1890_v46 = vmul.f32 %v4292_v28, %v5137_v15  ;;  %v2083_v29 = vadd.f32 %v5031_v0, %v1985_v42  ;;  %v1986_v39 = vmul.f32 %v5043_v4, %v1888_v16  ;;  %v1639_v38 = vadd.f32 %v1638_v57, %v1637_v60 }
 0x20e   :  { %v4296_v36 = vpop.eup %4295  ;;  %v2403_v11 = vmul.f32 %v4294_v27, %v5140_v10  ;;  %v2085_v59 = vadd.f32 %v5039_v3, %v1987_v62  ;;  %v1699_v60 = vmul.f32 0.125, %v1627_v7 }
 0x20f   :  { %v4298_v25 = vpop.eup %4297  ;;  %v1988_v63 = vmul.f32 %v5052_v13, %v1890_v46  ;;  %v2405_v34 = vmul.f32 %v4296_v36, %v5147_v31  ;;  %v2099_v15 = vmax.f32 %v2083_v29, 0.0  ;;  %v2084_v56 = vadd.f32 %v5048_v12, %v1986_v39 }
 0x210   :  { %v4300_v6 = vpop.eup %4299  ;;  %v2419_v28 = vmul.f32 %v2403_v11, %v5016_v58  ;;  %v2404_v42 = vmul.f32 %v4298_v25, %v5150_v37  ;;  %v2101_v16 = vmax.f32 %v2085_v59, 0.0  ;;  %v1701_v29 = vmul.f32 0.125, %v1639_v38 }
 0x211   :  { %v2086_v10 = vadd.f32 %v5056_v14, %v1988_v63  ;;  %v2421_v19 = vmul.f32 %v2405_v34, %v5035_v2  ;;  %v2406_v27 = vmul.f32 %v4300_v6, %v5929_v26  ;;  %v2100_v62 = vmax.f32 %v2084_v56, 0.0 }
 0x212   :  { %v2435_v46 = vadd.f32 %v2419_v28, %v5031_v0  ;;  %v2420_v31 = vmul.f32 %v2404_v42, %v5043_v4  ;;  %v5278_v11 = vsub.f32 %v5188_v30, %v1699_v60  ;;  %v1633_v2 = vadd.f32 %v1632_v50, %v1631_v20 }
 0x213   :  { %v2102_v57 = vmax.f32 %v2086_v10, 0.0  ;;  %v2437_v36 = vadd.f32 %v2421_v19, %v5039_v3  ;;  %v2422_v58 = vmul.f32 %v2406_v27, %v5052_v13  ;;  %v5282_v0 = vsub.f32 %v5195_v52, %v1701_v29 }
 0x214   :  { %v2451_v37 = vmax.f32 %v2435_v46, 0.0  ;;  %v2436_v39 = vadd.f32 %v2420_v31, %v5048_v12  ;;  %v1644_v4 = vrot.slane %v1643_v17, 1  ;;  %v1731_v13 = vmul.f32 %v5278_v11, %v5278_v11 }
 0x215   :  { %v2453_v25 = vmax.f32 %v2437_v36, 0.0  ;;  %v2438_v59 = vadd.f32 %v2422_v58, %v5056_v14  ;;  %v1700_v63 = vmul.f32 0.125, %v1633_v2  ;;  %v1733_v30 = vmul.f32 %v5282_v0, %v5282_v0 }
 0x216   :  { %v5284_v7 = vpack.c.bf16 %v2451_v37, %v2099_v15  ;;  %v2452_v3 = vmax.f32 %v2436_v39, 0.0  ;;  %v1645_v20 = vadd.f32 %v1644_v4, %v1643_v17  ;;  %v1767_v14 = vrot.slane %v1731_v13, 4 }
 0x217   :  { %v5288_v34 = vpack.c.bf16 %v2453_v25, %v2101_v16  ;;  %v2454_v12 = vmax.f32 %v2438_v59, 0.0  ;;  %v5295_v52 = vsub.f32 %v5198_v32, %v1700_v63  ;;  %v2142_v38 = vadd.f32 %v2141_v44, %v5224_v9 }
 0x218   :  { %v5292_v50 = vpack.c.bf16 %v2452_v3, %v2100_v62  ;;  %v1779_v15 = vrot.slane %v1733_v30, 4  ;;  %v1702_v56 = vmul.f32 0.125, %v1645_v20  ;;  %v2154_v28 = vadd.f32 %v2153_v48, %v5233_v5 }
 0x219   :  { %v5300_v6 = vpack.c.bf16 %v2454_v12, %v2102_v57  ;;  %v1768_v42 = vadd.f32 %v1767_v14, %v1731_v13  ;;  %v1732_v17 = vmul.f32 %v5295_v52, %v5295_v52  ;;  %v2143_v16 = vrot.slane %v2142_v38, 1 }
 0x21a   :  { %v2145_v32 = vrot.slane %v5236_v18, 4  ;;  %v1780_v10 = vadd.f32 %v1779_v15, %v1733_v30  ;;  %v5309_v19 = vsub.f32 %v5204_v23, %v1702_v56  ;;  %v2155_v9 = vrot.slane %v2154_v28, 1 }
 0x21b   :  { %v5313_v44 = vadd.f32 %v5025_v61, %v5228_v51  ;;  %v1769_v26 = vrot.slane %v1768_v42, 2  ;;  %v1773_v27 = vrot.slane %v1732_v17, 4  ;;  %v2144_v62 = vadd.f32 %v2143_v16, %v2142_v38 }
 0x21c   :  { %v2146_v5 = vadd.f32 %v2145_v32, %v5236_v18  ;;  %v1781_v48 = vrot.slane %v1780_v10, 2  ;;  %v1734_v46 = vmul.f32 %v5309_v19, %v5309_v19  ;;  %v2156_v31 = vadd.f32 %v2155_v9, %v2154_v28 }
 0x21d   :  { %v2157_v60 = vrot.slane %v5313_v44, 4  ;;  %v1770_v57 = vadd.f32 %v1769_v26, %v1768_v42  ;;  %v1774_v23 = vadd.f32 %v1773_v27, %v1732_v17  ;;  %v2215_v36 = vmul.f32 0.125, %v2144_v62 }
 0x21e   :  { %v2147_v58 = vrot.slane %v2146_v5, 2  ;;  %v1782_v29 = vadd.f32 %v1781_v48, %v1780_v10  ;;  %v1785_v37 = vrot.slane %v1734_v46, 4  ;;  %v2217_v61 = vmul.f32 0.125, %v2156_v31 }
 0x21f   :  { %v2158_v51 = vadd.f32 %v2157_v60, %v5313_v44  ;;  %v1771_v39 = vrot.slane %v1770_v57, 1  ;;  %v1775_v2 = vrot.slane %v1774_v23, 2  ;;  %v5321_v25 = vsub.f32 %v5207_v21, %v2215_v36 }
 0x220   :  { %v2148_v59 = vadd.f32 %v2147_v58, %v2146_v5  ;;  %v1783_v4 = vrot.slane %v1782_v29, 1  ;;  %v1786_v3 = vadd.f32 %v1785_v37, %v1734_v46  ;;  %v5324_v13 = vsub.f32 %v5212_v53, %v2217_v61 }
 0x221   :  { %v2159_v63 = vrot.slane %v2158_v51, 2  ;;  %v1772_v12 = vadd.f32 %v1771_v39, %v1770_v57  ;;  %v1776_v30 = vadd.f32 %v1775_v2, %v1774_v23  ;;  %v2247_v20 = vmul.f32 %v5321_v25, %v5321_v25  ;;  %v5930_v2 = vld [vmem:[#allocation34_spill] sm:$0xff] }
 0x222   :  { %v2149_v14 = vrot.slane %v2148_v59, 1  ;;  %v1784_v38 = vadd.f32 %v1783_v4, %v1782_v29  ;;  %v1787_v15 = vrot.slane %v1786_v3, 2  ;;  %v2249_v56 = vmul.f32 %v5324_v13, %v5324_v13  ;;  %v5931_v4 = vld [vmem:[#allocation46_spill] sm:$0xff] }
 0x223   :  { %v2160_v21 = vadd.f32 %v2159_v63, %v2158_v51  ;;  %v1843_v28 = vmul.f32 0.125, %v1772_v12  ;;  %v1777_v42 = vrot.slane %v1776_v30, 1  ;;  %v2283_v17 = vrot.slane %v2247_v20, 4 }
 0x224   :  { %v2150_v16 = vadd.f32 %v2149_v14, %v2148_v59  ;;  %v1845_v32 = vmul.f32 0.125, %v1784_v38  ;;  %v1788_v53 = vadd.f32 %v1787_v15, %v1786_v3  ;;  %v2295_v10 = vrot.slane %v2249_v56, 4  ;;  %v5932_v3 = vld [vmem:[#allocation50_spill] sm:$0xff]  ;;  %v5933_v38 = vld [vmem:[#allocation53_spill] sm:$0xff] }
 0x225   :  { %v2161_v9 = vrot.slane %v2160_v21, 1  ;;  %v1859_v26 = vadd.f32 1e-05, %v1843_v28  ;;  %v1778_v27 = vadd.f32 %v1777_v42, %v1776_v30  ;;  %v2284_v62 = vadd.f32 %v2283_v17, %v2247_v20  ;;  %v5935_v42 = vld [vmem:[#allocation35_spill] sm:$0xff] }
 0x226   :  { %v2216_v5 = vmul.f32 0.125, %v2150_v16  ;;  %v1861_v48 = vadd.f32 1e-05, %v1845_v32  ;;  %v1789_v46 = vrot.slane %v1788_v53, 1  ;;  %v2296_v31 = vadd.f32 %v2295_v10, %v2249_v56  ;;  %v5934_v56 = vld [vmem:[#allocation47_spill] sm:$0xff] }
 0x227   :  { %v2162_v60 = vadd.f32 %v2161_v9, %v2160_v21  ;;  %4301 = vrsqrt.f32 %v1859_v26  ;;  %v1844_v57 = vmul.f32 0.125, %v1778_v27  ;;  %v2285_v23 = vrot.slane %v2284_v62, 2  ;;  %v5936_v10 = vld [vmem:[#allocation51_spill] sm:$0xff] }
 0x228   :  { %v5331_v36 = vsub.f32 %v5236_v18, %v2216_v5  ;;  %4303 = vrsqrt.f32 %v1861_v48  ;;  %v1790_v58 = vadd.f32 %v1789_v46, %v1788_v53  ;;  %v2297_v29 = vrot.slane %v2296_v31, 2 }
 0x229   :  { %v2218_v37 = vmul.f32 0.125, %v2162_v60  ;;  %v1860_v61 = vadd.f32 1e-05, %v1844_v57  ;;  %v2286_v51 = vadd.f32 %v2285_v23, %v2284_v62  ;;  %v1341_v59 = vadd.f32 %v5165_v1, %v5930_v2  ;;  %v5937_v62 = vld [vmem:[#allocation54_spill] sm:$0xff] }
 0x22a   :  { %v2248_v39 = vmul.f32 %v5331_v36, %v5331_v36  ;;  %v5339_v63 = vrot.slane %v5932_v3, %v5931_v4  ;;  %v1846_v12 = vmul.f32 0.125, %v1790_v58  ;;  %v2298_v30 = vadd.f32 %v2297_v29, %v2296_v31  ;;  %v5938_v58 = vld [vmem:[#allocation36_spill] sm:$0xff] }
 0x22b   :  { %v5342_v18 = vsub.f32 %v5313_v44, %v2218_v37  ;;  %4305 = vrsqrt.f32 %v1860_v61  ;;  %v2287_v20 = vrot.slane %v2286_v51, 1  ;;  %v5345_v15 = vadd.f32 %v5933_v38, %v1341_v59 }
 0x22c   :  { %v2289_v14 = vrot.slane %v2248_v39, 4  ;;  %v5349_v21 = vrot.slane %v5932_v3, %v5934_v56  ;;  %v2299_v1 = vrot.slane %v2298_v30, 1  ;;  %v1384_v17 = vadd.f32 %v5167_v33, %v5935_v42 }
 0x22d   :  { %v2250_v28 = vmul.f32 %v5342_v18, %v5342_v18  ;;  %v1862_v16 = vadd.f32 1e-05, %v1846_v12  ;;  %v2288_v44 = vadd.f32 %v2287_v20, %v2286_v51  ;;  %v1646_v53 = vrot.slane %v5345_v15, 4 }
 0x22e   :  { %v2290_v32 = vadd.f32 %v2289_v14, %v2248_v39  ;;  %v5358_v9 = vrot.slane %v5936_v10, %v5931_v4  ;;  %v2300_v26 = vadd.f32 %v2299_v1, %v2298_v30  ;;  %v5361_v5 = vadd.f32 %v5937_v62, %v1384_v17 }
 0x22f   :  { %v2301_v27 = vrot.slane %v2250_v28, 4  ;;  %v5365_v48 = vrot.slane %v5936_v10, %v5934_v56  ;;  %v2359_v46 = vmul.f32 0.125, %v2288_v44  ;;  %v1647_v31 = vadd.f32 %v1646_v53, %v5345_v15 }
 0x230   :  { %v2291_v33 = vrot.slane %v2290_v32, 2  ;;  %v2361_v60 = vmul.f32 0.125, %v2300_v26  ;;  %v1658_v23 = vrot.slane %v5361_v5, 4  ;;  %v1343_v29 = vadd.f32 %v5169_v43, %v5938_v58 }
 0x231   :  { %v2302_v57 = vadd.f32 %v2301_v27, %v2250_v28  ;;  %v4302_v37 = vpop.eup %4301  ;;  %4307 = vrsqrt.f32 %v1862_v16  ;;  %v2375_v61 = vadd.f32 1e-05, %v2359_v46  ;;  %v1648_v39 = vrot.slane %v1647_v31, 2 }
 0x232   :  { %v2292_v51 = vadd.f32 %v2291_v33, %v2290_v32  ;;  %v4304_v59 = vpop.eup %4303  ;;  %v1891_v12 = vmul.f32 %v4302_v37, %v5278_v11  ;;  %v2377_v30 = vadd.f32 1e-05, %v2361_v60  ;;  %v1659_v14 = vadd.f32 %v1658_v23, %v5361_v5  ;;  %v5939_v11 = vld [vmem:[#allocation55_spill] sm:$0xff]  ;;  %v5940_v23 = vld [vmem:[#allocation48_spill] sm:$0xff] }
 0x233   :  { %v2303_v20 = vrot.slane %v2302_v57, 2  ;;  %v1893_v1 = vmul.f32 %v4304_v59, %v5282_v0  ;;  %4309 = vrsqrt.f32 %v2375_v61  ;;  %v1649_v17 = vadd.f32 %v1648_v39, %v1647_v31 }
 0x234   :  { %v2293_v28 = vrot.slane %v2292_v51, 1  ;;  %v1989_v44 = vmul.f32 %v5339_v63, %v1891_v12  ;;  %4311 = vrsqrt.f32 %v2377_v30  ;;  %v1660_v16 = vrot.slane %v1659_v14, 2 }
 0x235   :  { %v2304_v43 = vadd.f32 %v2303_v20, %v2302_v57  ;;  %v4306_v53 = vpop.eup %4305  ;;  %v1991_v32 = vmul.f32 %v5349_v21, %v1893_v1  ;;  %v1650_v27 = vrot.slane %v1649_v17, 1  ;;  %v5377_v46 = vadd.f32 %v5939_v11, %v1343_v29 }
 0x236   :  { %v2294_v26 = vadd.f32 %v2293_v28, %v2292_v51  ;;  %v1661_v60 = vadd.f32 %v1660_v16, %v1659_v14  ;;  %v5381_v0 = vrot.slane %v5932_v3, %v5940_v23  ;;  %v1892_v57 = vmul.f32 %v4306_v53, %v5295_v52  ;;  %v5941_v14 = vld [vmem:[#allocation49_spill] sm:$0xff] }
 0x237   :  { %v2305_v33 = vrot.slane %v2304_v43, 1  ;;  %v1651_v37 = vadd.f32 %v1650_v27, %v1649_v17  ;;  %v1652_v61 = vrot.slane %v5377_v46, 4  ;;  %v5387_v39 = vrot.slane %v5936_v10, %v5940_v23 }
 0x238   :  { %v2360_v31 = vmul.f32 0.125, %v2294_v26  ;;  %v1662_v59 = vrot.slane %v1661_v60, 1  ;;  %v2087_v29 = vadd.f32 %v5358_v9, %v1989_v44  ;;  %v2089_v12 = vadd.f32 %v5365_v48, %v1991_v32  ;;  %v5943_v32 = vld [vmem:[#allocation52_spill] sm:$0xff] }
 0x239   :  { %v2306_v51 = vadd.f32 %v2305_v33, %v2304_v43  ;;  %v1703_v20 = vmul.f32 0.125, %v1651_v37  ;;  %v5393_v1 = vrot.slane %v5932_v3, %v5941_v14  ;;  %v1653_v52 = vadd.f32 %v1652_v61, %v5377_v46  ;;  %v5942_v43 = vld [vmem:[#allocation45_spill] sm:$0xff] }
 0x23a   :  { %v2376_v30 = vadd.f32 1e-05, %v2360_v31  ;;  %v1663_v17 = vadd.f32 %v1662_v59, %v1661_v60  ;;  %v5398_v53 = vrot.slane %v5936_v10, %v5941_v14  ;;  %v5405_v26 = vrot.slane %v5943_v32, %v5942_v43 }
 0x23b   :  { %v2362_v28 = vmul.f32 0.125, %v2306_v51  ;;  %v4308_v16 = vpop.eup %4307  ;;  %v5401_v44 = vsub.f32 %v5345_v15, %v1703_v20  ;;  %v1990_v3 = vmul.f32 %v5381_v0, %v1892_v57  ;;  %v1654_v60 = vrot.slane %v1653_v52, 2  ;;  %v5944_v51 = vld [vmem:[#allocation37_spill] sm:$0xff] }
 0x23c   :  { %4313 = vrsqrt.f32 %v2376_v30  ;;  %v1705_v33 = vmul.f32 0.125, %v1663_v17  ;;  %v2103_v37 = vmax.f32 %v2087_v29, 0.0  ;;  %v2105_v61 = vmax.f32 %v2089_v12, 0.0 }
 0x23d   :  { %v2378_v27 = vadd.f32 1e-05, %v2362_v28  ;;  %v4310_v31 = vpop.eup %4309  ;;  %v1735_v10 = vmul.f32 %v5401_v44, %v5401_v44  ;;  %v1386_v59 = vadd.f32 %v5171_v35, %v5944_v51  ;;  %v1655_v57 = vadd.f32 %v1654_v60, %v1653_v52 }
 0x23e   :  { %v4312_v15 = vpop.eup %4311  ;;  %v2407_v30 = vmul.f32 %v4310_v31, %v5321_v25  ;;  %v5414_v20 = vsub.f32 %v5361_v5, %v1705_v33  ;;  %v1894_v28 = vmul.f32 %v4308_v16, %v5309_v19  ;;  %v2088_v32 = vadd.f32 %v5387_v39, %v1990_v3  ;;  %v5945_v19 = vld [vmem:[#allocation57_spill] sm:$0xff] }
 0x23f   :  { %4315 = vrsqrt.f32 %v2378_v27  ;;  %v2409_v17 = vmul.f32 %v4312_v15, %v5324_v13  ;;  %v1791_v29 = vrot.slane %v1735_v10, 4  ;;  %v5419_v12 = vadd.f32 %v5405_v26, %v1386_v59 }
 0x240   :  { %v2423_v35 = vmul.f32 %v2407_v30, %v5339_v63  ;;  %v1737_v25 = vmul.f32 %v5414_v20, %v5414_v20  ;;  %v1656_v27 = vrot.slane %v1655_v57, 1  ;;  %v1345_v13 = vadd.f32 %v5945_v19, %v5930_v2 }
 0x241   :  { %v2425_v5 = vmul.f32 %v2409_v17, %v5349_v21  ;;  %v1792_v33 = vadd.f32 %v1791_v29, %v1735_v10  ;;  %v1664_v52 = vrot.slane %v5419_v12, 4  ;;  %v1388_v3 = vadd.f32 %v5175_v24, %v5935_v42 }
 0x242   :  { %v2439_v16 = vadd.f32 %v2423_v35, %v5358_v9  ;;  %v1803_v60 = vrot.slane %v1737_v25, 4  ;;  %v1657_v31 = vadd.f32 %v1656_v27, %v1655_v57  ;;  %v5435_v21 = vadd.f32 %v5933_v38, %v1345_v13 }
 0x243   :  { %v2441_v63 = vadd.f32 %v2425_v5, %v5365_v48  ;;  %v1793_v59 = vrot.slane %v1792_v33, 2  ;;  %v1665_v15 = vadd.f32 %v1664_v52, %v5419_v12  ;;  %v5438_v2 = vadd.f32 %v5937_v62, %v1388_v3 }
 0x244   :  { %v2455_v10 = vmax.f32 %v2439_v16, 0.0  ;;  %v1804_v30 = vadd.f32 %v1803_v60, %v1737_v25  ;;  %v1704_v17 = vmul.f32 0.125, %v1657_v31  ;;  %v2163_v24 = vrot.slane %v5435_v21, 4 }
 0x245   :  { %v2457_v29 = vmax.f32 %v2441_v63, 0.0  ;;  %v1794_v57 = vadd.f32 %v1793_v59, %v1792_v33  ;;  %v1666_v35 = vrot.slane %v1665_v15, 2  ;;  %v1992_v25 = vmul.f32 %v5393_v1, %v1894_v28 }
 0x246   :  { %v4314_v9 = vpop.eup %4313  ;;  %v5441_v42 = vpack.c.bf16 %v2455_v10, %v2103_v37  ;;  %v1805_v27 = vrot.slane %v1804_v30, 2  ;;  %v5445_v38 = vsub.f32 %v5377_v46, %v1704_v17  ;;  %v2164_v52 = vadd.f32 %v2163_v24, %v5435_v21 }
 0x247   :  { %v2408_v48 = vmul.f32 %v4314_v9, %v5331_v36  ;;  %v5448_v5 = vpack.c.bf16 %v2457_v29, %v2105_v61  ;;  %v1667_v62 = vadd.f32 %v1666_v35, %v1665_v15  ;;  %v2175_v36 = vrot.slane %v5438_v2, 4 }
 0x248   :  { %5946 = vst [vmem:[#allocation56_spill] sm:$0xff] %v5441_v42  ;;  %v1806_v13 = vadd.f32 %v1805_v27, %v1804_v30  ;;  %v1736_v37 = vmul.f32 %v5445_v38, %v5445_v38  ;;  %v1795_v46 = vrot.slane %v1794_v57, 1  ;;  %v2165_v31 = vrot.slane %v2164_v52, 2 }
 0x249   :  { %5947 = vst [vmem:[#allocation34_spill] sm:$0xff] %v5448_v5  ;;  %v4316_v19 = vpop.eup %4315  ;;  %v2424_v33 = vmul.f32 %v2408_v48, %v5381_v0  ;;  %v1668_v60 = vrot.slane %v1667_v62, 1  ;;  %v2176_v63 = vadd.f32 %v2175_v36, %v5438_v2  ;;  %v2090_v59 = vadd.f32 %v5398_v53, %v1992_v25 }
 0x24a   :  { %v2410_v16 = vmul.f32 %v4316_v19, %v5342_v18  ;;  %v1807_v28 = vrot.slane %v1806_v13, 1  ;;  %v1797_v3 = vrot.slane %v1736_v37, 4  ;;  %v2166_v10 = vadd.f32 %v2165_v31, %v2164_v52 }
 0x24b   :  { %v2440_v61 = vadd.f32 %v2424_v33, %v5387_v39  ;;  %v1669_v15 = vadd.f32 %v1668_v60, %v1667_v62  ;;  %v2104_v30 = vmax.f32 %v2088_v32, 0.0  ;;  %v2177_v29 = vrot.slane %v2176_v63, 2 }
 0x24c   :  { %v2426_v0 = vmul.f32 %v2410_v16, %v5393_v1  ;;  %v1798_v9 = vadd.f32 %v1797_v3, %v1736_v37  ;;  %v1796_v35 = vadd.f32 %v1795_v46, %v1794_v57  ;;  %v2167_v48 = vrot.slane %v2166_v10, 1  ;;  %v5949_v37 = vld [vmem:[#allocation58_spill] sm:$0xff] }
 0x24d   :  { %v2456_v17 = vmax.f32 %v2440_v61, 0.0  ;;  %v1706_v24 = vmul.f32 0.125, %v1669_v15  ;;  %v1808_v27 = vadd.f32 %v1807_v28, %v1806_v13  ;;  %v2178_v33 = vadd.f32 %v2177_v29, %v2176_v63  ;;  %v5951_v63 = vld [vmem:[#allocation38_spill] sm:$0xff] }
 0x24e   :  { %v2442_v18 = vadd.f32 %v2426_v0, %v5398_v53  ;;  %v1799_v19 = vrot.slane %v1798_v9, 2  ;;  %v2106_v36 = vmax.f32 %v2090_v59, 0.0  ;;  %v2168_v62 = vadd.f32 %v2167_v48, %v2166_v10 }
 0x24f   :  { %v5461_v39 = vpack.c.bf16 %v2456_v17, %v2104_v30  ;;  %v5464_v1 = vsub.f32 %v5419_v12, %v1706_v24  ;;  %v2179_v52 = vrot.slane %v2178_v33, 1  ;;  %v1347_v16 = vadd.f32 %v5949_v37, %v5938_v58  ;;  %v5481_v30 = vld [vmem:[#allocation13 + $0x8] sm:$0xff] }
 0x250   :  { %v2458_v25 = vmax.f32 %v2442_v18, 0.0  ;;  %v1800_v32 = vadd.f32 %v1799_v19, %v1798_v9  ;;  %v2219_v46 = vmul.f32 0.125, %v2168_v62  ;;  %v1390_v13 = vadd.f32 %v5179_v22, %v5944_v51 }
 0x251   :  { %5948 = vst [vmem:[#allocation46_spill] sm:$0xff] %v5461_v39  ;;  %v1738_v57 = vmul.f32 %v5464_v1, %v5464_v1  ;;  %v1847_v60 = vmul.f32 0.125, %v1796_v35  ;;  %v1849_v31 = vmul.f32 0.125, %v1808_v27  ;;  %v2180_v61 = vadd.f32 %v2179_v52, %v2178_v33 }
 0x252   :  { %v5468_v53 = vpack.c.bf16 %v2458_v25, %v2106_v36  ;;  %v1587_v12 = vadd.f32 %v5939_v11, %v1347_v16  ;;  %v5476_v3 = vsub.f32 %v5435_v21, %v2219_v46  ;;  %v1589_v58 = vadd.f32 %v5405_v26, %v1390_v13 }
 0x253   :  { %v1809_v28 = vrot.slane %v1738_v57, 4  ;;  %v1427_v59 = vadd.f32 %v5230_v54, %v5951_v63  ;;  %v1801_v0 = vrot.slane %v1800_v32, 1  ;;  %v2221_v15 = vmul.f32 0.125, %v2180_v61 }
 0x254   :  { %5950 = vst [vmem:[#allocation50_spill] sm:$0xff] %v5468_v53  ;;  %v2169_v10 = vrot.slane %v1587_v12, 4  ;;  %v5485_v22 = vrot.slane %v5481_v30, %v5931_v4  ;;  %v2251_v11 = vmul.f32 %v5476_v3, %v5476_v3  ;;  %v2181_v21 = vrot.slane %v1589_v58, 4 }
 0x255   :  { %v1810_v51 = vadd.f32 %v1809_v28, %v1738_v57  ;;  %v1863_v17 = vadd.f32 1e-05, %v1847_v60  ;;  %v5490_v26 = vsub.f32 %v5438_v2, %v2221_v15  ;;  %v1865_v29 = vadd.f32 1e-05, %v1849_v31  ;;  %v5952_v2 = vld [vmem:[#allocation39_spill] sm:$0xff] }
 0x256   :  { %v2170_v9 = vadd.f32 %v2169_v10, %v1587_v12  ;;  %v5493_v54 = vadd.f32 %v5485_v22, %v1427_v59  ;;  %v2307_v35 = vrot.slane %v2251_v11, 4  ;;  %v2182_v24 = vadd.f32 %v2181_v21, %v1589_v58  ;;  %v5505_v21 = vld [vmem:[#allocation14 + $0x8] sm:$0xff] }
 0x257   :  { %v1811_v18 = vrot.slane %v1810_v51, 2  ;;  %v1802_v48 = vadd.f32 %v1801_v0, %v1800_v32  ;;  %v2253_v27 = vmul.f32 %v5490_v26, %v5490_v26  ;;  %v1470_v52 = vadd.f32 %v5238_v49, %v5952_v2 }
 0x258   :  { %v2171_v19 = vrot.slane %v2170_v9, 2  ;;  %v1670_v33 = vrot.slane %v5493_v54, 4  ;;  %v2308_v25 = vadd.f32 %v2307_v35, %v2251_v11  ;;  %v2183_v62 = vrot.slane %v2182_v24, 2 }
 0x259   :  { %v1812_v36 = vadd.f32 %v1811_v18, %v1810_v51  ;;  %4317 = vrsqrt.f32 %v1863_v17  ;;  %v2319_v37 = vrot.slane %v2253_v27, 4  ;;  %v1848_v31 = vmul.f32 0.125, %v1802_v48 }
 0x25a   :  { %v2172_v16 = vadd.f32 %v2171_v19, %v2170_v9  ;;  %v2309_v57 = vrot.slane %v2308_v25, 2  ;;  %v2184_v46 = vadd.f32 %v2183_v62, %v2182_v24  ;;  %v1671_v13 = vadd.f32 %v1670_v33, %v5493_v54 }
 0x25b   :  { %4319 = vrsqrt.f32 %v1865_v29  ;;  %v2320_v32 = vadd.f32 %v2319_v37, %v2253_v27  ;;  %v1813_v61 = vrot.slane %v1812_v36, 1  ;;  %v5503_v49 = vrot.slane %v5481_v30, %v5934_v56  ;;  %v5507_v27 = vld [vmem:[#allocation16 + $0x8] sm:$0xff] }
 0x25c   :  { %v2173_v60 = vrot.slane %v2172_v16, 1  ;;  %v2310_v28 = vadd.f32 %v2309_v57, %v2308_v25  ;;  %v2185_v59 = vrot.slane %v2184_v46, 1  ;;  %v1672_v10 = vrot.slane %v1671_v13, 2  ;;  %v5953_v37 = vld [vmem:[#allocation42_spill] sm:$0xff] }
 0x25d   :  { %v2321_v0 = vrot.slane %v2320_v32, 2  ;;  %v1864_v18 = vadd.f32 1e-05, %v1848_v31  ;;  %v1814_v35 = vadd.f32 %v1813_v61, %v1812_v36  ;;  %v5512_v62 = vadd.f32 %v5503_v49, %v1470_v52 }
 0x25e   :  { %v2174_v15 = vadd.f32 %v2173_v60, %v2172_v16  ;;  %v2311_v51 = vrot.slane %v2310_v28, 1  ;;  %v2186_v11 = vadd.f32 %v2185_v59, %v2184_v46  ;;  %v1673_v29 = vadd.f32 %v1672_v10, %v1671_v13 }
 0x25f   :  { %v2322_v17 = vadd.f32 %v2321_v0, %v2320_v32  ;;  %v5516_v16 = vrot.slane %v5505_v21, %v5953_v37  ;;  %v5525_v31 = vrot.slane %v5507_v27, %v5953_v37  ;;  %4321 = vrsqrt.f32 %v1864_v18 }
 0x260   :  { %v2220_v9 = vmul.f32 0.125, %v2174_v15  ;;  %v2312_v24 = vadd.f32 %v2311_v51, %v2310_v28  ;;  %v2222_v48 = vmul.f32 0.125, %v2186_v11  ;;  %v1674_v25 = vrot.slane %v1673_v29, 1  ;;  %v5954_v51 = vld [vmem:[#allocation43_spill] sm:$0xff] }
 0x261   :  { %v2323_v19 = vrot.slane %v2322_v17, 1  ;;  %v5533_v11 = vrot.slane %v5505_v21, %v5954_v51 }
 0x262   :  { %v5509_v33 = vsub.f32 %v1587_v12, %v2220_v9  ;;  %v2363_v57 = vmul.f32 0.125, %v2312_v24  ;;  %v5518_v46 = vsub.f32 %v1589_v58, %v2222_v48  ;;  %v1675_v60 = vadd.f32 %v1674_v25, %v1673_v29 }
 0x263   :  { %v4318_v13 = vpop.eup %4317  ;;  %v2324_v36 = vadd.f32 %v2323_v19, %v2322_v17  ;;  %v1682_v12 = vrot.slane %v5512_v62, 4  ;;  %v1850_v58 = vmul.f32 0.125, %v1814_v35  ;;  %v5955_v35 = vld [vmem:[#allocation40_spill] sm:$0xff] }
 0x264   :  { %v2252_v32 = vmul.f32 %v5509_v33, %v5509_v33  ;;  %v2379_v52 = vadd.f32 1e-05, %v2363_v57  ;;  %v2254_v61 = vmul.f32 %v5518_v46, %v5518_v46  ;;  %v1895_v10 = vmul.f32 %v4318_v13, %v5401_v44 }
 0x265   :  { %v4320_v28 = vpop.eup %4319  ;;  %v2365_v59 = vmul.f32 0.125, %v2324_v36  ;;  %v1683_v15 = vadd.f32 %v1682_v12, %v5512_v62  ;;  %v1707_v18 = vmul.f32 0.125, %v1675_v60  ;;  %v1429_v25 = vadd.f32 %v5240_v40, %v5955_v35 }
 0x266   :  { %v2313_v0 = vrot.slane %v2252_v32, 4  ;;  %4323 = vrsqrt.f32 %v2379_v52  ;;  %v2325_v17 = vrot.slane %v2254_v61, 4  ;;  %v1897_v48 = vmul.f32 %v4320_v28, %v5414_v20 }
 0x267   :  { %v2381_v9 = vadd.f32 1e-05, %v2365_v59  ;;  %v1684_v24 = vrot.slane %v1683_v15, 2  ;;  %v5540_v57 = vrot.slane %v5481_v30, %v5940_v23  ;;  %v1866_v44 = vadd.f32 1e-05, %v1850_v58 }
 0x268   :  { %v2314_v29 = vadd.f32 %v2313_v0, %v2252_v32  ;;  %v2326_v19 = vadd.f32 %v2325_v17, %v2254_v61  ;;  %v2046_v12 = vrot.slane %v5507_v27, %v5954_v51  ;;  %v5956_v32 = vld [vmem:[#allocation44_spill] sm:$0xff]  ;;  %v1993_v40 = vmul.f32 %v5516_v16, %v1895_v10 }
 0x269   :  { %4325 = vrsqrt.f32 %v2381_v9  ;;  %v1685_v36 = vadd.f32 %v1684_v24, %v1683_v15  ;;  %v5546_v60 = vrot.slane %v5505_v21, %v5956_v32  ;;  %v5549_v52 = vadd.f32 %v5540_v57, %v1429_v25  ;;  %v5957_v15 = vld [vmem:[#allocation41_spill] sm:$0xff] }
 0x26a   :  { %v2315_v13 = vrot.slane %v2314_v29, 2  ;;  %v2327_v20 = vrot.slane %v2326_v19, 2  ;;  %v5553_v28 = vsub.f32 %v5493_v54, %v1707_v18  ;;  %v1472_v17 = vadd.f32 %v5244_v41, %v5957_v15 }
 0x26b   :  { %v1686_v58 = vrot.slane %v1685_v36, 1  ;;  %v1676_v0 = vrot.slane %v5549_v52, 4  ;;  %v5560_v9 = vrot.slane %v5481_v30, %v5941_v14  ;;  %v1995_v24 = vmul.f32 %v5533_v11, %v1897_v48 }
 0x26c   :  { %v2316_v61 = vadd.f32 %v2315_v13, %v2314_v29  ;;  %v2328_v59 = vadd.f32 %v2327_v20, %v2326_v19  ;;  %4327 = vrsqrt.f32 %v1866_v44  ;;  %v4322_v29 = vpop.eup %4321  ;;  %v5565_v54 = vrot.slane %v5507_v27, %v5956_v32 }
 0x26d   :  { %v1687_v10 = vadd.f32 %v1686_v58, %v1685_v36  ;;  %v1677_v19 = vadd.f32 %v1676_v0, %v5549_v52  ;;  %v5569_v13 = vadd.f32 %v5560_v9, %v1472_v17  ;;  %v2091_v41 = vadd.f32 %v5525_v31, %v1993_v40 }
 0x26e   :  { %v2317_v25 = vrot.slane %v2316_v61, 1  ;;  %v2329_v18 = vrot.slane %v2328_v59, 1  ;;  %v1739_v48 = vmul.f32 %v5553_v28, %v5553_v28  ;;  %v5576_v36 = vrot.slane %v5505_v21, %v5942_v43 }
 0x26f   :  { %v1709_v44 = vmul.f32 0.125, %v1687_v10  ;;  %v1678_v32 = vrot.slane %v1677_v19, 2  ;;  %v1688_v51 = vrot.slane %v5569_v13, 4  ;;  %v2093_v0 = vadd.f32 %v2046_v12, %v1995_v24 }
 0x270   :  { %v2318_v30 = vadd.f32 %v2317_v25, %v2316_v61  ;;  %v4324_v20 = vpop.eup %4323  ;;  %v2330_v58 = vadd.f32 %v2329_v18, %v2328_v59  ;;  %v5581_v17 = vrot.slane %v5507_v27, %v5942_v43  ;;  %v2107_v59 = vmax.f32 %v2091_v41, 0.0 }
 0x271   :  { %v2411_v40 = vmul.f32 %v4324_v20, %v5476_v3  ;;  %v5585_v10 = vsub.f32 %v5512_v62, %v1709_v44  ;;  %v1679_v37 = vadd.f32 %v1678_v32, %v1677_v19  ;;  %v1689_v5 = vadd.f32 %v1688_v51, %v5569_v13 }
 0x272   :  { %v2364_v61 = vmul.f32 0.125, %v2318_v30  ;;  %v2366_v25 = vmul.f32 0.125, %v2330_v58  ;;  %v1815_v24 = vrot.slane %v1739_v48, 4  ;;  %v1896_v20 = vmul.f32 %v4322_v29, %v5445_v38 }
 0x273   :  { %v4326_v53 = vpop.eup %4325  ;;  %v2427_v18 = vmul.f32 %v2411_v40, %v5516_v16  ;;  %v1741_v3 = vmul.f32 %v5585_v10, %v5585_v10  ;;  %v1680_v30 = vrot.slane %v1679_v37, 1  ;;  %v1690_v32 = vrot.slane %v1689_v5, 2 }
 0x274   :  { %v2380_v42 = vadd.f32 1e-05, %v2364_v61  ;;  %v2413_v39 = vmul.f32 %v4326_v53, %v5490_v26  ;;  %v2382_v43 = vadd.f32 1e-05, %v2366_v25  ;;  %v2109_v51 = vmax.f32 %v2093_v0, 0.0 }
 0x275   :  { %v2443_v62 = vadd.f32 %v2427_v18, %v5525_v31  ;;  %v1681_v16 = vadd.f32 %v1680_v30, %v1679_v37  ;;  %v1827_v58 = vrot.slane %v1741_v3, 4  ;;  %v1691_v53 = vadd.f32 %v1690_v32, %v1689_v5 }
 0x276   :  { %4329 = vrsqrt.f32 %v2380_v42  ;;  %v2429_v19 = vmul.f32 %v2413_v39, %v5533_v11  ;;  %v4328_v41 = vpop.eup %4327  ;;  %v1431_v26 = vadd.f32 %v5246_v8, %v5951_v63  ;;  %v1816_v61 = vadd.f32 %v1815_v24, %v1739_v48 }
 0x277   :  { %4331 = vrsqrt.f32 %v2382_v43  ;;  %v2459_v44 = vmax.f32 %v2443_v62, 0.0  ;;  %v1708_v25 = vmul.f32 0.125, %v1681_v16  ;;  %v1474_v38 = vadd.f32 %v5250_v47, %v5952_v2 }
 0x278   :  { %v2445_v40 = vadd.f32 %v2429_v19, %v2046_v12  ;;  %v1994_v42 = vmul.f32 %v5546_v60, %v1896_v20  ;;  %v1692_v39 = vrot.slane %v1691_v53, 1  ;;  %v5603_v43 = vadd.f32 %v5485_v22, %v1431_v26 }
 0x279   :  { %v5600_v31 = vpack.c.bf16 %v2459_v44, %v2107_v59  ;;  %v1898_v37 = vmul.f32 %v4328_v41, %v5464_v1  ;;  %v5607_v11 = vsub.f32 %v5549_v52, %v1708_v25  ;;  %v5610_v8 = vadd.f32 %v5503_v49, %v1474_v38 }
 0x27a   :  { %v2461_v5 = vmax.f32 %v2445_v40, 0.0  ;;  %v1828_v63 = vadd.f32 %v1827_v58, %v1741_v3  ;;  %v1693_v12 = vadd.f32 %v1692_v39, %v1691_v53  ;;  %v2187_v47 = vrot.slane %v5603_v43, 4 }
 0x27b   :  { %v1433_v2 = vadd.f32 %v5252_v55, %v5955_v35  ;;  %v1817_v22 = vrot.slane %v1816_v61, 2  ;;  %v1740_v1 = vmul.f32 %v5607_v11, %v5607_v11  ;;  %v2199_v48 = vrot.slane %v5610_v8, 4 }
 0x27c   :  { %v5615_v29 = vpack.c.bf16 %v2461_v5, %v2109_v51  ;;  %v1710_v52 = vmul.f32 0.125, %v1693_v12  ;;  %v2188_v0 = vadd.f32 %v2187_v47, %v5603_v43  ;;  %v1476_v59 = vadd.f32 %v5256_v45, %v5957_v15 }
 0x27d   :  { %v5622_v49 = vadd.f32 %v5540_v57, %v1433_v2  ;;  %v2092_v18 = vadd.f32 %v5565_v54, %v1994_v42  ;;  %v1996_v55 = vmul.f32 %v5576_v36, %v1898_v37  ;;  %v1821_v35 = vrot.slane %v1740_v1, 4 }
 0x27e   :  { %v2200_v24 = vadd.f32 %v2199_v48, %v5610_v8  ;;  %v1829_v30 = vrot.slane %v1828_v63, 2  ;;  %v5630_v20 = vsub.f32 %v5569_v13, %v1710_v52  ;;  %v2189_v62 = vrot.slane %v2188_v0, 2 }
 0x27f   :  { %v2193_v32 = vrot.slane %v5622_v49, 4  ;;  %v1818_v19 = vadd.f32 %v1817_v22, %v1816_v61  ;;  %v1822_v45 = vadd.f32 %v1821_v35, %v1740_v1  ;;  %v2094_v13 = vadd.f32 %v5581_v17, %v1996_v55 }
 0x280   :  { %v4330_v3 = vpop.eup %4329  ;;  %v2201_v15 = vrot.slane %v2200_v24, 2  ;;  %v1742_v41 = vmul.f32 %v5630_v20, %v5630_v20  ;;  %v2190_v44 = vadd.f32 %v2189_v62, %v2188_v0  ;;  %v2108_v42 = vmax.f32 %v2092_v18, 0.0 }
 0x281   :  { %v4332_v57 = vpop.eup %4331  ;;  %v2412_v51 = vmul.f32 %v4330_v3, %v5509_v33  ;;  %v2194_v58 = vadd.f32 %v2193_v32, %v5622_v49  ;;  %v1823_v26 = vrot.slane %v1822_v45, 2  ;;  %v1830_v33 = vadd.f32 %v1829_v30, %v1828_v63 }
 0x282   :  { %v2414_v16 = vmul.f32 %v4332_v57, %v5518_v46  ;;  %v2202_v40 = vadd.f32 %v2201_v15, %v2200_v24  ;;  %v2191_v61 = vrot.slane %v2190_v44, 1  ;;  %v1833_v39 = vrot.slane %v1742_v41, 4 }
 0x283   :  { %v2428_v53 = vmul.f32 %v2412_v51, %v5546_v60  ;;  %v2195_v38 = vrot.slane %v2194_v58, 2  ;;  %v1819_v12 = vrot.slane %v1818_v19, 1  ;;  %v2110_v22 = vmax.f32 %v2094_v13, 0.0 }
 0x284   :  { %v2430_v25 = vmul.f32 %v2414_v16, %v5576_v36  ;;  %v2203_v37 = vrot.slane %v2202_v40, 1  ;;  %v2192_v47 = vadd.f32 %v2191_v61, %v2190_v44  ;;  %v1824_v60 = vadd.f32 %v1823_v26, %v1822_v45 }
 0x285   :  { %v2444_v46 = vadd.f32 %v2428_v53, %v5565_v54  ;;  %v2196_v2 = vadd.f32 %v2195_v38, %v2194_v58  ;;  %v1593_v48 = vadd.f32 %v5560_v9, %v1476_v59  ;;  %v1831_v36 = vrot.slane %v1830_v33, 1 }
 0x286   :  { %v2446_v5 = vadd.f32 %v2430_v25, %v5581_v17  ;;  %v2223_v63 = vmul.f32 0.125, %v2192_v47  ;;  %v2204_v0 = vadd.f32 %v2203_v37, %v2202_v40  ;;  %v1834_v18 = vadd.f32 %v1833_v39, %v1742_v41 }
 0x287   :  { %v2460_v1 = vmax.f32 %v2444_v46, 0.0  ;;  %v2197_v54 = vrot.slane %v2196_v2, 1  ;;  %v1820_v24 = vadd.f32 %v1819_v12, %v1818_v19  ;;  %v1825_v30 = vrot.slane %v1824_v60, 1 }
 0x288   :  { %v2462_v52 = vmax.f32 %v2446_v5, 0.0  ;;  %v5649_v17 = vsub.f32 %v5603_v43, %v2223_v63  ;;  %v2225_v3 = vmul.f32 0.125, %v2204_v0  ;;  %v2205_v32 = vrot.slane %v1593_v48, 4 }
 0x289   :  { %v5644_v55 = vpack.c.bf16 %v2460_v1, %v2108_v42  ;;  %v2198_v62 = vadd.f32 %v2197_v54, %v2196_v2  ;;  %v1832_v57 = vadd.f32 %v1831_v36, %v1830_v33  ;;  %v1835_v51 = vrot.slane %v1834_v18, 2 }
 0x28a   :  { %v5646_v35 = vpack.c.bf16 %v2462_v52, %v2110_v22  ;;  %v2255_v9 = vmul.f32 %v5649_v17, %v5649_v17  ;;  %v5654_v59 = vsub.f32 %v5610_v8, %v2225_v3  ;;  %v2206_v15 = vadd.f32 %v2205_v32, %v1593_v48 }
 0x28b   :  { %v2224_v45 = vmul.f32 0.125, %v2198_v62  ;;  %v1851_v16 = vmul.f32 0.125, %v1820_v24  ;;  %v1826_v19 = vadd.f32 %v1825_v30, %v1824_v60  ;;  %v1853_v13 = vmul.f32 0.125, %v1832_v57 }
 0x28c   :  { %v2331_v41 = vrot.slane %v2255_v9, 4  ;;  %v2257_v43 = vmul.f32 %v5654_v59, %v5654_v59  ;;  %v2207_v58 = vrot.slane %v2206_v15, 2  ;;  %v1836_v40 = vadd.f32 %v1835_v51, %v1834_v18 }
 0x28d   :  { %v5659_v44 = vsub.f32 %v5622_v49, %v2224_v45  ;;  %v1867_v33 = vadd.f32 1e-05, %v1851_v16  ;;  %v1852_v42 = vmul.f32 0.125, %v1826_v19  ;;  %v1869_v37 = vadd.f32 1e-05, %v1853_v13 }
 0x28e   :  { %v2332_v53 = vadd.f32 %v2331_v41, %v2255_v9  ;;  %v2343_v26 = vrot.slane %v2257_v43, 4  ;;  %v2208_v25 = vadd.f32 %v2207_v58, %v2206_v15  ;;  %v1837_v49 = vrot.slane %v1836_v40, 1 }
 0x28f   :  { %v2256_v8 = vmul.f32 %v5659_v44, %v5659_v44  ;;  %4333 = vrsqrt.f32 %v1867_v33  ;;  %v1868_v60 = vadd.f32 1e-05, %v1852_v42 }
 0x290   :  { %v2333_v61 = vrot.slane %v2332_v53, 2  ;;  %v2344_v38 = vadd.f32 %v2343_v26, %v2257_v43  ;;  %v2209_v39 = vrot.slane %v2208_v25, 1  ;;  %4335 = vrsqrt.f32 %v1869_v37 }
 0x291   :  { %v2337_v46 = vrot.slane %v2256_v8, 4  ;;  %v1838_v18 = vadd.f32 %v1837_v49, %v1836_v40  ;;  %4337 = vrsqrt.f32 %v1868_v60  ;;  %v1956_v40 = vrot.slane %v5505_v21, %v5931_v4 }
 0x292   :  { %v2334_v5 = vadd.f32 %v2333_v61, %v2332_v53  ;;  %v2345_v12 = vrot.slane %v2344_v38, 2  ;;  %v2210_v2 = vadd.f32 %v2209_v39, %v2208_v25  ;;  %v1964_v61 = vrot.slane %v5505_v21, %v5934_v56 }
 0x293   :  { %v2338_v47 = vadd.f32 %v2337_v46, %v2256_v8  ;;  %v1854_v51 = vmul.f32 0.125, %v1838_v18  ;;  %v2054_v46 = vrot.slane %v5507_v27, %v5931_v4 }
 0x294   :  { %v2335_v22 = vrot.slane %v2334_v5, 1  ;;  %v2346_v1 = vadd.f32 %v2345_v12, %v2344_v38  ;;  %v2226_v36 = vmul.f32 0.125, %v2210_v2 }
 0x295   :  { %v2339_v52 = vrot.slane %v2338_v47, 2 }
 0x296   :  { %v2336_v63 = vadd.f32 %v2335_v22, %v2334_v5  ;;  %v2347_v0 = vrot.slane %v2346_v1, 1  ;;  %v5663_v24 = vsub.f32 %v1593_v48, %v2226_v36  ;;  %v1870_v48 = vadd.f32 1e-05, %v1854_v51 }
 0x297   :  { %v2340_v54 = vadd.f32 %v2339_v52, %v2338_v47  ;;  %v1960_v5 = vrot.slane %v5505_v21, %v5940_v23 }
 0x298   :  { %v2367_v3 = vmul.f32 0.125, %v2336_v63  ;;  %v2348_v30 = vadd.f32 %v2347_v0, %v2346_v1  ;;  %v2258_v32 = vmul.f32 %v5663_v24, %v5663_v24 }
 0x299   :  { %v2341_v62 = vrot.slane %v2340_v54, 1  ;;  %v4334_v19 = vpop.eup %4333 }
 0x29a   :  { %v2383_v57 = vadd.f32 1e-05, %v2367_v3  ;;  %v2369_v9 = vmul.f32 0.125, %v2348_v30  ;;  %v2349_v15 = vrot.slane %v2258_v32, 4  ;;  %v4336_v53 = vpop.eup %4335  ;;  %v1899_v26 = vmul.f32 %v4334_v19, %v5553_v28 }
 0x29b   :  { %v2342_v45 = vadd.f32 %v2341_v62, %v2340_v54  ;;  %v4338_v25 = vpop.eup %4337  ;;  %v1901_v33 = vmul.f32 %v4336_v53, %v5585_v10  ;;  %v2062_v10 = vrot.slane %v5507_v27, %v5934_v56 }
 0x29c   :  { %4339 = vrsqrt.f32 %v2383_v57  ;;  %v2385_v16 = vadd.f32 1e-05, %v2369_v9  ;;  %v2350_v43 = vadd.f32 %v2349_v15, %v2258_v32  ;;  %v1997_v42 = vmul.f32 %v1956_v40, %v1899_v26 }
 0x29d   :  { %v2368_v41 = vmul.f32 0.125, %v2342_v45  ;;  %v1900_v28 = vmul.f32 %v4338_v25, %v5607_v11  ;;  %v1999_v12 = vmul.f32 %v1964_v61, %v1901_v33  ;;  %v2058_v11 = vrot.slane %v5507_v27, %v5940_v23 }
 0x29e   :  { %4341 = vrsqrt.f32 %v2385_v16  ;;  %v2351_v13 = vrot.slane %v2350_v43, 2  ;;  %v2095_v22 = vadd.f32 %v2054_v46, %v1997_v42  ;;  %v1968_v23 = vrot.slane %v5505_v21, %v5941_v14 }
 0x29f   :  { %v2384_v58 = vadd.f32 1e-05, %v2368_v41  ;;  %v1998_v52 = vmul.f32 %v1960_v5, %v1900_v28  ;;  %v2097_v63 = vadd.f32 %v2062_v10, %v1999_v12 }
 0x2a0   :  { %v2352_v8 = vadd.f32 %v2351_v13, %v2350_v43  ;;  %v2066_v43 = vrot.slane %v5507_v27, %v5941_v14 }
 0x2a1   :  { %4343 = vrsqrt.f32 %v2384_v58  ;;  %v2096_v62 = vadd.f32 %v2058_v11, %v1998_v52  ;;  %v2113_v57 = vmax.f32 %v2097_v63, 0.0 }
 0x2a2   :  { %4345 = vrsqrt.f32 %v1870_v48  ;;  %v2353_v38 = vrot.slane %v2352_v8, 1 }
 0x2a3   :  { %v2112_v16 = vmax.f32 %v2096_v62, 0.0 }
 0x2a4   :  { %v2354_v39 = vadd.f32 %v2353_v38, %v2352_v8 }
 0x2a6   :  { %v4340_v37 = vpop.eup %4339  ;;  %v2370_v47 = vmul.f32 0.125, %v2354_v39 }
 0x2a7   :  { %v2415_v49 = vmul.f32 %v4340_v37, %v5649_v17  ;;  %v2111_v17 = vmax.f32 %v2095_v22, 0.0 }
 0x2a8   :  { %v4342_v2 = vpop.eup %4341  ;;  %v2386_v4 = vadd.f32 1e-05, %v2370_v47 }
 0x2a9   :  { %v2431_v1 = vmul.f32 %v2415_v49, %v1956_v40  ;;  %v2417_v60 = vmul.f32 %v4342_v2, %v5654_v59 }
 0x2aa   :  { %4347 = vrsqrt.f32 %v2386_v4 }
 0x2ab   :  { %v4344_v36 = vpop.eup %4343  ;;  %v2447_v0 = vadd.f32 %v2431_v1, %v2054_v46  ;;  %v2433_v18 = vmul.f32 %v2417_v60, %v1964_v61 }
 0x2ac   :  { %v2416_v56 = vmul.f32 %v4344_v36, %v5659_v44  ;;  %v4346_v54 = vpop.eup %4345 }
 0x2ad   :  { %v2463_v3 = vmax.f32 %v2447_v0, 0.0  ;;  %v2449_v30 = vadd.f32 %v2433_v18, %v2062_v10  ;;  %v1902_v51 = vmul.f32 %v4346_v54, %v5630_v20 }
 0x2ae   :  { %v2432_v32 = vmul.f32 %v2416_v56, %v1960_v5 }
 0x2af   :  { %v5685_v59 = vpack.c.bf16 %v2463_v3, %v2111_v17  ;;  %v2465_v9 = vmax.f32 %v2449_v30, 0.0  ;;  %v2000_v41 = vmul.f32 %v1968_v23, %v1902_v51 }
 0x2b0   :  { %v2448_v45 = vadd.f32 %v2432_v32, %v2058_v11 }
 0x2b1   :  { %v5690_v15 = vpack.c.bf16 %v2465_v9, %v2113_v57  ;;  %v2098_v13 = vadd.f32 %v2066_v43, %v2000_v41 }
 0x2b2   :  { %v2464_v44 = vmax.f32 %v2448_v45, 0.0 }
 0x2b3   :  { %v2114_v26 = vmax.f32 %v2098_v13, 0.0 }
 0x2b4   :  { %v5694_v19 = vpack.c.bf16 %v2464_v44, %v2112_v16  ;;  %v4348_v48 = vpop.eup %4347 }
 0x2b5   :  { %v2418_v58 = vmul.f32 %v4348_v48, %v5663_v24 }
 0x2b7   :  { %v2434_v53 = vmul.f32 %v2418_v58, %v1968_v23 }
 0x2b9   :  { %v2450_v20 = vadd.f32 %v2434_v53, %v2066_v43 }
 0x2bb   :  { %v2466_v40 = vmax.f32 %v2450_v20, 0.0 }
 0x2bd   :  { %v5697_v21 = vpack.c.bf16 %v2466_v40, %v2114_v26 }
 0x2be   :  { %4654 = dma.done.wait [#allocation3], 65536 }
 0x2bf   :  { %4655 = vsyncadd [#allocation3], 4294901760  ;;  %3053 = vmatprep.mubr.bf16.mxu0 %v5292_v50  ;;  %3397 = vmatprep.mubr.bf16.mxu1 %v5292_v50  ;;  %v5958_v8 = vmov 0   ;;  %v2488_v14 = vld [vmem:[#allocation2 + $0x8] sm:$0xff]  ;;  %v2490_v27 = vld [vmem:[#allocation2 + $0x18] sm:$0xff]  ;;  %vm3988_vm2 = vcmask 7168  }
 0x2c0   :  { %4350 = vset.pattern.permute.xlu1 %v5958_v8  ;;  %4351 = vset.pattern.permute.xlu0 %v5958_v8  ;;  %v2487_v24 = vld [vmem:[#allocation2] sm:$0xff]  ;;  %v2489_v25 = vld [vmem:[#allocation2 + $0x10] sm:$0xff]  ;;  %v2492_v33 = vld [vmem:[#allocation2 + $0x28] sm:$0xff]  ;;  %s4680_s7 = smov [#allocation23]  }
 0x2c1   :  { %3021 = vmatprep.subr.bf16.mxu0 %v2488_v14  ;;  %3365 = vmatprep.subr.bf16.mxu1 %v2490_v27  ;;  %v2494_v61 = vld [vmem:[#allocation2 + $0x38] sm:$0xff]  ;;  %v2491_v38 = vld [vmem:[#allocation2 + $0x20] sm:$0xff]  ;;  %v2493_v42 = vld [vmem:[#allocation2 + $0x30] sm:$0xff]  ;;  %s4060_s16 = sshll.u32 %s4680_s7, 4  ;;  %s4061_s16 = int_to_ptr.vmem [resolvable:$true] %s4060_s16 }
 0x2c2   :  { %3022 = vmatpush1.bf16.msra.mxu0 %v2487_v24  ;;  %3366 = vmatpush1.bf16.msra.mxu1 %v2489_v25  ;;  %v2496_v46 = vld [vmem:[#allocation2 + $0x48] sm:$0xff]  ;;  %v2498_v50 = vld [vmem:[#allocation2 + $0x58] sm:$0xff]  ;;  %v2495_v39 = vld [vmem:[#allocation2 + $0x40] sm:$0xff]  ;;  %s4620_s10 = scalar_lea.vmem %s4061_s16, 16  ;;  %s4624_s6 = scalar_lea.vmem %s4061_s16, 32 }
 0x2c3   :  { %3023 = vmatprep.subr.bf16.mxu0 %v2492_v33  ;;  %3367 = vmatprep.subr.bf16.mxu1 %v2494_v61  ;;  %v2497_v37 = vld [vmem:[#allocation2 + $0x50] sm:$0xff]  ;;  %v2500_v28 = vld [vmem:[#allocation2 + $0x68] sm:$0xff]  ;;  %v2502_v5 = vld [vmem:[#allocation2 + $0x78] sm:$0xff]  ;;  %p4621_p4 = scmp.ne.s32.totalorder %s4061_s16, %s4620_s10  ;;  %p4625_p5 = scmp.lt.s32.totalorder %s4061_s16, %s4061_s16 }
 0x2c4   :  { %v2499_v12 = vld [vmem:[#allocation2 + $0x60] sm:$0xff]  ;;  %v2501_v10 = vld [vmem:[#allocation2 + $0x70] sm:$0xff]  ;;  %v2504_v49 = vld [vmem:[#allocation2 + $0x88] sm:$0xff]  ;;  %p4626_p6 = scmp.lt.s32.totalorder %s4624_s6, %s4620_s10 }
 0x2c5   :  { %v2506_v47 = vld [vmem:[#allocation2 + $0x98] sm:$0xff]  ;;  %v2503_v2 = vld [vmem:[#allocation2 + $0x80] sm:$0xff]  ;;  %v2505_v22 = vld [vmem:[#allocation2 + $0x90] sm:$0xff] }
 0x2c6   :  { %3024 = vmatpush1.bf16.msra.mxu0 %v2491_v38  ;;  %3368 = vmatpush1.bf16.msra.mxu1 %v2493_v42  ;;  %v2508_v1 = vld [vmem:[#allocation2 + $0xa8] sm:$0xff]  ;;  %v2510_v60 = vld [vmem:[#allocation2 + $0xb8] sm:$0xff]  ;;  %v2507_v4 = vld [vmem:[#allocation2 + $0xa0] sm:$0xff]  ;;  %p4627_p7 = por %p4626_p6, %p4625_p5 }
 0x2c7   :  { %3025 = vmatprep.subr.bf16.mxu0 %v2496_v46  ;;  %3369 = vmatprep.subr.bf16.mxu1 %v2498_v50  ;;  %v2509_v52 = vld [vmem:[#allocation2 + $0xb0] sm:$0xff]  ;;  %v2512_v11 = vld [vmem:[#allocation2 + $0xc8] sm:$0xff]  ;;  %v2514_v36 = vld [vmem:[#allocation2 + $0xd8] sm:$0xff] }
 0x2c8   :  { %v2511_v63 = vld [vmem:[#allocation2 + $0xc0] sm:$0xff]  ;;  %v2513_v0 = vld [vmem:[#allocation2 + $0xd0] sm:$0xff]  ;;  %v2516_v18 = vld [vmem:[#allocation2 + $0xe8] sm:$0xff]  ;;  %p4628_p8 = pnand %p4627_p7, %p4621_p4 }
 0x2c9   :  { %v2518_v56 = vld [vmem:[#allocation2 + $0xf8] sm:$0xff]  ;;  %v2515_v54 = vld [vmem:[#allocation2 + $0xe0] sm:$0xff]  ;;  %v2517_v17 = vld [vmem:[#allocation2 + $0xf0] sm:$0xff] }
 0x2ca   :  { %3026 = vmatpush1.bf16.msra.mxu0 %v2495_v39  ;;  %3370 = vmatpush1.bf16.msra.mxu1 %v2497_v37  ;;  %v2520_v3 = vld [vmem:[#allocation2 + $0x108] sm:$0xff]  ;;  %v2522_v30 = vld [vmem:[#allocation2 + $0x118] sm:$0xff]  ;;  %v2519_v62 = vld [vmem:[#allocation2 + $0x100] sm:$0xff] }
 0x2cb   :  { %3027 = vmatprep.subr.bf16.mxu0 %v2500_v28  ;;  %3371 = vmatprep.subr.bf16.mxu1 %v2502_v5  ;;  %v2521_v32 = vld [vmem:[#allocation2 + $0x110] sm:$0xff]  ;;  %v2524_v57 = vld [vmem:[#allocation2 + $0x128] sm:$0xff]  ;;  %v2526_v9 = vld [vmem:[#allocation2 + $0x138] sm:$0xff] }
 0x2cc   :  { %v2523_v51 = vld [vmem:[#allocation2 + $0x120] sm:$0xff]  ;;  %v2525_v23 = vld [vmem:[#allocation2 + $0x130] sm:$0xff]  ;;  %v2528_v45 = vld [vmem:[#allocation2 + $0x148] sm:$0xff] }
 0x2cd   :  { %v2530_v16 = vld [vmem:[#allocation2 + $0x158] sm:$0xff]  ;;  %v2527_v44 = vld [vmem:[#allocation2 + $0x140] sm:$0xff]  ;;  %v2529_v41 = vld [vmem:[#allocation2 + $0x150] sm:$0xff] }
 0x2ce   :  { %3028 = vmatpush1.bf16.msra.mxu0 %v2499_v12  ;;  %3372 = vmatpush1.bf16.msra.mxu1 %v2501_v10  ;;  %v2532_v43 = vld [vmem:[#allocation2 + $0x168] sm:$0xff]  ;;  %v2534_v48 = vld [vmem:[#allocation2 + $0x178] sm:$0xff]  ;;  %v2531_v58 = vld [vmem:[#allocation2 + $0x160] sm:$0xff] }
 0x2cf   :  { %3029 = vmatprep.subr.bf16.mxu0 %v2504_v49  ;;  %3373 = vmatprep.subr.bf16.mxu1 %v2506_v47  ;;  %v2533_v13 = vld [vmem:[#allocation2 + $0x170] sm:$0xff]  ;;  %v2536_v53 = vld [vmem:[#allocation2 + $0x188] sm:$0xff]  ;;  %v2538_v20 = vld [vmem:[#allocation2 + $0x198] sm:$0xff] }
 0x2d0   :  { %v2535_v26 = vld [vmem:[#allocation2 + $0x180] sm:$0xff]  ;;  %v2537_v40 = vld [vmem:[#allocation2 + $0x190] sm:$0xff]  ;;  %v2540_v8 = vld [vmem:[#allocation2 + $0x1a8] sm:$0xff] }
 0x2d1   :  { %v2542_v14 = vld [vmem:[#allocation2 + $0x1b8] sm:$0xff]  ;;  %v2539_v27 = vld [vmem:[#allocation2 + $0x1a0] sm:$0xff]  ;;  %v2541_v24 = vld [vmem:[#allocation2 + $0x1b0] sm:$0xff] }
 0x2d2   :  { %3030 = vmatpush1.bf16.msra.mxu0 %v2503_v2  ;;  %3374 = vmatpush1.bf16.msra.mxu1 %v2505_v22  ;;  %v2544_v25 = vld [vmem:[#allocation2 + $0x1c8] sm:$0xff]  ;;  %v2546_v33 = vld [vmem:[#allocation2 + $0x1d8] sm:$0xff]  ;;  %v2543_v61 = vld [vmem:[#allocation2 + $0x1c0] sm:$0xff] }
 0x2d3   :  { %3031 = vmatprep.subr.bf16.mxu0 %v2508_v1  ;;  %3375 = vmatprep.subr.bf16.mxu1 %v2510_v60  ;;  %v2545_v38 = vld [vmem:[#allocation2 + $0x1d0] sm:$0xff]  ;;  %v2548_v42 = vld [vmem:[#allocation2 + $0x1e8] sm:$0xff]  ;;  %v2550_v46 = vld [vmem:[#allocation2 + $0x1f8] sm:$0xff] }
 0x2d4   :  { %v2547_v50 = vld [vmem:[#allocation2 + $0x1e0] sm:$0xff]  ;;  %v2549_v39 = vld [vmem:[#allocation2 + $0x1f0] sm:$0xff]  ;;  %v2552_v37 = vld [vmem:[#allocation2 + $0x208] sm:$0xff] }
 0x2d5   :  { %v2554_v28 = vld [vmem:[#allocation2 + $0x218] sm:$0xff]  ;;  %v2551_v5 = vld [vmem:[#allocation2 + $0x200] sm:$0xff]  ;;  %v2553_v12 = vld [vmem:[#allocation2 + $0x210] sm:$0xff] }
 0x2d6   :  { %3032 = vmatpush1.bf16.msra.mxu0 %v2507_v4  ;;  %3376 = vmatpush1.bf16.msra.mxu1 %v2509_v52  ;;  %v2556_v10 = vld [vmem:[#allocation2 + $0x228] sm:$0xff]  ;;  %v2558_v49 = vld [vmem:[#allocation2 + $0x238] sm:$0xff]  ;;  %v2555_v47 = vld [vmem:[#allocation2 + $0x220] sm:$0xff] }
 0x2d7   :  { %3033 = vmatprep.subr.bf16.mxu0 %v2512_v11  ;;  %3377 = vmatprep.subr.bf16.mxu1 %v2514_v36  ;;  %v2557_v2 = vld [vmem:[#allocation2 + $0x230] sm:$0xff]  ;;  %v2560_v22 = vld [vmem:[#allocation2 + $0x248] sm:$0xff]  ;;  %v2562_v1 = vld [vmem:[#allocation2 + $0x258] sm:$0xff] }
 0x2d8   :  { %v2559_v60 = vld [vmem:[#allocation2 + $0x240] sm:$0xff]  ;;  %v2561_v4 = vld [vmem:[#allocation2 + $0x250] sm:$0xff]  ;;  %v2564_v52 = vld [vmem:[#allocation2 + $0x268] sm:$0xff] }
 0x2d9   :  { %v2563_v11 = vld [vmem:[#allocation2 + $0x260] sm:$0xff]  ;;  %v2565_v36 = vld [vmem:[#allocation2 + $0x270] sm:$0xff] }
 0x2da   :  { %3034 = vmatpush1.bf16.msra.mxu0 %v2511_v63  ;;  %3378 = vmatpush1.bf16.msra.mxu1 %v2513_v0  ;;  %v2568_v63 = vld [vmem:[#allocation2 + $0x288] sm:$0xff]  ;;  %v2570_v0 = vld [vmem:[#allocation2 + $0x298] sm:$0xff] }
 0x2db   :  { %3035 = vmatprep.subr.bf16.mxu0 %v2516_v18  ;;  %3379 = vmatprep.subr.bf16.mxu1 %v2518_v56  ;;  %v2569_v18 = vld [vmem:[#allocation2 + $0x290] sm:$0xff]  ;;  %v2572_v56 = vld [vmem:[#allocation2 + $0x2a8] sm:$0xff] }
 0x2de   :  { %3036 = vmatpush1.bf16.msra.mxu0 %v2515_v54  ;;  %3380 = vmatpush1.bf16.msra.mxu1 %v2517_v17  ;;  %v2574_v54 = vld [vmem:[#allocation2 + $0x2b8] sm:$0xff]  ;;  %v2571_v17 = vld [vmem:[#allocation2 + $0x2a0] sm:$0xff] }
 0x2df   :  { %3037 = vmatprep.subr.bf16.mxu0 %v2520_v3  ;;  %3381 = vmatprep.subr.bf16.mxu1 %v2522_v30  ;;  %v2573_v3 = vld [vmem:[#allocation2 + $0x2b0] sm:$0xff]  ;;  %v2576_v30 = vld [vmem:[#allocation2 + $0x2c8] sm:$0xff] }
 0x2e2   :  { %3038 = vmatpush1.bf16.msra.mxu0 %v2519_v62  ;;  %3382 = vmatpush1.bf16.msra.mxu1 %v2521_v32  ;;  %v2578_v62 = vld [vmem:[#allocation2 + $0x2d8] sm:$0xff]  ;;  %v2575_v32 = vld [vmem:[#allocation2 + $0x2c0] sm:$0xff] }
 0x2e3   :  { %3039 = vmatprep.subr.bf16.mxu0 %v2524_v57  ;;  %3383 = vmatprep.subr.bf16.mxu1 %v2526_v9  ;;  %v2577_v57 = vld [vmem:[#allocation2 + $0x2d0] sm:$0xff]  ;;  %v2580_v9 = vld [vmem:[#allocation2 + $0x2e8] sm:$0xff] }
 0x2e6   :  { %3040 = vmatpush1.bf16.msra.mxu0 %v2523_v51  ;;  %3384 = vmatpush1.bf16.msra.mxu1 %v2525_v23  ;;  %v2582_v51 = vld [vmem:[#allocation2 + $0x2f8] sm:$0xff]  ;;  %v2579_v23 = vld [vmem:[#allocation2 + $0x2e0] sm:$0xff] }
 0x2e7   :  { %3041 = vmatprep.subr.bf16.mxu0 %v2528_v45  ;;  %3385 = vmatprep.subr.bf16.mxu1 %v2530_v16  ;;  %v2581_v45 = vld [vmem:[#allocation2 + $0x2f0] sm:$0xff]  ;;  %v2584_v16 = vld [vmem:[#allocation2 + $0x308] sm:$0xff] }
 0x2ea   :  { %3042 = vmatpush1.bf16.msra.mxu0 %v2527_v44  ;;  %3386 = vmatpush1.bf16.msra.mxu1 %v2529_v41  ;;  %v2586_v44 = vld [vmem:[#allocation2 + $0x318] sm:$0xff]  ;;  %v2583_v41 = vld [vmem:[#allocation2 + $0x300] sm:$0xff] }
 0x2eb   :  { %3043 = vmatprep.subr.bf16.mxu0 %v2532_v43  ;;  %3387 = vmatprep.subr.bf16.mxu1 %v2534_v48  ;;  %v2585_v43 = vld [vmem:[#allocation2 + $0x310] sm:$0xff]  ;;  %v2588_v48 = vld [vmem:[#allocation2 + $0x328] sm:$0xff] }
 0x2ee   :  { %3044 = vmatpush1.bf16.msra.mxu0 %v2531_v58  ;;  %3388 = vmatpush1.bf16.msra.mxu1 %v2533_v13  ;;  %v2590_v58 = vld [vmem:[#allocation2 + $0x338] sm:$0xff]  ;;  %v2587_v13 = vld [vmem:[#allocation2 + $0x320] sm:$0xff] }
 0x2ef   :  { %3045 = vmatprep.subr.bf16.mxu0 %v2536_v53  ;;  %3389 = vmatprep.subr.bf16.mxu1 %v2538_v20  ;;  %v2589_v53 = vld [vmem:[#allocation2 + $0x330] sm:$0xff]  ;;  %v2592_v20 = vld [vmem:[#allocation2 + $0x348] sm:$0xff] }
 0x2f2   :  { %3046 = vmatpush1.bf16.msra.mxu0 %v2535_v26  ;;  %3390 = vmatpush1.bf16.msra.mxu1 %v2537_v40  ;;  %v2594_v26 = vld [vmem:[#allocation2 + $0x358] sm:$0xff]  ;;  %v2591_v40 = vld [vmem:[#allocation2 + $0x340] sm:$0xff] }
 0x2f3   :  { %3047 = vmatprep.subr.bf16.mxu0 %v2540_v8  ;;  %3391 = vmatprep.subr.bf16.mxu1 %v2542_v14  ;;  %v2593_v8 = vld [vmem:[#allocation2 + $0x350] sm:$0xff]  ;;  %v2596_v14 = vld [vmem:[#allocation2 + $0x368] sm:$0xff] }
 0x2f6   :  { %3048 = vmatpush1.bf16.msra.mxu0 %v2539_v27  ;;  %3392 = vmatpush1.bf16.msra.mxu1 %v2541_v24  ;;  %v2598_v27 = vld [vmem:[#allocation2 + $0x378] sm:$0xff]  ;;  %v2595_v24 = vld [vmem:[#allocation2 + $0x360] sm:$0xff] }
 0x2f7   :  { %3049 = vmatprep.subr.bf16.mxu0 %v2544_v25  ;;  %3393 = vmatprep.subr.bf16.mxu1 %v2546_v33  ;;  %v2597_v25 = vld [vmem:[#allocation2 + $0x370] sm:$0xff]  ;;  %v2600_v33 = vld [vmem:[#allocation2 + $0x388] sm:$0xff] }
 0x2fa   :  { %3050 = vmatpush1.bf16.msra.mxu0 %v2543_v61  ;;  %3394 = vmatpush1.bf16.msra.mxu1 %v2545_v38  ;;  %v2602_v61 = vld [vmem:[#allocation2 + $0x398] sm:$0xff]  ;;  %v2599_v38 = vld [vmem:[#allocation2 + $0x380] sm:$0xff] }
 0x2fb   :  { %3051 = vmatprep.subr.bf16.mxu0 %v2548_v42  ;;  %3395 = vmatprep.subr.bf16.mxu1 %v2550_v46  ;;  %v2601_v42 = vld [vmem:[#allocation2 + $0x390] sm:$0xff]  ;;  %v2604_v46 = vld [vmem:[#allocation2 + $0x3a8] sm:$0xff] }
 0x2fe   :  { %3052 = vmatpush1.bf16.msra.mxu0 %v2547_v50  ;;  %3396 = vmatpush1.bf16.msra.mxu1 %v2549_v39  ;;  %v2606_v50 = vld [vmem:[#allocation2 + $0x3b8] sm:$0xff]  ;;  %v2603_v39 = vld [vmem:[#allocation2 + $0x3a0] sm:$0xff] }
 0x2ff   :  { %3064 = vmatprep.subr.bf16.mxu0 %v2552_v37  ;;  %3408 = vmatprep.subr.bf16.mxu1 %v2554_v28  ;;  %v2605_v37 = vld [vmem:[#allocation2 + $0x3b0] sm:$0xff]  ;;  %v2608_v28 = vld [vmem:[#allocation2 + $0x3c8] sm:$0xff] }
 0x301   :  { %3054 = vmatmul.mubr.bf16.vlgmr.msra.gmra.mrb[32].mxu0 %v5284_v7  ;;  %3398 = vmatmul.mubr.bf16.vlgmr.msra.gmra.mrb[32].mxu1 %v5284_v7  ;;  %v2566_v7 = vld [vmem:[#allocation2 + $0x278] sm:$0xff] }
 0x302   :  { %3065 = vmatpush1.bf16.msra.mxu0 %v2551_v5  ;;  %3409 = vmatpush1.bf16.msra.mxu1 %v2553_v12  ;;  %v2610_v5 = vld [vmem:[#allocation2 + $0x3d8] sm:$0xff]  ;;  %v2607_v12 = vld [vmem:[#allocation2 + $0x3c0] sm:$0xff] }
 0x303   :  { %3066 = vmatprep.subr.bf16.mxu0 %v2556_v10  ;;  %3410 = vmatprep.subr.bf16.mxu1 %v2558_v49  ;;  %v2609_v10 = vld [vmem:[#allocation2 + $0x3d0] sm:$0xff]  ;;  %v2612_v49 = vld [vmem:[#allocation2 + $0x3e8] sm:$0xff] }
 0x304   :  { %3096 = vmatprep.mubr.bf16.mxu0 %v5300_v6  ;;  %3440 = vmatprep.mubr.bf16.mxu1 %v5300_v6  ;;  %v2567_v6 = vld [vmem:[#allocation2 + $0x280] sm:$0xff] }
 0x306   :  { %3067 = vmatpush1.bf16.msra.mxu0 %v2555_v47  ;;  %3411 = vmatpush1.bf16.msra.mxu1 %v2557_v2  ;;  %v2614_v47 = vld [vmem:[#allocation2 + $0x3f8] sm:$0xff]  ;;  %v2611_v2 = vld [vmem:[#allocation2 + $0x3e0] sm:$0xff] }
 0x307   :  { %3068 = vmatprep.subr.bf16.mxu0 %v2560_v22  ;;  %3412 = vmatprep.subr.bf16.mxu1 %v2562_v1  ;;  %v2613_v22 = vld [vmem:[#allocation2 + $0x3f0] sm:$0xff]  ;;  %v2616_v1 = vld [vmem:[#allocation2 + $0x408] sm:$0xff] }
 0x30a   :  { %3069 = vmatpush1.bf16.msra.mxu0 %v2559_v60  ;;  %3413 = vmatpush1.bf16.msra.mxu1 %v2561_v4  ;;  %v2618_v60 = vld [vmem:[#allocation2 + $0x418] sm:$0xff]  ;;  %v2615_v4 = vld [vmem:[#allocation2 + $0x400] sm:$0xff] }
 0x30b   :  { %3070 = vmatprep.subr.bf16.mxu0 %v2564_v52  ;;  %3414 = vmatprep.subr.bf16.mxu1 %v2566_v7  ;;  %v2617_v52 = vld [vmem:[#allocation2 + $0x410] sm:$0xff]  ;;  %v2620_v7 = vld [vmem:[#allocation2 + $0x428] sm:$0xff] }
 0x30e   :  { %3071 = vmatpush1.bf16.msra.mxu0 %v2563_v11  ;;  %3415 = vmatpush1.bf16.msra.mxu1 %v2565_v36  ;;  %v2622_v11 = vld [vmem:[#allocation2 + $0x438] sm:$0xff]  ;;  %v2619_v36 = vld [vmem:[#allocation2 + $0x420] sm:$0xff] }
 0x30f   :  { %3072 = vmatprep.subr.bf16.mxu0 %v2568_v63  ;;  %3416 = vmatprep.subr.bf16.mxu1 %v2570_v0  ;;  %v2621_v63 = vld [vmem:[#allocation2 + $0x430] sm:$0xff]  ;;  %v2624_v0 = vld [vmem:[#allocation2 + $0x448] sm:$0xff] }
 0x312   :  { %3073 = vmatpush1.bf16.msra.mxu0 %v2567_v6  ;;  %3417 = vmatpush1.bf16.msra.mxu1 %v2569_v18  ;;  %v2626_v6 = vld [vmem:[#allocation2 + $0x458] sm:$0xff]  ;;  %v5959_v18 = vld [vmem:[#allocation46_spill] sm:$0xff] }
 0x313   :  { %3074 = vmatprep.subr.bf16.mxu0 %v2572_v56  ;;  %3418 = vmatprep.subr.bf16.mxu1 %v2574_v54  ;;  %v2623_v56 = vld [vmem:[#allocation2 + $0x440] sm:$0xff]  ;;  %v2625_v54 = vld [vmem:[#allocation2 + $0x450] sm:$0xff] }
 0x316   :  { %3075 = vmatpush1.bf16.msra.mxu0 %v2571_v17  ;;  %3419 = vmatpush1.bf16.msra.mxu1 %v2573_v3  ;;  %v2628_v17 = vld [vmem:[#allocation2 + $0x468] sm:$0xff]  ;;  %v2627_v3 = vld [vmem:[#allocation2 + $0x460] sm:$0xff] }
 0x317   :  { %3076 = vmatprep.subr.bf16.mxu0 %v2576_v30  ;;  %3420 = vmatprep.subr.bf16.mxu1 %v2578_v62  ;;  %v2629_v30 = vld [vmem:[#allocation2 + $0x470] sm:$0xff]  ;;  %v2632_v62 = vld [vmem:[#allocation2 + $0x488] sm:$0xff] }
 0x31a   :  { %3077 = vmatpush1.bf16.msra.mxu0 %v2575_v32  ;;  %3421 = vmatpush1.bf16.msra.mxu1 %v2577_v57  ;;  %v2634_v32 = vld [vmem:[#allocation2 + $0x498] sm:$0xff]  ;;  %v2631_v57 = vld [vmem:[#allocation2 + $0x480] sm:$0xff] }
 0x31b   :  { %3078 = vmatprep.subr.bf16.mxu0 %v2580_v9  ;;  %3422 = vmatprep.subr.bf16.mxu1 %v2582_v51  ;;  %v2633_v9 = vld [vmem:[#allocation2 + $0x490] sm:$0xff]  ;;  %v2636_v51 = vld [vmem:[#allocation2 + $0x4a8] sm:$0xff] }
 0x31e   :  { %3079 = vmatpush1.bf16.msra.mxu0 %v2579_v23  ;;  %3423 = vmatpush1.bf16.msra.mxu1 %v2581_v45  ;;  %v2638_v23 = vld [vmem:[#allocation2 + $0x4b8] sm:$0xff]  ;;  %v2635_v45 = vld [vmem:[#allocation2 + $0x4a0] sm:$0xff] }
 0x31f   :  { %3080 = vmatprep.subr.bf16.mxu0 %v2584_v16  ;;  %3424 = vmatprep.subr.bf16.mxu1 %v2586_v44  ;;  %v2637_v16 = vld [vmem:[#allocation2 + $0x4b0] sm:$0xff]  ;;  %v2640_v44 = vld [vmem:[#allocation2 + $0x4c8] sm:$0xff] }
 0x322   :  { %3081 = vmatpush1.bf16.msra.mxu0 %v2583_v41  ;;  %3425 = vmatpush1.bf16.msra.mxu1 %v2585_v43  ;;  %v2642_v41 = vld [vmem:[#allocation2 + $0x4d8] sm:$0xff]  ;;  %v2639_v43 = vld [vmem:[#allocation2 + $0x4c0] sm:$0xff] }
 0x323   :  { %3082 = vmatprep.subr.bf16.mxu0 %v2588_v48  ;;  %3426 = vmatprep.subr.bf16.mxu1 %v2590_v58  ;;  %v2641_v48 = vld [vmem:[#allocation2 + $0x4d0] sm:$0xff]  ;;  %v2644_v58 = vld [vmem:[#allocation2 + $0x4e8] sm:$0xff] }
 0x326   :  { %3083 = vmatpush1.bf16.msra.mxu0 %v2587_v13  ;;  %3427 = vmatpush1.bf16.msra.mxu1 %v2589_v53  ;;  %v2646_v13 = vld [vmem:[#allocation2 + $0x4f8] sm:$0xff]  ;;  %v2643_v53 = vld [vmem:[#allocation2 + $0x4e0] sm:$0xff] }
 0x327   :  { %3084 = vmatprep.subr.bf16.mxu0 %v2592_v20  ;;  %3428 = vmatprep.subr.bf16.mxu1 %v2594_v26  ;;  %v2645_v20 = vld [vmem:[#allocation2 + $0x4f0] sm:$0xff]  ;;  %v2648_v26 = vld [vmem:[#allocation2 + $0x508] sm:$0xff] }
 0x32a   :  { %3085 = vmatpush1.bf16.msra.mxu0 %v2591_v40  ;;  %3429 = vmatpush1.bf16.msra.mxu1 %v2593_v8  ;;  %v2650_v40 = vld [vmem:[#allocation2 + $0x518] sm:$0xff]  ;;  %v2647_v8 = vld [vmem:[#allocation2 + $0x500] sm:$0xff] }
 0x32b   :  { %3086 = vmatprep.subr.bf16.mxu0 %v2596_v14  ;;  %3430 = vmatprep.subr.bf16.mxu1 %v2598_v27  ;;  %v2649_v14 = vld [vmem:[#allocation2 + $0x510] sm:$0xff]  ;;  %v2652_v27 = vld [vmem:[#allocation2 + $0x528] sm:$0xff] }
 0x32e   :  { %3087 = vmatpush1.bf16.msra.mxu0 %v2595_v24  ;;  %3431 = vmatpush1.bf16.msra.mxu1 %v2597_v25  ;;  %v2654_v24 = vld [vmem:[#allocation2 + $0x538] sm:$0xff]  ;;  %v2651_v25 = vld [vmem:[#allocation2 + $0x520] sm:$0xff] }
 0x32f   :  { %3088 = vmatprep.subr.bf16.mxu0 %v2600_v33  ;;  %3432 = vmatprep.subr.bf16.mxu1 %v2602_v61  ;;  %v2653_v33 = vld [vmem:[#allocation2 + $0x530] sm:$0xff]  ;;  %v2656_v61 = vld [vmem:[#allocation2 + $0x548] sm:$0xff] }
 0x332   :  { %3089 = vmatpush1.bf16.msra.mxu0 %v2599_v38  ;;  %3433 = vmatpush1.bf16.msra.mxu1 %v2601_v42  ;;  %v2658_v38 = vld [vmem:[#allocation2 + $0x558] sm:$0xff]  ;;  %v2655_v42 = vld [vmem:[#allocation2 + $0x540] sm:$0xff] }
 0x333   :  { %3090 = vmatprep.subr.bf16.mxu0 %v2604_v46  ;;  %3434 = vmatprep.subr.bf16.mxu1 %v2606_v50  ;;  %v2657_v46 = vld [vmem:[#allocation2 + $0x550] sm:$0xff]  ;;  %v2660_v50 = vld [vmem:[#allocation2 + $0x568] sm:$0xff] }
 0x336   :  { %3091 = vmatpush1.bf16.msra.mxu0 %v2603_v39  ;;  %3435 = vmatpush1.bf16.msra.mxu1 %v2605_v37  ;;  %v2662_v39 = vld [vmem:[#allocation2 + $0x578] sm:$0xff]  ;;  %v2659_v37 = vld [vmem:[#allocation2 + $0x560] sm:$0xff] }
 0x337   :  { %3092 = vmatprep.subr.bf16.mxu0 %v2608_v28  ;;  %3436 = vmatprep.subr.bf16.mxu1 %v2610_v5  ;;  %v2661_v28 = vld [vmem:[#allocation2 + $0x570] sm:$0xff]  ;;  %v2664_v5 = vld [vmem:[#allocation2 + $0x588] sm:$0xff] }
 0x33a   :  { %3093 = vmatpush1.bf16.msra.mxu0 %v2607_v12  ;;  %3437 = vmatpush1.bf16.msra.mxu1 %v2609_v10  ;;  %v2666_v12 = vld [vmem:[#allocation2 + $0x598] sm:$0xff]  ;;  %v2663_v10 = vld [vmem:[#allocation2 + $0x580] sm:$0xff] }
 0x33b   :  { %3094 = vmatprep.subr.bf16.mxu0 %v2612_v49  ;;  %3438 = vmatprep.subr.bf16.mxu1 %v2614_v47  ;;  %v2665_v49 = vld [vmem:[#allocation2 + $0x590] sm:$0xff]  ;;  %v2668_v47 = vld [vmem:[#allocation2 + $0x5a8] sm:$0xff] }
 0x33e   :  { %3095 = vmatpush1.bf16.msra.mxu0 %v2611_v2  ;;  %3439 = vmatpush1.bf16.msra.mxu1 %v2613_v22  ;;  %v2670_v2 = vld [vmem:[#allocation2 + $0x5b8] sm:$0xff]  ;;  %v2667_v22 = vld [vmem:[#allocation2 + $0x5a0] sm:$0xff] }
 0x33f   :  { %3107 = vmatprep.subr.bf16.mxu0 %v2616_v1  ;;  %3451 = vmatprep.subr.bf16.mxu1 %v2618_v60  ;;  %v2669_v1 = vld [vmem:[#allocation2 + $0x5b0] sm:$0xff]  ;;  %v2672_v60 = vld [vmem:[#allocation2 + $0x5c8] sm:$0xff] }
 0x341   :  { %3097 = vmatmul.mubr.bf16.vlgmr.msra.gmra.mrb[32].mxu0 %v5288_v34  ;;  %3441 = vmatmul.mubr.bf16.vlgmr.msra.gmra.mrb[32].mxu1 %v5288_v34  ;;  %v2630_v34 = vld [vmem:[#allocation2 + $0x478] sm:$0xff] }
 0x342   :  { %3108 = vmatpush1.bf16.msra.mxu0 %v2615_v4  ;;  %3452 = vmatpush1.bf16.msra.mxu1 %v2617_v52  ;;  %v2674_v4 = vld [vmem:[#allocation2 + $0x5d8] sm:$0xff]  ;;  %v2671_v52 = vld [vmem:[#allocation2 + $0x5c0] sm:$0xff] }
 0x343   :  { %3109 = vmatprep.subr.bf16.mxu0 %v2620_v7  ;;  %3453 = vmatprep.subr.bf16.mxu1 %v2622_v11  ;;  %v2673_v7 = vld [vmem:[#allocation2 + $0x5d0] sm:$0xff]  ;;  %v2676_v11 = vld [vmem:[#allocation2 + $0x5e8] sm:$0xff] }
 0x344   :  { %3139 = vmatprep.mubr.bf16.mxu0 %v5959_v18  ;;  %3483 = vmatprep.mubr.bf16.mxu1 %v5959_v18  ;;  %v2682_v18 = vld [vmem:[#allocation2 + $0x618] sm:$0xff] }
 0x346   :  { %3110 = vmatpush1.bf16.msra.mxu0 %v2619_v36  ;;  %3454 = vmatpush1.bf16.msra.mxu1 %v2621_v63  ;;  %v2678_v36 = vld [vmem:[#allocation2 + $0x5f8] sm:$0xff]  ;;  %v2675_v63 = vld [vmem:[#allocation2 + $0x5e0] sm:$0xff] }
 0x347   :  { %3111 = vmatprep.subr.bf16.mxu0 %v2624_v0  ;;  %3455 = vmatprep.subr.bf16.mxu1 %v2626_v6  ;;  %v2677_v0 = vld [vmem:[#allocation2 + $0x5f0] sm:$0xff]  ;;  %v2680_v6 = vld [vmem:[#allocation2 + $0x608] sm:$0xff] }
 0x34a   :  { %3112 = vmatpush1.bf16.msra.mxu0 %v2623_v56  ;;  %3456 = vmatpush1.bf16.msra.mxu1 %v2625_v54  ;;  %v2679_v56 = vld [vmem:[#allocation2 + $0x600] sm:$0xff]  ;;  %v2681_v54 = vld [vmem:[#allocation2 + $0x610] sm:$0xff] }
 0x34b   :  { %3113 = vmatprep.subr.bf16.mxu0 %v2628_v17  ;;  %3457 = vmatprep.subr.bf16.mxu1 %v2630_v34  ;;  %v2684_v17 = vld [vmem:[#allocation2 + $0x628] sm:$0xff]  ;;  %v2686_v34 = vld [vmem:[#allocation2 + $0x638] sm:$0xff] }
 0x34e   :  { %3114 = vmatpush1.bf16.msra.mxu0 %v2627_v3  ;;  %3458 = vmatpush1.bf16.msra.mxu1 %v2629_v30  ;;  %v5960_v3 = vld [vmem:[#allocation56_spill] sm:$0xff] }
 0x34f   :  { %3115 = vmatprep.subr.bf16.mxu0 %v2632_v62  ;;  %3459 = vmatprep.subr.bf16.mxu1 %v2634_v32  ;;  %v2683_v30 = vld [vmem:[#allocation2 + $0x620] sm:$0xff]  ;;  %v2685_v62 = vld [vmem:[#allocation2 + $0x630] sm:$0xff]  ;;  %v2688_v32 = vld [vmem:[#allocation2 + $0x648] sm:$0xff] }
 0x352   :  { %3116 = vmatpush1.bf16.msra.mxu0 %v2631_v57  ;;  %3460 = vmatpush1.bf16.msra.mxu1 %v2633_v9  ;;  %v2690_v57 = vld [vmem:[#allocation2 + $0x658] sm:$0xff]  ;;  %v5961_v9 = vld [vmem:[#allocation50_spill] sm:$0xff] }
 0x353   :  { %3117 = vmatprep.subr.bf16.mxu0 %v2636_v51  ;;  %3461 = vmatprep.subr.bf16.mxu1 %v2638_v23  ;;  %v2687_v51 = vld [vmem:[#allocation2 + $0x640] sm:$0xff]  ;;  %v2689_v23 = vld [vmem:[#allocation2 + $0x650] sm:$0xff] }
 0x356   :  { %3118 = vmatpush1.bf16.msra.mxu0 %v2635_v45  ;;  %3462 = vmatpush1.bf16.msra.mxu1 %v2637_v16  ;;  %v2692_v45 = vld [vmem:[#allocation2 + $0x668] sm:$0xff]  ;;  %v2694_v16 = vld [vmem:[#allocation2 + $0x678] sm:$0xff] }
 0x357   :  { %3119 = vmatprep.subr.bf16.mxu0 %v2640_v44  ;;  %3463 = vmatprep.subr.bf16.mxu1 %v2642_v41  ;;  %v2691_v44 = vld [vmem:[#allocation2 + $0x660] sm:$0xff]  ;;  %v2693_v41 = vld [vmem:[#allocation2 + $0x670] sm:$0xff] }
 0x35a   :  { %3120 = vmatpush1.bf16.msra.mxu0 %v2639_v43  ;;  %3464 = vmatpush1.bf16.msra.mxu1 %v2641_v48  ;;  %v2696_v43 = vld [vmem:[#allocation2 + $0x688] sm:$0xff]  ;;  %v2698_v48 = vld [vmem:[#allocation2 + $0x698] sm:$0xff] }
 0x35b   :  { %3121 = vmatprep.subr.bf16.mxu0 %v2644_v58  ;;  %3465 = vmatprep.subr.bf16.mxu1 %v2646_v13  ;;  %v2695_v58 = vld [vmem:[#allocation2 + $0x680] sm:$0xff]  ;;  %v2697_v13 = vld [vmem:[#allocation2 + $0x690] sm:$0xff] }
 0x35e   :  { %3122 = vmatpush1.bf16.msra.mxu0 %v2643_v53  ;;  %3466 = vmatpush1.bf16.msra.mxu1 %v2645_v20  ;;  %v2700_v53 = vld [vmem:[#allocation2 + $0x6a8] sm:$0xff]  ;;  %v2702_v20 = vld [vmem:[#allocation2 + $0x6b8] sm:$0xff] }
 0x35f   :  { %3123 = vmatprep.subr.bf16.mxu0 %v2648_v26  ;;  %3467 = vmatprep.subr.bf16.mxu1 %v2650_v40  ;;  %v2699_v26 = vld [vmem:[#allocation2 + $0x6a0] sm:$0xff]  ;;  %v2701_v40 = vld [vmem:[#allocation2 + $0x6b0] sm:$0xff] }
 0x362   :  { %3124 = vmatpush1.bf16.msra.mxu0 %v2647_v8  ;;  %3468 = vmatpush1.bf16.msra.mxu1 %v2649_v14  ;;  %v2704_v8 = vld [vmem:[#allocation2 + $0x6c8] sm:$0xff]  ;;  %v2706_v14 = vld [vmem:[#allocation2 + $0x6d8] sm:$0xff] }
 0x363   :  { %3125 = vmatprep.subr.bf16.mxu0 %v2652_v27  ;;  %3469 = vmatprep.subr.bf16.mxu1 %v2654_v24  ;;  %v2703_v27 = vld [vmem:[#allocation2 + $0x6c0] sm:$0xff]  ;;  %v2705_v24 = vld [vmem:[#allocation2 + $0x6d0] sm:$0xff] }
 0x366   :  { %3126 = vmatpush1.bf16.msra.mxu0 %v2651_v25  ;;  %3470 = vmatpush1.bf16.msra.mxu1 %v2653_v33  ;;  %v2708_v25 = vld [vmem:[#allocation2 + $0x6e8] sm:$0xff]  ;;  %v2710_v33 = vld [vmem:[#allocation2 + $0x6f8] sm:$0xff] }
 0x367   :  { %3127 = vmatprep.subr.bf16.mxu0 %v2656_v61  ;;  %3471 = vmatprep.subr.bf16.mxu1 %v2658_v38  ;;  %v2707_v61 = vld [vmem:[#allocation2 + $0x6e0] sm:$0xff]  ;;  %v2709_v38 = vld [vmem:[#allocation2 + $0x6f0] sm:$0xff] }
 0x36a   :  { %3128 = vmatpush1.bf16.msra.mxu0 %v2655_v42  ;;  %3472 = vmatpush1.bf16.msra.mxu1 %v2657_v46  ;;  %v2712_v42 = vld [vmem:[#allocation2 + $0x708] sm:$0xff]  ;;  %v2714_v46 = vld [vmem:[#allocation2 + $0x718] sm:$0xff] }
 0x36b   :  { %3129 = vmatprep.subr.bf16.mxu0 %v2660_v50  ;;  %3473 = vmatprep.subr.bf16.mxu1 %v2662_v39  ;;  %v2711_v50 = vld [vmem:[#allocation2 + $0x700] sm:$0xff]  ;;  %v2713_v39 = vld [vmem:[#allocation2 + $0x710] sm:$0xff] }
 0x36e   :  { %3130 = vmatpush1.bf16.msra.mxu0 %v2659_v37  ;;  %3474 = vmatpush1.bf16.msra.mxu1 %v2661_v28  ;;  %v2716_v37 = vld [vmem:[#allocation2 + $0x728] sm:$0xff]  ;;  %v2718_v28 = vld [vmem:[#allocation2 + $0x738] sm:$0xff] }
 0x36f   :  { %3131 = vmatprep.subr.bf16.mxu0 %v2664_v5  ;;  %3475 = vmatprep.subr.bf16.mxu1 %v2666_v12  ;;  %v2715_v5 = vld [vmem:[#allocation2 + $0x720] sm:$0xff]  ;;  %v2717_v12 = vld [vmem:[#allocation2 + $0x730] sm:$0xff] }
 0x372   :  { %3132 = vmatpush1.bf16.msra.mxu0 %v2663_v10  ;;  %3476 = vmatpush1.bf16.msra.mxu1 %v2665_v49  ;;  %v2720_v10 = vld [vmem:[#allocation2 + $0x748] sm:$0xff]  ;;  %v2722_v49 = vld [vmem:[#allocation2 + $0x758] sm:$0xff] }
 0x373   :  { %3133 = vmatprep.subr.bf16.mxu0 %v2668_v47  ;;  %3477 = vmatprep.subr.bf16.mxu1 %v2670_v2  ;;  %v2719_v47 = vld [vmem:[#allocation2 + $0x740] sm:$0xff]  ;;  %v2721_v2 = vld [vmem:[#allocation2 + $0x750] sm:$0xff] }
 0x376   :  { %3134 = vmatpush1.bf16.msra.mxu0 %v2667_v22  ;;  %3478 = vmatpush1.bf16.msra.mxu1 %v2669_v1  ;;  %v2724_v22 = vld [vmem:[#allocation2 + $0x768] sm:$0xff]  ;;  %v2726_v1 = vld [vmem:[#allocation2 + $0x778] sm:$0xff] }
 0x377   :  { %3135 = vmatprep.subr.bf16.mxu0 %v2672_v60  ;;  %3479 = vmatprep.subr.bf16.mxu1 %v2674_v4  ;;  %v2723_v60 = vld [vmem:[#allocation2 + $0x760] sm:$0xff]  ;;  %v2725_v4 = vld [vmem:[#allocation2 + $0x770] sm:$0xff] }
 0x37a   :  { %3136 = vmatpush1.bf16.msra.mxu0 %v2671_v52  ;;  %3480 = vmatpush1.bf16.msra.mxu1 %v2673_v7  ;;  %v2728_v52 = vld [vmem:[#allocation2 + $0x788] sm:$0xff]  ;;  %v2730_v7 = vld [vmem:[#allocation2 + $0x798] sm:$0xff] }
 0x37b   :  { %3137 = vmatprep.subr.bf16.mxu0 %v2676_v11  ;;  %3481 = vmatprep.subr.bf16.mxu1 %v2678_v36  ;;  %v2727_v11 = vld [vmem:[#allocation2 + $0x780] sm:$0xff]  ;;  %v2729_v36 = vld [vmem:[#allocation2 + $0x790] sm:$0xff] }
 0x37e   :  { %3138 = vmatpush1.bf16.msra.mxu0 %v2675_v63  ;;  %3482 = vmatpush1.bf16.msra.mxu1 %v2677_v0  ;;  %v2732_v63 = vld [vmem:[#allocation2 + $0x7a8] sm:$0xff]  ;;  %v2734_v0 = vld [vmem:[#allocation2 + $0x7b8] sm:$0xff] }
 0x37f   :  { %3150 = vmatprep.subr.bf16.mxu0 %v2680_v6  ;;  %3494 = vmatprep.subr.bf16.mxu1 %v2682_v18  ;;  %v2731_v6 = vld [vmem:[#allocation2 + $0x7a0] sm:$0xff]  ;;  %v2733_v18 = vld [vmem:[#allocation2 + $0x7b0] sm:$0xff] }
 0x381   :  { %3140 = vmatmul.mubr.bf16.vlgmr.msra.gmra.mrb[32].mxu0 %v5960_v3  ;;  %3484 = vmatmul.mubr.bf16.vlgmr.msra.gmra.mrb[32].mxu1 %v5960_v3  ;;  %v2740_v3 = vld [vmem:[#allocation2 + $0x7e8] sm:$0xff] }
 0x382   :  { %3151 = vmatpush1.bf16.msra.mxu0 %v2679_v56  ;;  %3495 = vmatpush1.bf16.msra.mxu1 %v2681_v54  ;;  %v2736_v56 = vld [vmem:[#allocation2 + $0x7c8] sm:$0xff]  ;;  %v2738_v54 = vld [vmem:[#allocation2 + $0x7d8] sm:$0xff] }
 0x383   :  { %3152 = vmatprep.subr.bf16.mxu0 %v2684_v17  ;;  %3496 = vmatprep.subr.bf16.mxu1 %v2686_v34  ;;  %v2735_v17 = vld [vmem:[#allocation2 + $0x7c0] sm:$0xff]  ;;  %v2737_v34 = vld [vmem:[#allocation2 + $0x7d0] sm:$0xff] }
 0x384   :  { %3182 = vmatprep.mubr.bf16.mxu0 %v5961_v9  ;;  %3526 = vmatprep.mubr.bf16.mxu1 %v5961_v9  ;;  %v2746_v9 = vld [vmem:[#allocation2 + $0x818] sm:$0xff] }
 0x386   :  { %3153 = vmatpush1.bf16.msra.mxu0 %v2683_v30  ;;  %3497 = vmatpush1.bf16.msra.mxu1 %v2685_v62  ;;  %v2742_v30 = vld [vmem:[#allocation2 + $0x7f8] sm:$0xff]  ;;  %v2739_v62 = vld [vmem:[#allocation2 + $0x7e0] sm:$0xff] }
 0x387   :  { %3154 = vmatprep.subr.bf16.mxu0 %v2688_v32  ;;  %3498 = vmatprep.subr.bf16.mxu1 %v2690_v57  ;;  %v2741_v32 = vld [vmem:[#allocation2 + $0x7f0] sm:$0xff]  ;;  %v2744_v57 = vld [vmem:[#allocation2 + $0x808] sm:$0xff] }
 0x38a   :  { %3155 = vmatpush1.bf16.msra.mxu0 %v2687_v51  ;;  %3499 = vmatpush1.bf16.msra.mxu1 %v2689_v23  ;;  %v2743_v51 = vld [vmem:[#allocation2 + $0x800] sm:$0xff]  ;;  %v2745_v23 = vld [vmem:[#allocation2 + $0x810] sm:$0xff] }
 0x38b   :  { %3156 = vmatprep.subr.bf16.mxu0 %v2692_v45  ;;  %3500 = vmatprep.subr.bf16.mxu1 %v2694_v16  ;;  %v2748_v45 = vld [vmem:[#allocation2 + $0x828] sm:$0xff]  ;;  %v2750_v16 = vld [vmem:[#allocation2 + $0x838] sm:$0xff] }
 0x38e   :  { %3157 = vmatpush1.bf16.msra.mxu0 %v2691_v44  ;;  %3501 = vmatpush1.bf16.msra.mxu1 %v2693_v41  ;;  %v5962_v44 = vld [vmem:[#allocation34_spill] sm:$0xff]  ;;  %v2747_v41 = vld [vmem:[#allocation2 + $0x820] sm:$0xff] }
 0x38f   :  { %3158 = vmatprep.subr.bf16.mxu0 %v2696_v43  ;;  %3502 = vmatprep.subr.bf16.mxu1 %v2698_v48  ;;  %v2749_v43 = vld [vmem:[#allocation2 + $0x830] sm:$0xff]  ;;  %v2752_v48 = vld [vmem:[#allocation2 + $0x848] sm:$0xff] }
 0x392   :  { %3159 = vmatpush1.bf16.msra.mxu0 %v2695_v58  ;;  %3503 = vmatpush1.bf16.msra.mxu1 %v2697_v13  ;;  %v2754_v58 = vld [vmem:[#allocation2 + $0x858] sm:$0xff]  ;;  %v2751_v13 = vld [vmem:[#allocation2 + $0x840] sm:$0xff] }
 0x393   :  { %3160 = vmatprep.subr.bf16.mxu0 %v2700_v53  ;;  %3504 = vmatprep.subr.bf16.mxu1 %v2702_v20  ;;  %v2753_v53 = vld [vmem:[#allocation2 + $0x850] sm:$0xff]  ;;  %v2756_v20 = vld [vmem:[#allocation2 + $0x868] sm:$0xff] }
 0x396   :  { %3161 = vmatpush1.bf16.msra.mxu0 %v2699_v26  ;;  %3505 = vmatpush1.bf16.msra.mxu1 %v2701_v40  ;;  %v2758_v26 = vld [vmem:[#allocation2 + $0x878] sm:$0xff]  ;;  %v2755_v40 = vld [vmem:[#allocation2 + $0x860] sm:$0xff] }
 0x397   :  { %3162 = vmatprep.subr.bf16.mxu0 %v2704_v8  ;;  %3506 = vmatprep.subr.bf16.mxu1 %v2706_v14  ;;  %v2757_v8 = vld [vmem:[#allocation2 + $0x870] sm:$0xff]  ;;  %v2760_v14 = vld [vmem:[#allocation2 + $0x888] sm:$0xff] }
 0x39a   :  { %3163 = vmatpush1.bf16.msra.mxu0 %v2703_v27  ;;  %3507 = vmatpush1.bf16.msra.mxu1 %v2705_v24  ;;  %v2762_v27 = vld [vmem:[#allocation2 + $0x898] sm:$0xff]  ;;  %v2761_v24 = vld [vmem:[#allocation2 + $0x890] sm:$0xff] }
 0x39b   :  { %3164 = vmatprep.subr.bf16.mxu0 %v2708_v25  ;;  %3508 = vmatprep.subr.bf16.mxu1 %v2710_v33  ;;  %v2764_v25 = vld [vmem:[#allocation2 + $0x8a8] sm:$0xff]  ;;  %v2766_v33 = vld [vmem:[#allocation2 + $0x8b8] sm:$0xff] }
 0x39e   :  { %3165 = vmatpush1.bf16.msra.mxu0 %v2707_v61  ;;  %3509 = vmatpush1.bf16.msra.mxu1 %v2709_v38  ;;  %v2763_v61 = vld [vmem:[#allocation2 + $0x8a0] sm:$0xff]  ;;  %v2765_v38 = vld [vmem:[#allocation2 + $0x8b0] sm:$0xff] }
 0x39f   :  { %3166 = vmatprep.subr.bf16.mxu0 %v2712_v42  ;;  %3510 = vmatprep.subr.bf16.mxu1 %v2714_v46  ;;  %v2768_v42 = vld [vmem:[#allocation2 + $0x8c8] sm:$0xff]  ;;  %v2770_v46 = vld [vmem:[#allocation2 + $0x8d8] sm:$0xff] }
 0x3a2   :  { %3167 = vmatpush1.bf16.msra.mxu0 %v2711_v50  ;;  %3511 = vmatpush1.bf16.msra.mxu1 %v2713_v39  ;;  %v2767_v50 = vld [vmem:[#allocation2 + $0x8c0] sm:$0xff]  ;;  %v2769_v39 = vld [vmem:[#allocation2 + $0x8d0] sm:$0xff] }
 0x3a3   :  { %3168 = vmatprep.subr.bf16.mxu0 %v2716_v37  ;;  %3512 = vmatprep.subr.bf16.mxu1 %v2718_v28  ;;  %v2772_v37 = vld [vmem:[#allocation2 + $0x8e8] sm:$0xff]  ;;  %v2774_v28 = vld [vmem:[#allocation2 + $0x8f8] sm:$0xff] }
 0x3a6   :  { %3169 = vmatpush1.bf16.msra.mxu0 %v2715_v5  ;;  %3513 = vmatpush1.bf16.msra.mxu1 %v2717_v12  ;;  %v2771_v5 = vld [vmem:[#allocation2 + $0x8e0] sm:$0xff]  ;;  %v2773_v12 = vld [vmem:[#allocation2 + $0x8f0] sm:$0xff] }
 0x3a7   :  { %3170 = vmatprep.subr.bf16.mxu0 %v2720_v10  ;;  %3514 = vmatprep.subr.bf16.mxu1 %v2722_v49  ;;  %v2776_v10 = vld [vmem:[#allocation2 + $0x908] sm:$0xff]  ;;  %v2778_v49 = vld [vmem:[#allocation2 + $0x918] sm:$0xff] }
 0x3aa   :  { %3171 = vmatpush1.bf16.msra.mxu0 %v2719_v47  ;;  %3515 = vmatpush1.bf16.msra.mxu1 %v2721_v2  ;;  %v2775_v47 = vld [vmem:[#allocation2 + $0x900] sm:$0xff]  ;;  %v2777_v2 = vld [vmem:[#allocation2 + $0x910] sm:$0xff] }
 0x3ab   :  { %3172 = vmatprep.subr.bf16.mxu0 %v2724_v22  ;;  %3516 = vmatprep.subr.bf16.mxu1 %v2726_v1  ;;  %v2780_v22 = vld [vmem:[#allocation2 + $0x928] sm:$0xff]  ;;  %v2782_v1 = vld [vmem:[#allocation2 + $0x938] sm:$0xff] }
 0x3ae   :  { %3173 = vmatpush1.bf16.msra.mxu0 %v2723_v60  ;;  %3517 = vmatpush1.bf16.msra.mxu1 %v2725_v4  ;;  %v2779_v60 = vld [vmem:[#allocation2 + $0x920] sm:$0xff]  ;;  %v2781_v4 = vld [vmem:[#allocation2 + $0x930] sm:$0xff] }
 0x3af   :  { %3174 = vmatprep.subr.bf16.mxu0 %v2728_v52  ;;  %3518 = vmatprep.subr.bf16.mxu1 %v2730_v7  ;;  %v2784_v52 = vld [vmem:[#allocation2 + $0x948] sm:$0xff]  ;;  %v2786_v7 = vld [vmem:[#allocation2 + $0x958] sm:$0xff] }
 0x3b2   :  { %3175 = vmatpush1.bf16.msra.mxu0 %v2727_v11  ;;  %3519 = vmatpush1.bf16.msra.mxu1 %v2729_v36  ;;  %v2783_v11 = vld [vmem:[#allocation2 + $0x940] sm:$0xff]  ;;  %v2785_v36 = vld [vmem:[#allocation2 + $0x950] sm:$0xff] }
 0x3b3   :  { %3176 = vmatprep.subr.bf16.mxu0 %v2732_v63  ;;  %3520 = vmatprep.subr.bf16.mxu1 %v2734_v0  ;;  %v2788_v63 = vld [vmem:[#allocation2 + $0x968] sm:$0xff]  ;;  %v2790_v0 = vld [vmem:[#allocation2 + $0x978] sm:$0xff] }
 0x3b6   :  { %3177 = vmatpush1.bf16.msra.mxu0 %v2731_v6  ;;  %3521 = vmatpush1.bf16.msra.mxu1 %v2733_v18  ;;  %v2787_v6 = vld [vmem:[#allocation2 + $0x960] sm:$0xff]  ;;  %v2789_v18 = vld [vmem:[#allocation2 + $0x970] sm:$0xff] }
 0x3b7   :  { %3178 = vmatprep.subr.bf16.mxu0 %v2736_v56  ;;  %3522 = vmatprep.subr.bf16.mxu1 %v2738_v54  ;;  %v2792_v56 = vld [vmem:[#allocation2 + $0x988] sm:$0xff]  ;;  %v2794_v54 = vld [vmem:[#allocation2 + $0x998] sm:$0xff] }
 0x3ba   :  { %3179 = vmatpush1.bf16.msra.mxu0 %v2735_v17  ;;  %3523 = vmatpush1.bf16.msra.mxu1 %v2737_v34  ;;  %v2791_v17 = vld [vmem:[#allocation2 + $0x980] sm:$0xff]  ;;  %v2793_v34 = vld [vmem:[#allocation2 + $0x990] sm:$0xff] }
 0x3bb   :  { %3180 = vmatprep.subr.bf16.mxu0 %v2740_v3  ;;  %3524 = vmatprep.subr.bf16.mxu1 %v2742_v30  ;;  %v2796_v3 = vld [vmem:[#allocation2 + $0x9a8] sm:$0xff]  ;;  %v2798_v30 = vld [vmem:[#allocation2 + $0x9b8] sm:$0xff] }
 0x3be   :  { %3181 = vmatpush1.bf16.msra.mxu0 %v2739_v62  ;;  %3525 = vmatpush1.bf16.msra.mxu1 %v2741_v32  ;;  %v2795_v62 = vld [vmem:[#allocation2 + $0x9a0] sm:$0xff]  ;;  %v2797_v32 = vld [vmem:[#allocation2 + $0x9b0] sm:$0xff] }
 0x3bf   :  { %3193 = vmatprep.subr.bf16.mxu0 %v2744_v57  ;;  %3537 = vmatprep.subr.bf16.mxu1 %v2746_v9  ;;  %v2800_v57 = vld [vmem:[#allocation2 + $0x9c8] sm:$0xff]  ;;  %v2802_v9 = vld [vmem:[#allocation2 + $0x9d8] sm:$0xff] }
 0x3c1   :  { %3183 = vmatmul.mubr.bf16.vlgmr.msra.gmra.mrb[32].mxu0 %v5962_v44  ;;  %3527 = vmatmul.mubr.bf16.vlgmr.msra.gmra.mrb[32].mxu1 %v5962_v44  ;;  %v2803_v44 = vld [vmem:[#allocation2 + $0x9e0] sm:$0xff] }
 0x3c2   :  { %3194 = vmatpush1.bf16.msra.mxu0 %v2743_v51  ;;  %3538 = vmatpush1.bf16.msra.mxu1 %v2745_v23  ;;  %v2799_v51 = vld [vmem:[#allocation2 + $0x9c0] sm:$0xff]  ;;  %v2801_v23 = vld [vmem:[#allocation2 + $0x9d0] sm:$0xff] }
 0x3c3   :  { %3195 = vmatprep.subr.bf16.mxu0 %v2748_v45  ;;  %3539 = vmatprep.subr.bf16.mxu1 %v2750_v16  ;;  %v2804_v45 = vld [vmem:[#allocation2 + $0x9e8] sm:$0xff]  ;;  %v2806_v16 = vld [vmem:[#allocation2 + $0x9f8] sm:$0xff] }
 0x3c4   :  { %3225 = vmatprep.mubr.bf16.mxu0 %v5644_v55  ;;  %3569 = vmatprep.mubr.bf16.mxu1 %v5644_v55  ;;  %v2759_v55 = vld [vmem:[#allocation2 + $0x880] sm:$0xff] }
 0x3c6   :  { %3196 = vmatpush1.bf16.msra.mxu0 %v2747_v41  ;;  %3540 = vmatpush1.bf16.msra.mxu1 %v2749_v43  ;;  %v2805_v41 = vld [vmem:[#allocation2 + $0x9f0] sm:$0xff]  ;;  %v2808_v43 = vld [vmem:[#allocation2 + $0xa08] sm:$0xff] }
 0x3c7   :  { %3197 = vmatprep.subr.bf16.mxu0 %v2752_v48  ;;  %3541 = vmatprep.subr.bf16.mxu1 %v2754_v58  ;;  %v2810_v48 = vld [vmem:[#allocation2 + $0xa18] sm:$0xff]  ;;  %v2807_v58 = vld [vmem:[#allocation2 + $0xa00] sm:$0xff] }
 0x3ca   :  { %3198 = vmatpush1.bf16.msra.mxu0 %v2751_v13  ;;  %3542 = vmatpush1.bf16.msra.mxu1 %v2753_v53  ;;  %v2809_v13 = vld [vmem:[#allocation2 + $0xa10] sm:$0xff]  ;;  %v2812_v53 = vld [vmem:[#allocation2 + $0xa28] sm:$0xff] }
 0x3cb   :  { %3199 = vmatprep.subr.bf16.mxu0 %v2756_v20  ;;  %3543 = vmatprep.subr.bf16.mxu1 %v2758_v26  ;;  %v2814_v20 = vld [vmem:[#allocation2 + $0xa38] sm:$0xff]  ;;  %v2811_v26 = vld [vmem:[#allocation2 + $0xa20] sm:$0xff] }
 0x3ce   :  { %3200 = vmatpush1.bf16.msra.mxu0 %v2755_v40  ;;  %3544 = vmatpush1.bf16.msra.mxu1 %v2757_v8  ;;  %v2813_v40 = vld [vmem:[#allocation2 + $0xa30] sm:$0xff]  ;;  %v2816_v8 = vld [vmem:[#allocation2 + $0xa48] sm:$0xff] }
 0x3cf   :  { %3201 = vmatprep.subr.bf16.mxu0 %v2760_v14  ;;  %3545 = vmatprep.subr.bf16.mxu1 %v2762_v27  ;;  %v2818_v14 = vld [vmem:[#allocation2 + $0xa58] sm:$0xff]  ;;  %v2815_v27 = vld [vmem:[#allocation2 + $0xa40] sm:$0xff] }
 0x3d2   :  { %3202 = vmatpush1.bf16.msra.mxu0 %v2759_v55  ;;  %3546 = vmatpush1.bf16.msra.mxu1 %v2761_v24  ;;  %v2817_v55 = vld [vmem:[#allocation2 + $0xa50] sm:$0xff]  ;;  %v2820_v24 = vld [vmem:[#allocation2 + $0xa68] sm:$0xff] }
 0x3d3   :  { %3203 = vmatprep.subr.bf16.mxu0 %v2764_v25  ;;  %3547 = vmatprep.subr.bf16.mxu1 %v2766_v33  ;;  %v2819_v25 = vld [vmem:[#allocation2 + $0xa60] sm:$0xff]  ;;  %v2821_v33 = vld [vmem:[#allocation2 + $0xa70] sm:$0xff] }
 0x3d6   :  { %3204 = vmatpush1.bf16.msra.mxu0 %v2763_v61  ;;  %3548 = vmatpush1.bf16.msra.mxu1 %v2765_v38  ;;  %v2824_v61 = vld [vmem:[#allocation2 + $0xa88] sm:$0xff]  ;;  %v2826_v38 = vld [vmem:[#allocation2 + $0xa98] sm:$0xff] }
 0x3d7   :  { %3205 = vmatprep.subr.bf16.mxu0 %v2768_v42  ;;  %3549 = vmatprep.subr.bf16.mxu1 %v2770_v46  ;;  %v2825_v42 = vld [vmem:[#allocation2 + $0xa90] sm:$0xff]  ;;  %v2828_v46 = vld [vmem:[#allocation2 + $0xaa8] sm:$0xff] }
 0x3da   :  { %3206 = vmatpush1.bf16.msra.mxu0 %v2767_v50  ;;  %3550 = vmatpush1.bf16.msra.mxu1 %v2769_v39  ;;  %v2830_v50 = vld [vmem:[#allocation2 + $0xab8] sm:$0xff]  ;;  %v2827_v39 = vld [vmem:[#allocation2 + $0xaa0] sm:$0xff] }
 0x3db   :  { %3207 = vmatprep.subr.bf16.mxu0 %v2772_v37  ;;  %3551 = vmatprep.subr.bf16.mxu1 %v2774_v28  ;;  %v2829_v37 = vld [vmem:[#allocation2 + $0xab0] sm:$0xff]  ;;  %v2832_v28 = vld [vmem:[#allocation2 + $0xac8] sm:$0xff] }
 0x3de   :  { %3208 = vmatpush1.bf16.msra.mxu0 %v2771_v5  ;;  %3552 = vmatpush1.bf16.msra.mxu1 %v2773_v12  ;;  %v2834_v5 = vld [vmem:[#allocation2 + $0xad8] sm:$0xff]  ;;  %v2831_v12 = vld [vmem:[#allocation2 + $0xac0] sm:$0xff] }
 0x3df   :  { %3209 = vmatprep.subr.bf16.mxu0 %v2776_v10  ;;  %3553 = vmatprep.subr.bf16.mxu1 %v2778_v49  ;;  %v2833_v10 = vld [vmem:[#allocation2 + $0xad0] sm:$0xff]  ;;  %v2836_v49 = vld [vmem:[#allocation2 + $0xae8] sm:$0xff] }
 0x3e2   :  { %3210 = vmatpush1.bf16.msra.mxu0 %v2775_v47  ;;  %3554 = vmatpush1.bf16.msra.mxu1 %v2777_v2  ;;  %v2838_v47 = vld [vmem:[#allocation2 + $0xaf8] sm:$0xff]  ;;  %v2835_v2 = vld [vmem:[#allocation2 + $0xae0] sm:$0xff] }
 0x3e3   :  { %3211 = vmatprep.subr.bf16.mxu0 %v2780_v22  ;;  %3555 = vmatprep.subr.bf16.mxu1 %v2782_v1  ;;  %v2837_v22 = vld [vmem:[#allocation2 + $0xaf0] sm:$0xff]  ;;  %v2840_v1 = vld [vmem:[#allocation2 + $0xb08] sm:$0xff] }
 0x3e6   :  { %3212 = vmatpush1.bf16.msra.mxu0 %v2779_v60  ;;  %3556 = vmatpush1.bf16.msra.mxu1 %v2781_v4  ;;  %v2842_v60 = vld [vmem:[#allocation2 + $0xb18] sm:$0xff]  ;;  %v2839_v4 = vld [vmem:[#allocation2 + $0xb00] sm:$0xff] }
 0x3e7   :  { %3213 = vmatprep.subr.bf16.mxu0 %v2784_v52  ;;  %3557 = vmatprep.subr.bf16.mxu1 %v2786_v7  ;;  %v2841_v52 = vld [vmem:[#allocation2 + $0xb10] sm:$0xff]  ;;  %v2844_v7 = vld [vmem:[#allocation2 + $0xb28] sm:$0xff] }
 0x3ea   :  { %3214 = vmatpush1.bf16.msra.mxu0 %v2783_v11  ;;  %3558 = vmatpush1.bf16.msra.mxu1 %v2785_v36  ;;  %v2846_v11 = vld [vmem:[#allocation2 + $0xb38] sm:$0xff]  ;;  %v2843_v36 = vld [vmem:[#allocation2 + $0xb20] sm:$0xff] }
 0x3eb   :  { %3215 = vmatprep.subr.bf16.mxu0 %v2788_v63  ;;  %3559 = vmatprep.subr.bf16.mxu1 %v2790_v0  ;;  %v2845_v63 = vld [vmem:[#allocation2 + $0xb30] sm:$0xff]  ;;  %v2848_v0 = vld [vmem:[#allocation2 + $0xb48] sm:$0xff] }
 0x3ee   :  { %3216 = vmatpush1.bf16.msra.mxu0 %v2787_v6  ;;  %3560 = vmatpush1.bf16.msra.mxu1 %v2789_v18  ;;  %v2850_v6 = vld [vmem:[#allocation2 + $0xb58] sm:$0xff]  ;;  %v2847_v18 = vld [vmem:[#allocation2 + $0xb40] sm:$0xff] }
 0x3ef   :  { %3217 = vmatprep.subr.bf16.mxu0 %v2792_v56  ;;  %3561 = vmatprep.subr.bf16.mxu1 %v2794_v54  ;;  %v2849_v56 = vld [vmem:[#allocation2 + $0xb50] sm:$0xff]  ;;  %v2852_v54 = vld [vmem:[#allocation2 + $0xb68] sm:$0xff] }
 0x3f2   :  { %3218 = vmatpush1.bf16.msra.mxu0 %v2791_v17  ;;  %3562 = vmatpush1.bf16.msra.mxu1 %v2793_v34  ;;  %v2854_v17 = vld [vmem:[#allocation2 + $0xb78] sm:$0xff]  ;;  %v2851_v34 = vld [vmem:[#allocation2 + $0xb60] sm:$0xff] }
 0x3f3   :  { %3219 = vmatprep.subr.bf16.mxu0 %v2796_v3  ;;  %3563 = vmatprep.subr.bf16.mxu1 %v2798_v30  ;;  %v2853_v3 = vld [vmem:[#allocation2 + $0xb70] sm:$0xff]  ;;  %v2856_v30 = vld [vmem:[#allocation2 + $0xb88] sm:$0xff] }
 0x3f6   :  { %3220 = vmatpush1.bf16.msra.mxu0 %v2795_v62  ;;  %3564 = vmatpush1.bf16.msra.mxu1 %v2797_v32  ;;  %v2858_v62 = vld [vmem:[#allocation2 + $0xb98] sm:$0xff]  ;;  %v2855_v32 = vld [vmem:[#allocation2 + $0xb80] sm:$0xff] }
 0x3f7   :  { %3221 = vmatprep.subr.bf16.mxu0 %v2800_v57  ;;  %3565 = vmatprep.subr.bf16.mxu1 %v2802_v9  ;;  %v2857_v57 = vld [vmem:[#allocation2 + $0xb90] sm:$0xff]  ;;  %v2860_v9 = vld [vmem:[#allocation2 + $0xba8] sm:$0xff] }
 0x3fa   :  { %3222 = vmatpush1.bf16.msra.mxu0 %v2799_v51  ;;  %3566 = vmatpush1.bf16.msra.mxu1 %v2801_v23  ;;  %v2862_v51 = vld [vmem:[#allocation2 + $0xbb8] sm:$0xff]  ;;  %v2859_v23 = vld [vmem:[#allocation2 + $0xba0] sm:$0xff] }
 0x3fb   :  { %3223 = vmatprep.subr.bf16.mxu0 %v2804_v45  ;;  %3567 = vmatprep.subr.bf16.mxu1 %v2806_v16  ;;  %v2861_v45 = vld [vmem:[#allocation2 + $0xbb0] sm:$0xff]  ;;  %v2864_v16 = vld [vmem:[#allocation2 + $0xbc8] sm:$0xff] }
 0x3fe   :  { %3224 = vmatpush1.bf16.msra.mxu0 %v2803_v44  ;;  %3568 = vmatpush1.bf16.msra.mxu1 %v2805_v41  ;;  %v2866_v44 = vld [vmem:[#allocation2 + $0xbd8] sm:$0xff]  ;;  %v2863_v41 = vld [vmem:[#allocation2 + $0xbc0] sm:$0xff] }
 0x3ff   :  { %3236 = vmatprep.subr.bf16.mxu0 %v2808_v43  ;;  %3580 = vmatprep.subr.bf16.mxu1 %v2810_v48  ;;  %v2865_v43 = vld [vmem:[#allocation2 + $0xbd0] sm:$0xff]  ;;  %v2868_v48 = vld [vmem:[#allocation2 + $0xbe8] sm:$0xff] }
 0x401   :  { %3226 = vmatmul.mubr.bf16.vlgmr.msra.gmra.mrb[32].mxu0 %v5600_v31  ;;  %3570 = vmatmul.mubr.bf16.vlgmr.msra.gmra.mrb[32].mxu1 %v5600_v31  ;;  %v2822_v31 = vld [vmem:[#allocation2 + $0xa78] sm:$0xff] }
 0x402   :  { %3237 = vmatpush1.bf16.msra.mxu0 %v2807_v58  ;;  %3581 = vmatpush1.bf16.msra.mxu1 %v2809_v13  ;;  %v2870_v58 = vld [vmem:[#allocation2 + $0xbf8] sm:$0xff]  ;;  %v2867_v13 = vld [vmem:[#allocation2 + $0xbe0] sm:$0xff] }
 0x403   :  { %3238 = vmatprep.subr.bf16.mxu0 %v2812_v53  ;;  %3582 = vmatprep.subr.bf16.mxu1 %v2814_v20  ;;  %v2869_v53 = vld [vmem:[#allocation2 + $0xbf0] sm:$0xff]  ;;  %v2872_v20 = vld [vmem:[#allocation2 + $0xc08] sm:$0xff] }
 0x404   :  { %3268 = vmatprep.mubr.bf16.mxu0 %v5646_v35  ;;  %3612 = vmatprep.mubr.bf16.mxu1 %v5646_v35  ;;  %v2823_v35 = vld [vmem:[#allocation2 + $0xa80] sm:$0xff] }
 0x406   :  { %3239 = vmatpush1.bf16.msra.mxu0 %v2811_v26  ;;  %3583 = vmatpush1.bf16.msra.mxu1 %v2813_v40  ;;  %v2874_v26 = vld [vmem:[#allocation2 + $0xc18] sm:$0xff]  ;;  %v2871_v40 = vld [vmem:[#allocation2 + $0xc00] sm:$0xff] }
 0x407   :  { %3240 = vmatprep.subr.bf16.mxu0 %v2816_v8  ;;  %3584 = vmatprep.subr.bf16.mxu1 %v2818_v14  ;;  %v2873_v8 = vld [vmem:[#allocation2 + $0xc10] sm:$0xff]  ;;  %v2876_v14 = vld [vmem:[#allocation2 + $0xc28] sm:$0xff] }
 0x40a   :  { %3241 = vmatpush1.bf16.msra.mxu0 %v2815_v27  ;;  %3585 = vmatpush1.bf16.msra.mxu1 %v2817_v55  ;;  %v2878_v27 = vld [vmem:[#allocation2 + $0xc38] sm:$0xff]  ;;  %v2875_v55 = vld [vmem:[#allocation2 + $0xc20] sm:$0xff] }
 0x40b   :  { %3242 = vmatprep.subr.bf16.mxu0 %v2820_v24  ;;  %3586 = vmatprep.subr.bf16.mxu1 %v2822_v31  ;;  %v2877_v24 = vld [vmem:[#allocation2 + $0xc30] sm:$0xff]  ;;  %v2880_v31 = vld [vmem:[#allocation2 + $0xc48] sm:$0xff] }
 0x40e   :  { %3243 = vmatpush1.bf16.msra.mxu0 %v2819_v25  ;;  %3587 = vmatpush1.bf16.msra.mxu1 %v2821_v33  ;;  %v2882_v25 = vld [vmem:[#allocation2 + $0xc58] sm:$0xff]  ;;  %v2879_v33 = vld [vmem:[#allocation2 + $0xc40] sm:$0xff] }
 0x40f   :  { %3244 = vmatprep.subr.bf16.mxu0 %v2824_v61  ;;  %3588 = vmatprep.subr.bf16.mxu1 %v2826_v38  ;;  %v2881_v61 = vld [vmem:[#allocation2 + $0xc50] sm:$0xff]  ;;  %v2884_v38 = vld [vmem:[#allocation2 + $0xc68] sm:$0xff] }
 0x412   :  { %3245 = vmatpush1.bf16.msra.mxu0 %v2823_v35  ;;  %3589 = vmatpush1.bf16.msra.mxu1 %v2825_v42  ;;  %v2883_v35 = vld [vmem:[#allocation2 + $0xc60] sm:$0xff]  ;;  %v2885_v42 = vld [vmem:[#allocation2 + $0xc70] sm:$0xff] }
 0x413   :  { %3246 = vmatprep.subr.bf16.mxu0 %v2828_v46  ;;  %3590 = vmatprep.subr.bf16.mxu1 %v2830_v50  ;;  %v2888_v46 = vld [vmem:[#allocation2 + $0xc88] sm:$0xff]  ;;  %v2890_v50 = vld [vmem:[#allocation2 + $0xc98] sm:$0xff] }
 0x416   :  { %3247 = vmatpush1.bf16.msra.mxu0 %v2827_v39  ;;  %3591 = vmatpush1.bf16.msra.mxu1 %v2829_v37  ;;  %v2889_v39 = vld [vmem:[#allocation2 + $0xc90] sm:$0xff]  ;;  %v2892_v37 = vld [vmem:[#allocation2 + $0xca8] sm:$0xff] }
 0x417   :  { %3248 = vmatprep.subr.bf16.mxu0 %v2832_v28  ;;  %3592 = vmatprep.subr.bf16.mxu1 %v2834_v5  ;;  %v2894_v28 = vld [vmem:[#allocation2 + $0xcb8] sm:$0xff]  ;;  %v2891_v5 = vld [vmem:[#allocation2 + $0xca0] sm:$0xff] }
 0x41a   :  { %3249 = vmatpush1.bf16.msra.mxu0 %v2831_v12  ;;  %3593 = vmatpush1.bf16.msra.mxu1 %v2833_v10  ;;  %v2893_v12 = vld [vmem:[#allocation2 + $0xcb0] sm:$0xff]  ;;  %v2896_v10 = vld [vmem:[#allocation2 + $0xcc8] sm:$0xff] }
 0x41b   :  { %3250 = vmatprep.subr.bf16.mxu0 %v2836_v49  ;;  %3594 = vmatprep.subr.bf16.mxu1 %v2838_v47  ;;  %v2898_v49 = vld [vmem:[#allocation2 + $0xcd8] sm:$0xff]  ;;  %v2895_v47 = vld [vmem:[#allocation2 + $0xcc0] sm:$0xff] }
 0x41e   :  { %3251 = vmatpush1.bf16.msra.mxu0 %v2835_v2  ;;  %3595 = vmatpush1.bf16.msra.mxu1 %v2837_v22  ;;  %v2897_v2 = vld [vmem:[#allocation2 + $0xcd0] sm:$0xff]  ;;  %v2900_v22 = vld [vmem:[#allocation2 + $0xce8] sm:$0xff] }
 0x41f   :  { %3252 = vmatprep.subr.bf16.mxu0 %v2840_v1  ;;  %3596 = vmatprep.subr.bf16.mxu1 %v2842_v60  ;;  %v2902_v1 = vld [vmem:[#allocation2 + $0xcf8] sm:$0xff]  ;;  %v2899_v60 = vld [vmem:[#allocation2 + $0xce0] sm:$0xff] }
 0x422   :  { %3253 = vmatpush1.bf16.msra.mxu0 %v2839_v4  ;;  %3597 = vmatpush1.bf16.msra.mxu1 %v2841_v52  ;;  %v2901_v4 = vld [vmem:[#allocation2 + $0xcf0] sm:$0xff]  ;;  %v2904_v52 = vld [vmem:[#allocation2 + $0xd08] sm:$0xff] }
 0x423   :  { %3254 = vmatprep.subr.bf16.mxu0 %v2844_v7  ;;  %3598 = vmatprep.subr.bf16.mxu1 %v2846_v11  ;;  %v2906_v7 = vld [vmem:[#allocation2 + $0xd18] sm:$0xff]  ;;  %v2903_v11 = vld [vmem:[#allocation2 + $0xd00] sm:$0xff] }
 0x426   :  { %3255 = vmatpush1.bf16.msra.mxu0 %v2843_v36  ;;  %3599 = vmatpush1.bf16.msra.mxu1 %v2845_v63  ;;  %v2905_v36 = vld [vmem:[#allocation2 + $0xd10] sm:$0xff]  ;;  %v2908_v63 = vld [vmem:[#allocation2 + $0xd28] sm:$0xff] }
 0x427   :  { %3256 = vmatprep.subr.bf16.mxu0 %v2848_v0  ;;  %3600 = vmatprep.subr.bf16.mxu1 %v2850_v6  ;;  %v2910_v0 = vld [vmem:[#allocation2 + $0xd38] sm:$0xff]  ;;  %v2907_v6 = vld [vmem:[#allocation2 + $0xd20] sm:$0xff] }
 0x42a   :  { %3257 = vmatpush1.bf16.msra.mxu0 %v2847_v18  ;;  %3601 = vmatpush1.bf16.msra.mxu1 %v2849_v56  ;;  %v2909_v18 = vld [vmem:[#allocation2 + $0xd30] sm:$0xff]  ;;  %v2912_v56 = vld [vmem:[#allocation2 + $0xd48] sm:$0xff] }
 0x42b   :  { %3258 = vmatprep.subr.bf16.mxu0 %v2852_v54  ;;  %3602 = vmatprep.subr.bf16.mxu1 %v2854_v17  ;;  %v2914_v54 = vld [vmem:[#allocation2 + $0xd58] sm:$0xff]  ;;  %v2911_v17 = vld [vmem:[#allocation2 + $0xd40] sm:$0xff] }
 0x42e   :  { %3259 = vmatpush1.bf16.msra.mxu0 %v2851_v34  ;;  %3603 = vmatpush1.bf16.msra.mxu1 %v2853_v3  ;;  %v2913_v34 = vld [vmem:[#allocation2 + $0xd50] sm:$0xff]  ;;  %v2916_v3 = vld [vmem:[#allocation2 + $0xd68] sm:$0xff] }
 0x42f   :  { %3260 = vmatprep.subr.bf16.mxu0 %v2856_v30  ;;  %3604 = vmatprep.subr.bf16.mxu1 %v2858_v62  ;;  %v2918_v30 = vld [vmem:[#allocation2 + $0xd78] sm:$0xff]  ;;  %v2915_v62 = vld [vmem:[#allocation2 + $0xd60] sm:$0xff] }
 0x432   :  { %3261 = vmatpush1.bf16.msra.mxu0 %v2855_v32  ;;  %3605 = vmatpush1.bf16.msra.mxu1 %v2857_v57  ;;  %v2917_v32 = vld [vmem:[#allocation2 + $0xd70] sm:$0xff]  ;;  %v2920_v57 = vld [vmem:[#allocation2 + $0xd88] sm:$0xff] }
 0x433   :  { %3262 = vmatprep.subr.bf16.mxu0 %v2860_v9  ;;  %3606 = vmatprep.subr.bf16.mxu1 %v2862_v51  ;;  %v2922_v9 = vld [vmem:[#allocation2 + $0xd98] sm:$0xff]  ;;  %v2919_v51 = vld [vmem:[#allocation2 + $0xd80] sm:$0xff] }
 0x436   :  { %3263 = vmatpush1.bf16.msra.mxu0 %v2859_v23  ;;  %3607 = vmatpush1.bf16.msra.mxu1 %v2861_v45  ;;  %v2921_v23 = vld [vmem:[#allocation2 + $0xd90] sm:$0xff]  ;;  %v2924_v45 = vld [vmem:[#allocation2 + $0xda8] sm:$0xff] }
 0x437   :  { %3264 = vmatprep.subr.bf16.mxu0 %v2864_v16  ;;  %3608 = vmatprep.subr.bf16.mxu1 %v2866_v44  ;;  %v2926_v16 = vld [vmem:[#allocation2 + $0xdb8] sm:$0xff]  ;;  %v2923_v44 = vld [vmem:[#allocation2 + $0xda0] sm:$0xff] }
 0x43a   :  { %3265 = vmatpush1.bf16.msra.mxu0 %v2863_v41  ;;  %3609 = vmatpush1.bf16.msra.mxu1 %v2865_v43  ;;  %v2925_v41 = vld [vmem:[#allocation2 + $0xdb0] sm:$0xff]  ;;  %v2928_v43 = vld [vmem:[#allocation2 + $0xdc8] sm:$0xff] }
 0x43b   :  { %3266 = vmatprep.subr.bf16.mxu0 %v2868_v48  ;;  %3610 = vmatprep.subr.bf16.mxu1 %v2870_v58  ;;  %v2930_v48 = vld [vmem:[#allocation2 + $0xdd8] sm:$0xff]  ;;  %v2927_v58 = vld [vmem:[#allocation2 + $0xdc0] sm:$0xff] }
 0x43e   :  { %3267 = vmatpush1.bf16.msra.mxu0 %v2867_v13  ;;  %3611 = vmatpush1.bf16.msra.mxu1 %v2869_v53  ;;  %v2929_v13 = vld [vmem:[#allocation2 + $0xdd0] sm:$0xff]  ;;  %v2932_v53 = vld [vmem:[#allocation2 + $0xde8] sm:$0xff] }
 0x43f   :  { %3279 = vmatprep.subr.bf16.mxu0 %v2872_v20  ;;  %3623 = vmatprep.subr.bf16.mxu1 %v2874_v26  ;;  %v2934_v20 = vld [vmem:[#allocation2 + $0xdf8] sm:$0xff]  ;;  %v2931_v26 = vld [vmem:[#allocation2 + $0xde0] sm:$0xff] }
 0x441   :  { %3269 = vmatmul.mubr.bf16.vlgmr.msra.gmra.mrb[32].mxu0 %v5615_v29  ;;  %3613 = vmatmul.mubr.bf16.vlgmr.msra.gmra.mrb[32].mxu1 %v5615_v29  ;;  %v2886_v29 = vld [vmem:[#allocation2 + $0xc78] sm:$0xff] }
 0x442   :  { %3280 = vmatpush1.bf16.msra.mxu0 %v2871_v40  ;;  %3624 = vmatpush1.bf16.msra.mxu1 %v2873_v8  ;;  %v2933_v40 = vld [vmem:[#allocation2 + $0xdf0] sm:$0xff]  ;;  %v2936_v8 = vld [vmem:[#allocation2 + $0xe08] sm:$0xff] }
 0x443   :  { %3281 = vmatprep.subr.bf16.mxu0 %v2876_v14  ;;  %3625 = vmatprep.subr.bf16.mxu1 %v2878_v27  ;;  %v2938_v14 = vld [vmem:[#allocation2 + $0xe18] sm:$0xff]  ;;  %v2935_v27 = vld [vmem:[#allocation2 + $0xe00] sm:$0xff] }
 0x444   :  { %3311 = vmatprep.mubr.bf16.mxu0 %v5694_v19  ;;  %3655 = vmatprep.mubr.bf16.mxu1 %v5694_v19  ;;  %v2887_v19 = vld [vmem:[#allocation2 + $0xc80] sm:$0xff] }
 0x446   :  { %3282 = vmatpush1.bf16.msra.mxu0 %v2875_v55  ;;  %3626 = vmatpush1.bf16.msra.mxu1 %v2877_v24  ;;  %v2937_v55 = vld [vmem:[#allocation2 + $0xe10] sm:$0xff]  ;;  %v2940_v24 = vld [vmem:[#allocation2 + $0xe28] sm:$0xff] }
 0x447   :  { %3283 = vmatprep.subr.bf16.mxu0 %v2880_v31  ;;  %3627 = vmatprep.subr.bf16.mxu1 %v2882_v25  ;;  %v2942_v31 = vld [vmem:[#allocation2 + $0xe38] sm:$0xff]  ;;  %v2939_v25 = vld [vmem:[#allocation2 + $0xe20] sm:$0xff] }
 0x44a   :  { %3284 = vmatpush1.bf16.msra.mxu0 %v2879_v33  ;;  %3628 = vmatpush1.bf16.msra.mxu1 %v2881_v61  ;;  %v2941_v33 = vld [vmem:[#allocation2 + $0xe30] sm:$0xff]  ;;  %v2944_v61 = vld [vmem:[#allocation2 + $0xe48] sm:$0xff] }
 0x44b   :  { %3285 = vmatprep.subr.bf16.mxu0 %v2884_v38  ;;  %3629 = vmatprep.subr.bf16.mxu1 %v2886_v29  ;;  %v2946_v38 = vld [vmem:[#allocation2 + $0xe58] sm:$0xff]  ;;  %v2943_v29 = vld [vmem:[#allocation2 + $0xe40] sm:$0xff] }
 0x44e   :  { %3286 = vmatpush1.bf16.msra.mxu0 %v2883_v35  ;;  %3630 = vmatpush1.bf16.msra.mxu1 %v2885_v42  ;;  %v2945_v35 = vld [vmem:[#allocation2 + $0xe50] sm:$0xff]  ;;  %v2948_v42 = vld [vmem:[#allocation2 + $0xe68] sm:$0xff] }
 0x44f   :  { %3287 = vmatprep.subr.bf16.mxu0 %v2888_v46  ;;  %3631 = vmatprep.subr.bf16.mxu1 %v2890_v50  ;;  %v2947_v46 = vld [vmem:[#allocation2 + $0xe60] sm:$0xff]  ;;  %v2949_v50 = vld [vmem:[#allocation2 + $0xe70] sm:$0xff] }
 0x452   :  { %3288 = vmatpush1.bf16.msra.mxu0 %v2887_v19  ;;  %3632 = vmatpush1.bf16.msra.mxu1 %v2889_v39  ;;  %v2952_v19 = vld [vmem:[#allocation2 + $0xe88] sm:$0xff]  ;;  %v2954_v39 = vld [vmem:[#allocation2 + $0xe98] sm:$0xff] }
 0x453   :  { %3289 = vmatprep.subr.bf16.mxu0 %v2892_v37  ;;  %3633 = vmatprep.subr.bf16.mxu1 %v2894_v28  ;;  %v2953_v37 = vld [vmem:[#allocation2 + $0xe90] sm:$0xff]  ;;  %v2956_v28 = vld [vmem:[#allocation2 + $0xea8] sm:$0xff] }
 0x456   :  { %3290 = vmatpush1.bf16.msra.mxu0 %v2891_v5  ;;  %3634 = vmatpush1.bf16.msra.mxu1 %v2893_v12  ;;  %v2958_v5 = vld [vmem:[#allocation2 + $0xeb8] sm:$0xff]  ;;  %v2955_v12 = vld [vmem:[#allocation2 + $0xea0] sm:$0xff] }
 0x457   :  { %3291 = vmatprep.subr.bf16.mxu0 %v2896_v10  ;;  %3635 = vmatprep.subr.bf16.mxu1 %v2898_v49  ;;  %v2957_v10 = vld [vmem:[#allocation2 + $0xeb0] sm:$0xff]  ;;  %v2960_v49 = vld [vmem:[#allocation2 + $0xec8] sm:$0xff] }
 0x45a   :  { %3292 = vmatpush1.bf16.msra.mxu0 %v2895_v47  ;;  %3636 = vmatpush1.bf16.msra.mxu1 %v2897_v2  ;;  %v2962_v47 = vld [vmem:[#allocation2 + $0xed8] sm:$0xff]  ;;  %v2959_v2 = vld [vmem:[#allocation2 + $0xec0] sm:$0xff] }
 0x45b   :  { %3293 = vmatprep.subr.bf16.mxu0 %v2900_v22  ;;  %3637 = vmatprep.subr.bf16.mxu1 %v2902_v1  ;;  %v2961_v22 = vld [vmem:[#allocation2 + $0xed0] sm:$0xff]  ;;  %v2964_v1 = vld [vmem:[#allocation2 + $0xee8] sm:$0xff] }
 0x45e   :  { %3294 = vmatpush1.bf16.msra.mxu0 %v2899_v60  ;;  %3638 = vmatpush1.bf16.msra.mxu1 %v2901_v4  ;;  %v2966_v60 = vld [vmem:[#allocation2 + $0xef8] sm:$0xff]  ;;  %v2963_v4 = vld [vmem:[#allocation2 + $0xee0] sm:$0xff] }
 0x45f   :  { %3295 = vmatprep.subr.bf16.mxu0 %v2904_v52  ;;  %3639 = vmatprep.subr.bf16.mxu1 %v2906_v7  ;;  %v2965_v52 = vld [vmem:[#allocation2 + $0xef0] sm:$0xff]  ;;  %v2968_v7 = vld [vmem:[#allocation2 + $0xf08] sm:$0xff] }
 0x462   :  { %3296 = vmatpush1.bf16.msra.mxu0 %v2903_v11  ;;  %3640 = vmatpush1.bf16.msra.mxu1 %v2905_v36  ;;  %v2970_v11 = vld [vmem:[#allocation2 + $0xf18] sm:$0xff]  ;;  %v2967_v36 = vld [vmem:[#allocation2 + $0xf00] sm:$0xff] }
 0x463   :  { %3297 = vmatprep.subr.bf16.mxu0 %v2908_v63  ;;  %3641 = vmatprep.subr.bf16.mxu1 %v2910_v0  ;;  %v2969_v63 = vld [vmem:[#allocation2 + $0xf10] sm:$0xff]  ;;  %v2972_v0 = vld [vmem:[#allocation2 + $0xf28] sm:$0xff] }
 0x466   :  { %3298 = vmatpush1.bf16.msra.mxu0 %v2907_v6  ;;  %3642 = vmatpush1.bf16.msra.mxu1 %v2909_v18  ;;  %v2974_v6 = vld [vmem:[#allocation2 + $0xf38] sm:$0xff]  ;;  %v2971_v18 = vld [vmem:[#allocation2 + $0xf20] sm:$0xff] }
 0x467   :  { %3299 = vmatprep.subr.bf16.mxu0 %v2912_v56  ;;  %3643 = vmatprep.subr.bf16.mxu1 %v2914_v54  ;;  %v2973_v56 = vld [vmem:[#allocation2 + $0xf30] sm:$0xff]  ;;  %v2976_v54 = vld [vmem:[#allocation2 + $0xf48] sm:$0xff] }
 0x46a   :  { %3300 = vmatpush1.bf16.msra.mxu0 %v2911_v17  ;;  %3644 = vmatpush1.bf16.msra.mxu1 %v2913_v34  ;;  %v2978_v17 = vld [vmem:[#allocation2 + $0xf58] sm:$0xff]  ;;  %v2975_v34 = vld [vmem:[#allocation2 + $0xf40] sm:$0xff] }
 0x46b   :  { %3301 = vmatprep.subr.bf16.mxu0 %v2916_v3  ;;  %3645 = vmatprep.subr.bf16.mxu1 %v2918_v30  ;;  %v2977_v3 = vld [vmem:[#allocation2 + $0xf50] sm:$0xff]  ;;  %v2980_v30 = vld [vmem:[#allocation2 + $0xf68] sm:$0xff] }
 0x46e   :  { %3302 = vmatpush1.bf16.msra.mxu0 %v2915_v62  ;;  %3646 = vmatpush1.bf16.msra.mxu1 %v2917_v32  ;;  %v2982_v62 = vld [vmem:[#allocation2 + $0xf78] sm:$0xff]  ;;  %v2979_v32 = vld [vmem:[#allocation2 + $0xf60] sm:$0xff] }
 0x46f   :  { %3303 = vmatprep.subr.bf16.mxu0 %v2920_v57  ;;  %3647 = vmatprep.subr.bf16.mxu1 %v2922_v9  ;;  %v2981_v57 = vld [vmem:[#allocation2 + $0xf70] sm:$0xff]  ;;  %v2984_v9 = vld [vmem:[#allocation2 + $0xf88] sm:$0xff] }
 0x472   :  { %3304 = vmatpush1.bf16.msra.mxu0 %v2919_v51  ;;  %3648 = vmatpush1.bf16.msra.mxu1 %v2921_v23  ;;  %v2986_v51 = vld [vmem:[#allocation2 + $0xf98] sm:$0xff]  ;;  %v2983_v23 = vld [vmem:[#allocation2 + $0xf80] sm:$0xff] }
 0x473   :  { %3305 = vmatprep.subr.bf16.mxu0 %v2924_v45  ;;  %3649 = vmatprep.subr.bf16.mxu1 %v2926_v16  ;;  %v2985_v45 = vld [vmem:[#allocation2 + $0xf90] sm:$0xff]  ;;  %v2988_v16 = vld [vmem:[#allocation2 + $0xfa8] sm:$0xff] }
 0x476   :  { %3306 = vmatpush1.bf16.msra.mxu0 %v2923_v44  ;;  %3650 = vmatpush1.bf16.msra.mxu1 %v2925_v41  ;;  %v2990_v44 = vld [vmem:[#allocation2 + $0xfb8] sm:$0xff]  ;;  %v2987_v41 = vld [vmem:[#allocation2 + $0xfa0] sm:$0xff] }
 0x477   :  { %3307 = vmatprep.subr.bf16.mxu0 %v2928_v43  ;;  %3651 = vmatprep.subr.bf16.mxu1 %v2930_v48  ;;  %v2989_v43 = vld [vmem:[#allocation2 + $0xfb0] sm:$0xff]  ;;  %v2992_v48 = vld [vmem:[#allocation2 + $0xfc8] sm:$0xff] }
 0x47a   :  { %3308 = vmatpush1.bf16.msra.mxu0 %v2927_v58  ;;  %3652 = vmatpush1.bf16.msra.mxu1 %v2929_v13  ;;  %v2994_v58 = vld [vmem:[#allocation2 + $0xfd8] sm:$0xff]  ;;  %v2991_v13 = vld [vmem:[#allocation2 + $0xfc0] sm:$0xff] }
 0x47b   :  { %3309 = vmatprep.subr.bf16.mxu0 %v2932_v53  ;;  %3653 = vmatprep.subr.bf16.mxu1 %v2934_v20  ;;  %v2993_v53 = vld [vmem:[#allocation2 + $0xfd0] sm:$0xff]  ;;  %v2996_v20 = vld [vmem:[#allocation2 + $0xfe8] sm:$0xff] }
 0x47e   :  { %3310 = vmatpush1.bf16.msra.mxu0 %v2931_v26  ;;  %3654 = vmatpush1.bf16.msra.mxu1 %v2933_v40  ;;  %v2998_v26 = vld [vmem:[#allocation2 + $0xff8] sm:$0xff]  ;;  %v2995_v40 = vld [vmem:[#allocation2 + $0xfe0] sm:$0xff] }
 0x47f   :  { %3322 = vmatprep.subr.bf16.mxu0 %v2936_v8  ;;  %3666 = vmatprep.subr.bf16.mxu1 %v2938_v14  ;;  %v2997_v8 = vld [vmem:[#allocation2 + $0xff0] sm:$0xff]  ;;  %v2999_v14 = vld [vmem:[#allocation17] sm:$0xf] }
 0x481   :  { %3312 = vmatmul.mubr.bf16.vlgmr.msra.gmra.mrb[32].mxu0 %v5685_v59  ;;  %3656 = vmatmul.mubr.bf16.vlgmr.msra.gmra.mrb[32].mxu1 %v5685_v59  ;;  %v2950_v59 = vld [vmem:[#allocation2 + $0xe78] sm:$0xff] }
 0x482   :  { %3323 = vmatpush1.bf16.msra.mxu0 %v2935_v27  ;;  %3667 = vmatpush1.bf16.msra.mxu1 %v2937_v55  ;;  %v5963_v27 = vld [vmem:[#allocation42_spill] sm:$0xff] }
 0x483   :  { %3324 = vmatprep.subr.bf16.mxu0 %v2940_v24  ;;  %3668 = vmatprep.subr.bf16.mxu1 %v2942_v31  ;;  %v3004_v55 = vrot.slane %v2999_v14, %v5963_v27  ;;  %v5964_v24 = vld [vmem:[#allocation43_spill] sm:$0xff] }
 0x484   :  { %3354 = vmatprep.mubr.bf16.mxu0 %v5697_v21  ;;  %3698 = vmatprep.mubr.bf16.mxu1 %v5697_v21  ;;  %v2951_v21 = vld [vmem:[#allocation2 + $0xe80] sm:$0xff]  ;;  %v3012_v31 = vrot.slane %v2999_v14, %v5964_v24 }
 0x486   :  { %3325 = vmatpush1.bf16.msra.mxu0 %v2939_v25  ;;  %3669 = vmatpush1.bf16.msra.mxu1 %v2941_v33  ;;  %v5965_v25 = vld [vmem:[#allocation44_spill] sm:$0xff] }
 0x487   :  { %3326 = vmatprep.subr.bf16.mxu0 %v2944_v61  ;;  %3670 = vmatprep.subr.bf16.mxu1 %v2946_v38  ;;  %v3008_v33 = vrot.slane %v2999_v14, %v5965_v25  ;;  %v5966_v61 = vld [vmem:[#allocation45_spill] sm:$0xff] }
 0x488   :  { %v3016_v38 = vrot.slane %v2999_v14, %v5966_v61 }
 0x48a   :  { %3327 = vmatpush1.bf16.msra.mxu0 %v2943_v29  ;;  %3671 = vmatpush1.bf16.msra.mxu1 %v2945_v35 }
 0x48b   :  { %3328 = vmatprep.subr.bf16.mxu0 %v2948_v42  ;;  %3672 = vmatprep.subr.bf16.mxu1 %v2950_v59 }
 0x48e   :  { %3329 = vmatpush1.bf16.msra.mxu0 %v2947_v46  ;;  %3673 = vmatpush1.bf16.msra.mxu1 %v2949_v50 }
 0x48f   :  { %3330 = vmatprep.subr.bf16.mxu0 %v2952_v19  ;;  %3674 = vmatprep.subr.bf16.mxu1 %v2954_v39 }
 0x492   :  { %3331 = vmatpush1.bf16.msra.mxu0 %v2951_v21  ;;  %3675 = vmatpush1.bf16.msra.mxu1 %v2953_v37 }
 0x493   :  { %3332 = vmatprep.subr.bf16.mxu0 %v2956_v28  ;;  %3676 = vmatprep.subr.bf16.mxu1 %v2958_v5 }
 0x496   :  { %3333 = vmatpush1.bf16.msra.mxu0 %v2955_v12  ;;  %3677 = vmatpush1.bf16.msra.mxu1 %v2957_v10 }
 0x497   :  { %3334 = vmatprep.subr.bf16.mxu0 %v2960_v49  ;;  %3678 = vmatprep.subr.bf16.mxu1 %v2962_v47 }
 0x49a   :  { %3335 = vmatpush1.bf16.msra.mxu0 %v2959_v2  ;;  %3679 = vmatpush1.bf16.msra.mxu1 %v2961_v22 }
 0x49b   :  { %3336 = vmatprep.subr.bf16.mxu0 %v2964_v1  ;;  %3680 = vmatprep.subr.bf16.mxu1 %v2966_v60 }
 0x49e   :  { %3337 = vmatpush1.bf16.msra.mxu0 %v2963_v4  ;;  %3681 = vmatpush1.bf16.msra.mxu1 %v2965_v52 }
 0x49f   :  { %3338 = vmatprep.subr.bf16.mxu0 %v2968_v7  ;;  %3682 = vmatprep.subr.bf16.mxu1 %v2970_v11 }
 0x4a2   :  { %3339 = vmatpush1.bf16.msra.mxu0 %v2967_v36  ;;  %3683 = vmatpush1.bf16.msra.mxu1 %v2969_v63 }
 0x4a3   :  { %3340 = vmatprep.subr.bf16.mxu0 %v2972_v0  ;;  %3684 = vmatprep.subr.bf16.mxu1 %v2974_v6 }
 0x4a6   :  { %3341 = vmatpush1.bf16.msra.mxu0 %v2971_v18  ;;  %3685 = vmatpush1.bf16.msra.mxu1 %v2973_v56 }
 0x4a7   :  { %3342 = vmatprep.subr.bf16.mxu0 %v2976_v54  ;;  %3686 = vmatprep.subr.bf16.mxu1 %v2978_v17 }
 0x4aa   :  { %3343 = vmatpush1.bf16.msra.mxu0 %v2975_v34  ;;  %3687 = vmatpush1.bf16.msra.mxu1 %v2977_v3 }
 0x4ab   :  { %3344 = vmatprep.subr.bf16.mxu0 %v2980_v30  ;;  %3688 = vmatprep.subr.bf16.mxu1 %v2982_v62 }
 0x4ae   :  { %3345 = vmatpush1.bf16.msra.mxu0 %v2979_v32  ;;  %3689 = vmatpush1.bf16.msra.mxu1 %v2981_v57 }
 0x4af   :  { %3346 = vmatprep.subr.bf16.mxu0 %v2984_v9  ;;  %3690 = vmatprep.subr.bf16.mxu1 %v2986_v51 }
 0x4b2   :  { %3347 = vmatpush1.bf16.msra.mxu0 %v2983_v23  ;;  %3691 = vmatpush1.bf16.msra.mxu1 %v2985_v45 }
 0x4b3   :  { %3348 = vmatprep.subr.bf16.mxu0 %v2988_v16  ;;  %3692 = vmatprep.subr.bf16.mxu1 %v2990_v44 }
 0x4b6   :  { %3349 = vmatpush1.bf16.msra.mxu0 %v2987_v41  ;;  %3693 = vmatpush1.bf16.msra.mxu1 %v2989_v43 }
 0x4b7   :  { %3350 = vmatprep.subr.bf16.mxu0 %v2992_v48  ;;  %3694 = vmatprep.subr.bf16.mxu1 %v2994_v58 }
 0x4ba   :  { %3351 = vmatpush1.bf16.msra.mxu0 %v2991_v13  ;;  %3695 = vmatpush1.bf16.msra.mxu1 %v2993_v53 }
 0x4bb   :  { %3352 = vmatprep.subr.bf16.mxu0 %v2996_v20  ;;  %3696 = vmatprep.subr.bf16.mxu1 %v2998_v26 }
 0x4be   :  { %3353 = vmatpush1.bf16.msra.mxu0 %v2995_v40  ;;  %3697 = vmatpush1.bf16.msra.mxu1 %v2997_v8 }
 0x4c1   :  { %3355 = vmatmul.mubr.bf16.vlgmr.msra.gmra.mrb[32].mxu0 %v5690_v15  ;;  %3699 = vmatmul.mubr.bf16.vlgmr.msra.gmra.mrb[32].mxu1 %v5690_v15 }
 0x594   :  { %v3356_v29 = vpop.f32.mrb[32].mxu0  ;;  %v3700_v35 = vpop.f32.mrb[32].mxu1 }
 0x595   :  { %v5737_v42 = vadd.f32 %v3356_v29, %v3004_v55  ;;  %v5739_v59 = vadd.f32 %v3700_v35, %v3012_v31  ;;  %v3358_v46 = vpop.f32.mrb[33].mxu0  ;;  %v3702_v50 = vpop.f32.mrb[33].mxu1 }
 0x596   :  { %v5741_v19 = vadd.f32 %v3358_v46, %v3008_v33  ;;  %v5743_v15 = vadd.f32 %v3702_v50, %v3016_v38  ;;  %v3360_v39 = vpop.f32.mrb[34].mxu0  ;;  %v3704_v21 = vpop.f32.mrb[34].mxu1 }
 0x597   :  { %v3711_v37 = vrot.slane %v5737_v42, 4  ;;  %v3723_v28 = vrot.slane %v5739_v59, 4  ;;  %v5747_v5 = vadd.f32 %v3360_v39, %v3004_v55  ;;  %v5749_v12 = vadd.f32 %v3704_v21, %v3012_v31  ;;  %v3362_v10 = vpop.f32.mrb[35].mxu0  ;;  %v3706_v49 = vpop.f32.mrb[35].mxu1 }
 0x598   :  { %v3717_v47 = vrot.slane %v5741_v19, 4  ;;  %v3729_v2 = vrot.slane %v5743_v15, 4  ;;  %v5753_v22 = vadd.f32 %v3362_v10, %v3008_v33  ;;  %v5755_v1 = vadd.f32 %v3706_v49, %v3016_v38 }
 0x599   :  { %v3712_v60 = vadd.f32 %v5737_v42, %v3711_v37  ;;  %v3724_v4 = vadd.f32 %v5739_v59, %v3723_v28  ;;  %v3841_v52 = vrot.slane %v5747_v5, 4  ;;  %v3853_v7 = vrot.slane %v5749_v12, 4 }
 0x59a   :  { %v3718_v11 = vadd.f32 %v5741_v19, %v3717_v47  ;;  %v3730_v36 = vadd.f32 %v5743_v15, %v3729_v2  ;;  %v3847_v63 = vrot.slane %v5753_v22, 4  ;;  %v3859_v0 = vrot.slane %v5755_v1, 4 }
 0x59b   :  { %v3713_v6 = vrot.slane %v3712_v60, 2  ;;  %v3725_v18 = vrot.slane %v3724_v4, 2  ;;  %v3842_v56 = vadd.f32 %v5747_v5, %v3841_v52  ;;  %v3854_v54 = vadd.f32 %v5749_v12, %v3853_v7 }
 0x59c   :  { %v3719_v17 = vrot.slane %v3718_v11, 2  ;;  %v3731_v34 = vrot.slane %v3730_v36, 2  ;;  %v3848_v3 = vadd.f32 %v5753_v22, %v3847_v63  ;;  %v3860_v30 = vadd.f32 %v5755_v1, %v3859_v0 }
 0x59d   :  { %v3714_v62 = vadd.f32 %v3713_v6, %v3712_v60  ;;  %v3726_v32 = vadd.f32 %v3725_v18, %v3724_v4  ;;  %v3843_v57 = vrot.slane %v3842_v56, 2  ;;  %v3855_v9 = vrot.slane %v3854_v54, 2 }
 0x59e   :  { %v3720_v51 = vadd.f32 %v3719_v17, %v3718_v11  ;;  %v3732_v23 = vadd.f32 %v3731_v34, %v3730_v36  ;;  %v3849_v45 = vrot.slane %v3848_v3, 2  ;;  %v3861_v16 = vrot.slane %v3860_v30, 2 }
 0x59f   :  { %v3715_v44 = vrot.slane %v3714_v62, 1  ;;  %v3727_v41 = vrot.slane %v3726_v32, 1  ;;  %v3844_v43 = vadd.f32 %v3843_v57, %v3842_v56  ;;  %v3856_v48 = vadd.f32 %v3855_v9, %v3854_v54 }
 0x5a0   :  { %v3721_v58 = vrot.slane %v3720_v51, 1  ;;  %v3733_v13 = vrot.slane %v3732_v23, 1  ;;  %v3850_v53 = vadd.f32 %v3849_v45, %v3848_v3  ;;  %v3862_v20 = vadd.f32 %v3861_v16, %v3860_v30 }
 0x5a1   :  { %v3716_v26 = vadd.f32 %v3715_v44, %v3714_v62  ;;  %v3728_v40 = vadd.f32 %v3727_v41, %v3726_v32  ;;  %v3845_v8 = vrot.slane %v3844_v43, 1  ;;  %v3857_v14 = vrot.slane %v3856_v48, 1 }
 0x5a2   :  { %v3722_v55 = vadd.f32 %v3721_v58, %v3720_v51  ;;  %v3734_v31 = vadd.f32 %v3733_v13, %v3732_v23  ;;  %v3851_v33 = vrot.slane %v3850_v53, 1  ;;  %v3863_v38 = vrot.slane %v3862_v20, 1 }
 0x5a3   :  { %v3735_v29 = vmul.f32 0.125, %v3716_v26  ;;  %v3737_v35 = vmul.f32 0.125, %v3728_v40  ;;  %v3846_v46 = vadd.f32 %v3845_v8, %v3844_v43  ;;  %v3858_v50 = vadd.f32 %v3857_v14, %v3856_v48 }
 0x5a4   :  { %v3736_v39 = vmul.f32 0.125, %v3722_v55  ;;  %v3738_v21 = vmul.f32 0.125, %v3734_v31  ;;  %v3852_v37 = vadd.f32 %v3851_v33, %v3850_v53  ;;  %v3864_v28 = vadd.f32 %v3863_v38, %v3862_v20 }
 0x5a5   :  { %v5770_v10 = vsub.f32 %v5737_v42, %v3735_v29  ;;  %v5773_v49 = vsub.f32 %v5739_v59, %v3737_v35  ;;  %v3865_v47 = vmul.f32 0.125, %v3846_v46  ;;  %v3867_v2 = vmul.f32 0.125, %v3858_v50 }
 0x5a6   :  { %v5776_v60 = vsub.f32 %v5741_v19, %v3736_v39  ;;  %v5779_v4 = vsub.f32 %v5743_v15, %v3738_v21  ;;  %v3866_v52 = vmul.f32 0.125, %v3852_v37  ;;  %v3868_v7 = vmul.f32 0.125, %v3864_v28 }
 0x5a7   :  { %v3743_v11 = vmul.f32 %v5770_v10, %v5770_v10  ;;  %v3745_v42 = vmul.f32 %v5773_v49, %v5773_v49  ;;  %v5786_v36 = vsub.f32 %v5747_v5, %v3865_v47  ;;  %v5789_v59 = vsub.f32 %v5749_v12, %v3867_v2 }
 0x5a8   :  { %v3744_v19 = vmul.f32 %v5776_v60, %v5776_v60  ;;  %v3746_v15 = vmul.f32 %v5779_v4, %v5779_v4  ;;  %v5796_v63 = vsub.f32 %v5753_v22, %v3866_v52  ;;  %v5799_v0 = vsub.f32 %v5755_v1, %v3868_v7 }
 0x5a9   :  { %v3747_v6 = vrot.slane %v3743_v11, 4  ;;  %v3759_v18 = vrot.slane %v3745_v42, 4  ;;  %v3873_v5 = vmul.f32 %v5786_v36, %v5786_v36  ;;  %v3875_v12 = vmul.f32 %v5789_v59, %v5789_v59 }
 0x5aa   :  { %v3753_v56 = vrot.slane %v3744_v19, 4  ;;  %v3765_v54 = vrot.slane %v3746_v15, 4  ;;  %v3874_v17 = vmul.f32 %v5796_v63, %v5796_v63  ;;  %v3876_v22 = vmul.f32 %v5799_v0, %v5799_v0 }
 0x5ab   :  { %v3748_v34 = vadd.f32 %v3747_v6, %v3743_v11  ;;  %v3760_v3 = vadd.f32 %v3759_v18, %v3745_v42  ;;  %v3877_v1 = vrot.slane %v3873_v5, 4  ;;  %v3889_v30 = vrot.slane %v3875_v12, 4 }
 0x5ac   :  { %v3754_v62 = vadd.f32 %v3753_v56, %v3744_v19  ;;  %v3766_v32 = vadd.f32 %v3765_v54, %v3746_v15  ;;  %v3883_v57 = vrot.slane %v3874_v17, 4  ;;  %v3895_v9 = vrot.slane %v3876_v22, 4 }
 0x5ad   :  { %v3749_v51 = vrot.slane %v3748_v34, 2  ;;  %v3761_v23 = vrot.slane %v3760_v3, 2  ;;  %v3878_v45 = vadd.f32 %v3877_v1, %v3873_v5  ;;  %v3890_v16 = vadd.f32 %v3889_v30, %v3875_v12 }
 0x5ae   :  { %v3755_v44 = vrot.slane %v3754_v62, 2  ;;  %v3767_v41 = vrot.slane %v3766_v32, 2  ;;  %v3884_v43 = vadd.f32 %v3883_v57, %v3874_v17  ;;  %v3896_v48 = vadd.f32 %v3895_v9, %v3876_v22 }
 0x5af   :  { %v3750_v58 = vadd.f32 %v3749_v51, %v3748_v34  ;;  %v3762_v13 = vadd.f32 %v3761_v23, %v3760_v3  ;;  %v3879_v53 = vrot.slane %v3878_v45, 2  ;;  %v3891_v20 = vrot.slane %v3890_v16, 2  ;;  %v3709_v51 = vld [vmem:[#allocation19] sm:$0xf]  ;;  %v3710_v23 = vld [vmem:[#allocation20] sm:$0xf] }
 0x5b0   :  { %v3756_v26 = vadd.f32 %v3755_v44, %v3754_v62  ;;  %v3768_v40 = vadd.f32 %v3767_v41, %v3766_v32  ;;  %v3885_v8 = vrot.slane %v3884_v43, 2  ;;  %v3897_v14 = vrot.slane %v3896_v48, 2 }
 0x5b1   :  { %v3751_v55 = vrot.slane %v3750_v58, 1  ;;  %v3763_v31 = vrot.slane %v3762_v13, 1  ;;  %v3880_v33 = vadd.f32 %v3879_v53, %v3878_v45  ;;  %v3892_v38 = vadd.f32 %v3891_v20, %v3890_v16 }
 0x5b2   :  { %v3757_v29 = vrot.slane %v3756_v26, 1  ;;  %v3769_v35 = vrot.slane %v3768_v40, 1  ;;  %v3886_v46 = vadd.f32 %v3885_v8, %v3884_v43  ;;  %v3898_v50 = vadd.f32 %v3897_v14, %v3896_v48 }
 0x5b3   :  { %v3752_v39 = vadd.f32 %v3751_v55, %v3750_v58  ;;  %v3764_v21 = vadd.f32 %v3763_v31, %v3762_v13  ;;  %v3881_v37 = vrot.slane %v3880_v33, 1  ;;  %v3893_v28 = vrot.slane %v3892_v38, 1  ;;  %v3929_v13 = vld [vmem:[#allocation22] sm:$0xf] }
 0x5b4   :  { %v3758_v47 = vadd.f32 %v3757_v29, %v3756_v26  ;;  %v3770_v2 = vadd.f32 %v3769_v35, %v3768_v40  ;;  %v3887_v52 = vrot.slane %v3886_v46, 1  ;;  %v3899_v7 = vrot.slane %v3898_v50, 1 }
 0x5b5   :  { %v3771_v11 = vmul.f32 0.125, %v3752_v39  ;;  %v3773_v42 = vmul.f32 0.125, %v3764_v21  ;;  %v3882_v19 = vadd.f32 %v3881_v37, %v3880_v33  ;;  %v3894_v15 = vadd.f32 %v3893_v28, %v3892_v38 }
 0x5b6   :  { %v3772_v6 = vmul.f32 0.125, %v3758_v47  ;;  %v3774_v18 = vmul.f32 0.125, %v3770_v2  ;;  %v3888_v5 = vadd.f32 %v3887_v52, %v3886_v46  ;;  %v3900_v12 = vadd.f32 %v3899_v7, %v3898_v50 }
 0x5b7   :  { %v3775_v56 = vadd.f32 1e-05, %v3771_v11  ;;  %v3777_v54 = vadd.f32 1e-05, %v3773_v42  ;;  %v3901_v17 = vmul.f32 0.125, %v3882_v19  ;;  %v3903_v22 = vmul.f32 0.125, %v3894_v15 }
 0x5b8   :  { %v3776_v34 = vadd.f32 1e-05, %v3772_v6  ;;  %v3778_v3 = vadd.f32 1e-05, %v3774_v18  ;;  %v3902_v1 = vmul.f32 0.125, %v3888_v5  ;;  %v3904_v30 = vmul.f32 0.125, %v3900_v12 }
 0x5b9   :  { %4352 = vrsqrt.f32 %v3775_v56  ;;  %v3905_v62 = vadd.f32 1e-05, %v3901_v17  ;;  %v3907_v32 = vadd.f32 1e-05, %v3903_v22  ;;  %v3791_v45 = vrot.slane %v3709_v51, %v5963_v27 }
 0x5ba   :  { %4354 = vrsqrt.f32 %v3777_v54  ;;  %v3906_v57 = vadd.f32 1e-05, %v3902_v1  ;;  %v3908_v9 = vadd.f32 1e-05, %v3904_v30  ;;  %v3799_v44 = vrot.slane %v3709_v51, %v5964_v24 }
 0x5bb   :  { %4356 = vrsqrt.f32 %v3776_v34  ;;  %v3795_v48 = vrot.slane %v3709_v51, %v5965_v25  ;;  %v3816_v58 = vrot.slane %v3710_v23, %v5963_v27  ;;  %v3803_v26 = vrot.slane %v3709_v51, %v5966_v61 }
 0x5bc   :  { %4358 = vrsqrt.f32 %v3778_v3  ;;  %v3824_v40 = vrot.slane %v3710_v23, %v5964_v24  ;;  %v3820_v31 = vrot.slane %v3710_v23, %v5965_v25  ;;  %v3828_v29 = vrot.slane %v3710_v23, %v5966_v61 }
 0x5bd   :  { %4360 = vrsqrt.f32 %v3905_v62  ;;  %v3934_v35 = vrot.slane %v3929_v13, %v5963_v27  ;;  %v3938_v21 = vrot.slane %v3929_v13, %v5965_v25  ;;  %v3942_v2 = vrot.slane %v3929_v13, %v5964_v24 }
 0x5be   :  { %4362 = vrsqrt.f32 %v3907_v32 }
 0x5bf   :  { %4364 = vrsqrt.f32 %v3906_v57 }
 0x5c0   :  { %4366 = vrsqrt.f32 %v3908_v9 }
 0x5c3   :  { %v4353_v16 = vpop.eup %4352 }
 0x5c4   :  { %v4355_v41 = vpop.eup %4354  ;;  %v3783_v43 = vmul.f32 %v4353_v16, %v5770_v10 }
 0x5c5   :  { %v4357_v53 = vpop.eup %4356  ;;  %v3785_v20 = vmul.f32 %v4355_v41, %v5773_v49  ;;  %v4195_v41 = vld [vmem:[#allocation4] ss:$0 sm:$0xff] }
 0x5c6   :  { %v4359_v8 = vpop.eup %4358  ;;  %v3808_v14 = vmul.f32 %v3791_v45, %v3783_v43  ;;  %v3784_v55 = vmul.f32 %v4357_v53, %v5776_v60 }
 0x5c7   :  { %v4361_v33 = vpop.eup %4360  ;;  %v3786_v10 = vmul.f32 %v4359_v8, %v5779_v4  ;;  %v3810_v38 = vmul.f32 %v3799_v44, %v3785_v20 }
 0x5c8   :  { %v4363_v46 = vpop.eup %4362  ;;  %v3809_v49 = vmul.f32 %v3795_v48, %v3784_v55  ;;  %v3913_v50 = vmul.f32 %v4361_v33, %v5786_v36  ;;  %v3833_v39 = vadd.f32 %v3816_v58, %v3808_v14 }
 0x5c9   :  { %v4365_v37 = vpop.eup %4364  ;;  %v3915_v60 = vmul.f32 %v4363_v46, %v5789_v59  ;;  %v3811_v28 = vmul.f32 %v3803_v26, %v3786_v10  ;;  %v3835_v47 = vadd.f32 %v3824_v40, %v3810_v38  ;;  %v3946_v59 = vrot.slane %v3929_v13, %v5966_v61 }
 0x5ca   :  { %v4367_v4 = vpop.eup %4366  ;;  %v3917_v52 = vmul.f32 %v3913_v50, %v3791_v45  ;;  %v3914_v7 = vmul.f32 %v4365_v37, %v5796_v63  ;;  %v3834_v11 = vadd.f32 %v3820_v31, %v3809_v49  ;;  %v3837_v27 = vmax.f32 %v3833_v39, 0.0 }
 0x5cb   :  { %v3919_v42 = vmul.f32 %v3915_v60, %v3799_v44  ;;  %v3916_v19 = vmul.f32 %v4367_v4, %v5799_v0  ;;  %v3836_v36 = vadd.f32 %v3828_v29, %v3811_v28  ;;  %v3839_v15 = vmax.f32 %v3835_v47, 0.0 }
 0x5cc   :  { %v3918_v6 = vmul.f32 %v3914_v7, %v3795_v48  ;;  %v3838_v25 = vmax.f32 %v3834_v11, 0.0  ;;  %v3951_v18 = vmul.f32 %v3934_v35, %v3837_v27  ;;  %v3921_v5 = vadd.f32 %v3917_v52, %v3816_v58 }
 0x5cd   :  { %v3920_v12 = vmul.f32 %v3916_v19, %v3803_v26  ;;  %v3923_v56 = vadd.f32 %v3919_v42, %v3824_v40  ;;  %v3840_v24 = vmax.f32 %v3836_v36, 0.0  ;;  %v3953_v63 = vmul.f32 %v3942_v2, %v3839_v15 }
 0x5ce   :  { %v3952_v54 = vmul.f32 %v3938_v21, %v3838_v25  ;;  %v3922_v17 = vadd.f32 %v3918_v6, %v3820_v31  ;;  %v3925_v22 = vmax.f32 %v3921_v5, 0.0 }
 0x5cf   :  { %v3924_v34 = vadd.f32 %v3920_v12, %v3828_v29  ;;  %v3927_v30 = vmax.f32 %v3923_v56, 0.0  ;;  %v3954_v62 = vmul.f32 %v3946_v59, %v3840_v24 }
 0x5d0   :  { %v3959_v3 = vadd.f32 %v3952_v54, %v3951_v18  ;;  %v3926_v1 = vmax.f32 %v3922_v17, 0.0  ;;  %v3955_v0 = vmul.f32 %v3934_v35, %v3925_v22 }
 0x5d1   :  { %v3928_v57 = vmax.f32 %v3924_v34, 0.0  ;;  %v3957_v23 = vmul.f32 %v3942_v2, %v3927_v30 }
 0x5d2   :  { %v3960_v32 = vadd.f32 %v3959_v3, %v3953_v63  ;;  %v3956_v9 = vmul.f32 %v3938_v21, %v3926_v1 }
 0x5d3   :  { %v3958_v61 = vmul.f32 %v3946_v59, %v3928_v57 }
 0x5d4   :  { %v3961_v51 = vadd.f32 %v3960_v32, %v3954_v62  ;;  %v3964_v45 = vadd.f32 %v3956_v9, %v3955_v0 }
 0x5d6   :  { %3962 = vadd.xlane.f32.xlu0 %v3961_v51  ;;  %v3965_v16 = vadd.f32 %v3964_v45, %v3957_v23 }
 0x5d8   :  { %v3966_v44 = vadd.f32 %v3965_v16, %v3958_v61  ;;  %v5967_v16 = vlaneseq }
 0x5da   :  { %3967 = vadd.xlane.f32.xlu0 %v3966_v44  ;;  %v4037_v44 = vand.u32 127, %v5967_v16 }
 0x5dc   :  { %vm4038_vm3 = vcmp.eq.s32.totalorder %v4037_v44, 0  ;;  %vm4045_vm4 = vcmp.eq.s32.totalorder %v4037_v44, 1 }
 0x663   :  { %v3963_v43 = vpop.xlane.xlu0 %3962 }
 0x664   :  { %v3976_v48 = vadd.f32 %v4195_v41, %v3963_v43 }
 0x666   :  { %v3978_v58 = vsub.f32 0.0, %v3976_v48  ;;  %v4016_v49 = vsel %vm3988_vm2, %v3976_v48, 0.0 }
 0x667   :  { %v3968_v13 = vpop.xlane.xlu0 %3967  ;;  %v4017_v39 = vrot.slane %v4016_v49, 4 }
 0x668   :  { %v3980_v53 = vand.u32 2147483647, %v3978_v58  ;;  %v3977_v20 = vadd.f32 %v4195_v41, %v3968_v13  ;;  %v3979_v28 = vmax.f32 %v3978_v58, 0.0 }
 0x669   :  { %v4018_v60 = vadd.f32 %v4017_v39, %v4016_v49 }
 0x66a   :  { %v3981_v26 = vsub.f32 0.0, %v3980_v53  ;;  %v3999_v40 = vand.u32 2147483647, %v3977_v20  ;;  %v4024_v8 = vmul.f32 1.442695, %v3977_v20  ;;  %v3998_v7 = vmax.f32 %v3977_v20, 0.0 }
 0x66b   :  { %v4019_v27 = vrot.slane %v4018_v60, 2 }
 0x66c   :  { %v3982_v14 = vmul.f32 1.442695, %v3981_v26  ;;  %v4000_v55 = vsub.f32 0.0, %v3999_v40 }
 0x66d   :  { %v4020_v25 = vadd.f32 %v4019_v27, %v4018_v60 }
 0x66e   :  { %4368 = vpow2.f32 %v3982_v14  ;;  %v4001_v31 = vmul.f32 1.442695, %v4000_v55 }
 0x66f   :  { %4370 = vpow2.f32 %v4024_v8  ;;  %v4021_v24 = vrot.slane %v4020_v25, 1 }
 0x670   :  { %4372 = vpow2.f32 %v4001_v31 }
 0x671   :  { %v4022_v30 = vadd.f32 %v4021_v24, %v4020_v25 }
 0x673   :  { %v4023_v51 = vmul.f32 0.125, %v4022_v30 }
 0x678   :  { %v4369_v33 = vpop.eup %4368 }
 0x679   :  { %v4371_v10 = vpop.eup %4370  ;;  %v3984_v38 = vadd.f32 1.0, %v4369_v33 }
 0x67a   :  { %v4373_v29 = vpop.eup %4372  ;;  %v4026_v46 = vsel %vm3988_vm2, %v4371_v10, 0.0 }
 0x67b   :  { %4374 = vlog2.f32 %v3984_v38  ;;  %v4003_v35 = vadd.f32 1.0, %v4373_v29  ;;  %v4027_v50 = vrot.slane %v4026_v46, 4 }
 0x67d   :  { %4376 = vlog2.f32 %v4003_v35  ;;  %v4028_v21 = vadd.f32 %v4027_v50, %v4026_v46 }
 0x67f   :  { %v4029_v4 = vrot.slane %v4028_v21, 2 }
 0x681   :  { %v4030_v15 = vadd.f32 %v4029_v4, %v4028_v21 }
 0x683   :  { %v4031_v56 = vrot.slane %v4030_v15, 1 }
 0x685   :  { %v4375_v37 = vpop.eup %4374  ;;  %v4032_v34 = vadd.f32 %v4031_v56, %v4030_v15 }
 0x686   :  { %v3986_v47 = vmul.f32 0.6931472, %v4375_v37 }
 0x687   :  { %v4377_v2 = vpop.eup %4376  ;;  %v4033_v32 = vmul.f32 0.125, %v4032_v34 }
 0x688   :  { %v3987_v52 = vadd.f32 %v3986_v47, %v3979_v28  ;;  %v4005_v11 = vmul.f32 0.6931472, %v4377_v2 }
 0x689   :  { %v4034_v45 = vsub.f32 %v4023_v51, %v4033_v32 }
 0x68a   :  { %v3989_v42 = vsel %vm3988_vm2, %v3987_v52, 0.0  ;;  %v4006_v19 = vadd.f32 %v4005_v11, %v3998_v7 }
 0x68b   :  { %v3990_v36 = vrot.slane %v3989_v42, 4  ;;  %v4035_v61 = vadd.f32 1.0, %v4034_v45 }
 0x68c   :  { %v4007_v6 = vsel %vm3988_vm2, %v4006_v19, 0.0 }
 0x68d   :  { %v3991_v18 = vadd.f32 %v3990_v36, %v3989_v42  ;;  %v4008_v5 = vrot.slane %v4007_v6, 4 }
 0x68f   :  { %v3992_v59 = vrot.slane %v3991_v18, 2  ;;  %v4009_v12 = vadd.f32 %v4008_v5, %v4007_v6 }
 0x691   :  { %v3993_v54 = vadd.f32 %v3992_v59, %v3991_v18  ;;  %v4010_v17 = vrot.slane %v4009_v12, 2 }
 0x693   :  { %v3994_v22 = vrot.slane %v3993_v54, 1  ;;  %v4011_v63 = vadd.f32 %v4010_v17, %v4009_v12 }
 0x695   :  { %v3995_v3 = vadd.f32 %v3994_v22, %v3993_v54  ;;  %v4012_v1 = vrot.slane %v4011_v63, 1 }
 0x697   :  { %v3996_v0 = vmul.f32 0.125, %v3995_v3  ;;  %v4013_v62 = vadd.f32 %v4012_v1, %v4011_v63 }
 0x699   :  { %v3997_v57 = vsub.f32 0.0, %v3996_v0  ;;  %v4014_v9 = vmul.f32 0.125, %v4013_v62 }
 0x69b   :  { %v4015_v23 = vsub.f32 %v3997_v57, %v4014_v9 }
 0x69d   :  { %4041 = vperm.xlu1 %4350, %v4015_v23  }
 0x6a1   :  { %4048 = vperm.xlu1 %4350, %v4035_v61  }
 0x71c   :  { %v4042_v41 = vpop.permute.xlu1 %4041 }
 0x71d   :  { %v4044_v48 = vsel %vm4038_vm3, %v4042_v41, 0.0 }
 0x720   :  { %v4049_v43 = vpop.permute.xlu1 %4048 }
 0x721   :  { %v4051_v58 = vsel %vm4045_vm4, %v4049_v43, 0.0 }
 0x722   :  { %v4052_v13 = vadd.f32 %v4051_v58, %v4044_v48 }
 0x724   :  { %4053 = vst [vmem:[#allocation23] sm:$0x1] %v4052_v13 }
 0x725   :  { %4631 = shalt.err (!%p4628_p8)
}
 0x726   :  { %s4632_s3 = scalar_lea.hbm %s5859_s13, 16 }
 0x727   :  { %p4633_p9 = scmp.ne.s32.totalorder %s5859_s13, %s4632_s3  ;;  %p4636_p10 = scmp.lt.u32.totalorder %s4632_s3, %s5859_s13 }
 0x729   :  { %p4638_p11 = pnand %p4636_p10, %p4633_p9 }
 0x72b   :  { %4641 = shalt.err (!%p4638_p11)
}
 0x72c   :  { %4063 = dma.vmem_to_hbm [thread:$0]  %s4061_s16, 16, %s5859_s13, [#allocation7]  }
 0x72d   :  { %4656 = dma.done.wait [#allocation7], 16  }
 0x72e   :  { %4657 = vsyncadd [#allocation7], 4294967280 }
 0x72f   :  { %4067 = vsyncpa [#allocation6], 1 }
 0x730   :  { %4068 = vsyncpa [#allocation9], 1 }
 0x731   :  { %4069 = vsyncpa [#allocation12], 1 }
 0x732   :  { %4070 = vsyncpa [#allocation15], 1 }
 0x733   :  { %4071 = vsyncpa [#allocation18], 1 }
 0x734   :  { %4072 = vsyncpa [#allocation21], 1 }
 0x735   :  { %4073 = vsyncpa [#allocation7], 1 }
 0x736   :  { %4074 = vsyncmov [#allocation3] }
 0x739   :  { %s4075_s19 = vpop.sfrf %4074 }
 0x73a   :  { %p4196_p12 = scmp.ne.s32.totalorder %s4075_s19, 0 }
 0x73c   :  { %4079 = shalt.err (%p4196_p12)  }

</bundles_post_ra>
